<compile_context>
chip_gen: v7x
topology: tpu7x:2x2x1
jax: 0.10.0
libtpu: 0.0.40
codegen_flags: <defaults>
</compile_context>

<pallas_src>
import functools

import jax
import jax.numpy as jnp
from jax.experimental import pallas as pl
from jax.experimental.pallas import tpu as pltpu

F32 = jnp.float32
NEG = -1e30  # stands in for -inf in the masked softmax


# ----------------------------- in-kernel helpers -----------------------------

def _sigmoid(v):
    # exact form kept here so the parity check vs the pure-JAX reference stays
    # tight; production kernels can switch to pl.reciprocal(..., approx=True).
    return 1.0 / (1.0 + jnp.exp(-v))


def _silu(v):
    return v * _sigmoid(v)


# --------------------------------- kernel ------------------------------------

def _react_block_kernel(
    res_ref, ln_g_ref, ln_b_ref, conv_w_ref, conv_b_ref,
    rt_w1_ref, rt_b1_ref, rt_w2_ref, rt_b2_ref,
    w1_ref, b1_ref, w2_ref, b2_ref, w3_ref, b3_ref,
    se_w1_ref, se_b1_ref, se_w2_ref, se_b2_ref, sres_ref,
    o_ref, xpad_ref,
    *, K, E, I, T,
):
    res = res_ref[0]                                   # [T, C]
    C = res.shape[-1]
    pad = K // 2

    # ---- LayerNorm -----------------------------------------------------------
    mu = jnp.mean(res, axis=-1, keepdims=True)
    var = jnp.mean((res - mu) ** 2, axis=-1, keepdims=True)
    xn = (res - mu) * jax.lax.rsqrt(var + 1e-5) * ln_g_ref[...] + ln_b_ref[...]

    # ---- depthwise Conv1d, "same" padding, groups == C (taps unrolled) -------
    # Padded copy lives in VMEM scratch: no HBM pad round-trip.
    xpad_ref[...] = jnp.zeros((T + 2 * pad, C), jnp.float32)
    xpad_ref[pad:pad + T, :] = xn
    xp = xpad_ref[...]                                 # [T + 2*pad, C]
    w = conv_w_ref[...]                                # [K, C]
    acc = jnp.zeros((T, C), jnp.float32)
    for k in range(K):                                 # K static -> unrolled
        acc = acc + xp[k:k + T, :] * w[k:k + 1, :]
    h = acc + conv_b_ref[...]                          # [T, C]

    # ---- MoE router: Linear -> SiLU -> Linear, then top-2 masked softmax -----
    r = _silu(jnp.dot(h, rt_w1_ref[...], preferred_element_type=jnp.float32)
              + rt_b1_ref[...])
    rv = jnp.dot(r, rt_w2_ref[...], preferred_element_type=jnp.float32) \
        + rt_b2_ref[...]                               # [T, E]

    # exact top-2 mask with first-occurrence tie breaking (== torch.topk(k=2))
    eidx = jax.lax.broadcasted_iota(jnp.int32, rv.shape, 1).astype(jnp.float32)
    big = jnp.float32(E)
    top1 = jnp.max(rv, axis=-1, keepdims=True)
    i1 = jnp.min(jnp.where(rv >= top1, eidx, big), axis=-1, keepdims=True)
    m1 = eidx == i1
    rv2 = jnp.where(m1, NEG, rv)
    top2 = jnp.max(rv2, axis=-1, keepdims=True)
    i2 = jnp.min(jnp.where(rv2 >= top2, eidx, big), axis=-1, keepdims=True)
    mask = m1 | (eidx == i2)

    logits = jnp.where(mask, rv, NEG)
    mx = jnp.max(logits, axis=-1, keepdims=True)
    p = jnp.where(mask, jnp.exp(logits - mx), 0.0)
    wt = p * pl.reciprocal(jnp.sum(p, axis=-1, keepdims=True), approx=True)  # [T,E]

    # ---- experts + fused weighted combine (no [E, N, C] materialization) -----
    # One wide GEMM for every expert's first layer (a/g halves merged).
    h1_all = jnp.dot(h, w1_ref[...], preferred_element_type=jnp.float32) \
        + b1_ref[...]                                  # [T, E*2I]
    y = h                                              # residual inside the MoE
    for e in range(E):                                 # E static -> unrolled
        he = h1_all[:, e * 2 * I:(e + 1) * 2 * I]      # [T, 2I]
        u1 = he[:, :I] * _silu(he[:, I:])              # SwiGLU
        h2 = jnp.dot(u1, w2_ref[e], preferred_element_type=jnp.float32) \
            + b2_ref[e]                                # [T, 2I]
        u2 = h2[:, :I] * _silu(h2[:, I:])              # SwiGLU
        oe = jnp.dot(u2, w3_ref[e], preferred_element_type=jnp.float32) \
            + b3_ref[e]                                # [T, C]
        y = y + wt[:, e:e + 1] * oe                    # fused combine

    # ---- SE gate --------------------------------------------------------------
    u = jnp.mean(xn * sres_ref[...] + y, axis=0, keepdims=True)          # [1, C]
    g1 = _silu(jnp.dot(u, se_w1_ref[...], preferred_element_type=jnp.float32)
               + se_b1_ref[...])
    gate = _sigmoid(jnp.dot(g1, se_w2_ref[...], preferred_element_type=jnp.float32)
                    + se_b2_ref[...])                                     # [1, C]

    # ---- gated residual --------------------------------------------------------
    o_ref[0] = res + y * gate


# --------------------------------- wrapper -----------------------------------

def react_net_block(res, p, *, K, E, inner):
    """Fused ReactNetBlock forward. res: [B, T, C] float32."""
    B, T, C = res.shape
    I = inner
    pad = K // 2
    Csq = p["se_w1"].shape[1]

    # merge per-expert first-layer weights into one wide matmul operand
    w1cat = jnp.transpose(p["ex_w1"], (1, 0, 2)).reshape(C, E * 2 * I)
    b1cat = p["ex_b1"].reshape(1, E * 2 * I)

    args = [
        res,
        p["ln_g"].reshape(1, C), p["ln_b"].reshape(1, C),
        p["conv_w"], p["conv_b"].reshape(1, C),
        p["rt_w1"], p["rt_b1"].reshape(1, C),
        p["rt_w2"], p["rt_b2"].reshape(1, E),
        w1cat, b1cat,
        p["ex_w2"], p["ex_b2"].reshape(E, 1, 2 * I),
        p["ex_w3"], p["ex_b3"].reshape(E, 1, C),
        p["se_w1"], p["se_b1"].reshape(1, Csq),
        p["se_w2"], p["se_b2"].reshape(1, C),
        p["senet_res"].reshape(1, C),
    ]

    in_specs = [pl.BlockSpec((1, T, C), lambda b: (b, 0, 0))]
    for a in args[1:]:
        nd = a.ndim
        in_specs.append(pl.BlockSpec(a.shape, (lambda b, _nd=nd: (0,) * _nd)))

    kernel = functools.partial(_react_block_kernel, K=K, E=E, I=I, T=T)
    return pl.pallas_call(
        kernel,
        out_shape=jax.ShapeDtypeStruct((B, T, C), F32),
        grid=(B,),
        in_specs=in_specs,
        out_specs=pl.BlockSpec((1, T, C), lambda b: (b, 0, 0)),
        scratch_shapes=[pltpu.VMEM((T + 2 * pad, C), F32)],
        compiler_params=pltpu.CompilerParams(
            dimension_semantics=("parallel",),        # megacore on v7x
            vmem_limit_bytes=32 * 1024 * 1024,        # fits all generations
        ),
    )(*args)


# ---------------------------- pure-JAX reference ------------------------------

def _ref_block(res, p, *, K, E, I):
    B, T, C = res.shape
    mu = jnp.mean(res, axis=-1, keepdims=True)
    var = jnp.mean((res - mu) ** 2, axis=-1, keepdims=True)
    xn = (res - mu) * jax.lax.rsqrt(var + 1e-5) * p["ln_g"] + p["ln_b"]

    pad = K // 2
    xp = jnp.pad(xn, ((0, 0), (pad, pad), (0, 0)))
    conv = sum(xp[:, k:k + T, :] * p["conv_w"][k][None, None, :] for k in range(K))
    h = (conv + p["conv_b"]).reshape(B * T, C)

    r = jax.nn.silu(h @ p["rt_w1"] + p["rt_b1"])
    rv = r @ p["rt_w2"] + p["rt_b2"]
    _, idx = jax.lax.top_k(rv, 2)
    mask = jnp.zeros_like(rv, dtype=bool).at[
        jnp.arange(rv.shape[0])[:, None], idx].set(True)
    wt = jax.nn.softmax(jnp.where(mask, rv, -jnp.inf), axis=-1)

    y = h
    for e in range(E):
        h1 = h @ p["ex_w1"][e] + p["ex_b1"][e]
        u1 = h1[:, :I] * jax.nn.silu(h1[:, I:])
        h2 = u1 @ p["ex_w2"][e] + p["ex_b2"][e]
        u2 = h2[:, :I] * jax.nn.silu(h2[:, I:])
        oe = u2 @ p["ex_w3"][e] + p["ex_b3"][e]
        y = y + wt[:, e:e + 1] * oe
    y = y.reshape(B, T, C)

    u = jnp.mean(xn * p["senet_res"] + y, axis=1)                  # [B, C]
    g1 = jax.nn.silu(u @ p["se_w1"] + p["se_b1"])
    gate = jax.nn.sigmoid(g1 @ p["se_w2"] + p["se_b2"])            # [B, C]
    return res + y * gate[:, None, :]


# ------------------------------ params / main ---------------------------------

def init_params(key, *, C, K, E, I, sq):
    it = iter(jax.random.split(key, 20))

    def nrm(shape, scale=0.1):
        return (scale * jax.random.normal(next(it), shape)).astype(F32)

    return {
        "ln_g": jnp.ones((C,), F32), "ln_b": jnp.zeros((C,), F32),
        "conv_w": nrm((K, C), 0.2), "conv_b": nrm((C,)),
        "rt_w1": nrm((C, C)), "rt_b1": nrm((C,)),
        "rt_w2": nrm((C, E)), "rt_b2": nrm((E,)),
        "ex_w1": nrm((E, C, 2 * I)), "ex_b1": nrm((E, 2 * I)),
        "ex_w2": nrm((E, I, 2 * I)), "ex_b2": nrm((E, 2 * I)),
        "ex_w3": nrm((E, I, C)), "ex_b3": nrm((E, C)),
        "se_w1": nrm((C, C // sq)), "se_b1": nrm((C // sq,)),
        "se_w2": nrm((C // sq, C)), "se_b2": nrm((C,)),
        "senet_res": jnp.ones((C,), F32),
    }


if __name__ == "__main__":
    # small, module-consistent shapes (dim kept at 128 so stores are lane-dense)
    B, T = 2, 16
    dim = 128                  # ReactNetBlock(dim=...)
    expansion_factor = 1
    K = 31                     # kernel_size default
    E = 5                      # num_experts (num_actives = 2)
    sq = 8                     # senet_squeeze
    I = int(dim * expansion_factor)

    key = jax.random.PRNGKey(0)
    kp, kx = jax.random.split(key)
    params = init_params(kp, C=dim, K=K, E=E, I=I, sq=sq)
    res = jax.random.normal(kx, (B, T, dim), dtype=F32)

    out = react_net_block(res, params, K=K, E=E, inner=I)
    out = jax.block_until_ready(out)

    assert out.shape == (B, T, dim)
    assert bool(jnp.all(jnp.isfinite(out)))

    # parity vs pure-JAX reference (tolerance covers MXU f32 accumulation order
    # and the approx-reciprocal softmax denominator)
    ref = _ref_block(res, params, K=K, E=E, I=I)
    max_err = float(jnp.max(jnp.abs(out - ref)))
    assert max_err < 5e-3, f"kernel/reference mismatch: max |diff| = {max_err}"

    print("KERNEL_OK")
</pallas_src>

<mosaic_0001>
module attributes {stable_mosaic.version = 11 : i64} {
  func.func @_react_block_kernel(%arg0: i32, %arg1: memref<1x16x128xf32, #tpu.memory_space<vmem>>, %arg2: memref<1x128xf32, #tpu.memory_space<vmem>>, %arg3: memref<1x128xf32, #tpu.memory_space<vmem>>, %arg4: memref<31x128xf32, #tpu.memory_space<vmem>>, %arg5: memref<1x128xf32, #tpu.memory_space<vmem>>, %arg6: memref<128x128xf32, #tpu.memory_space<vmem>>, %arg7: memref<1x128xf32, #tpu.memory_space<vmem>>, %arg8: memref<128x5xf32, #tpu.memory_space<vmem>>, %arg9: memref<1x5xf32, #tpu.memory_space<vmem>>, %arg10: memref<128x1280xf32, #tpu.memory_space<vmem>>, %arg11: memref<1x1280xf32, #tpu.memory_space<vmem>>, %arg12: memref<5x128x256xf32, #tpu.memory_space<vmem>>, %arg13: memref<5x1x256xf32, #tpu.memory_space<vmem>>, %arg14: memref<5x128x128xf32, #tpu.memory_space<vmem>>, %arg15: memref<5x1x128xf32, #tpu.memory_space<vmem>>, %arg16: memref<128x16xf32, #tpu.memory_space<vmem>>, %arg17: memref<1x16xf32, #tpu.memory_space<vmem>>, %arg18: memref<16x128xf32, #tpu.memory_space<vmem>>, %arg19: memref<1x128xf32, #tpu.memory_space<vmem>>, %arg20: memref<1x128xf32, #tpu.memory_space<vmem>>, %arg21: memref<1x16x128xf32, #tpu.memory_space<vmem>>, %arg22: memref<46x128xf32, #tpu.memory_space<vmem>>) attributes {dimension_semantics = [#tpu.dimension_semantics<parallel>], iteration_bounds = array<i64: 2>, scalar_prefetch = 0 : i64, scratch_operands = 1 : i64, tpu.core_type = #tpu.core_type<tc>, window_params = [{transform_indices = @transform_0, window_bounds = array<i64: 1, 16, 128>}, {pipeline_mode = #tpu.pipeline_mode<synchronous>, transform_indices = @transform_1, window_bounds = array<i64: 1, 128>}, {pipeline_mode = #tpu.pipeline_mode<synchronous>, transform_indices = @transform_2, window_bounds = array<i64: 1, 128>}, {pipeline_mode = #tpu.pipeline_mode<synchronous>, transform_indices = @transform_3, window_bounds = array<i64: 31, 128>}, {pipeline_mode = #tpu.pipeline_mode<synchronous>, transform_indices = @transform_4, window_bounds = array<i64: 1, 128>}, {pipeline_mode = #tpu.pipeline_mode<synchronous>, transform_indices = @transform_5, window_bounds = array<i64: 128, 128>}, {pipeline_mode = #tpu.pipeline_mode<synchronous>, transform_indices = @transform_6, window_bounds = array<i64: 1, 128>}, {pipeline_mode = #tpu.pipeline_mode<synchronous>, transform_indices = @transform_7, window_bounds = array<i64: 128, 5>}, {pipeline_mode = #tpu.pipeline_mode<synchronous>, transform_indices = @transform_8, window_bounds = array<i64: 1, 5>}, {pipeline_mode = #tpu.pipeline_mode<synchronous>, transform_indices = @transform_9, window_bounds = array<i64: 128, 1280>}, {pipeline_mode = #tpu.pipeline_mode<synchronous>, transform_indices = @transform_10, window_bounds = array<i64: 1, 1280>}, {pipeline_mode = #tpu.pipeline_mode<synchronous>, transform_indices = @transform_11, window_bounds = array<i64: 5, 128, 256>}, {pipeline_mode = #tpu.pipeline_mode<synchronous>, transform_indices = @transform_12, window_bounds = array<i64: 5, 1, 256>}, {pipeline_mode = #tpu.pipeline_mode<synchronous>, transform_indices = @transform_13, window_bounds = array<i64: 5, 128, 128>}, {pipeline_mode = #tpu.pipeline_mode<synchronous>, transform_indices = @transform_14, window_bounds = array<i64: 5, 1, 128>}, {pipeline_mode = #tpu.pipeline_mode<synchronous>, transform_indices = @transform_15, window_bounds = array<i64: 128, 16>}, {pipeline_mode = #tpu.pipeline_mode<synchronous>, transform_indices = @transform_16, window_bounds = array<i64: 1, 16>}, {pipeline_mode = #tpu.pipeline_mode<synchronous>, transform_indices = @transform_17, window_bounds = array<i64: 16, 128>}, {pipeline_mode = #tpu.pipeline_mode<synchronous>, transform_indices = @transform_18, window_bounds = array<i64: 1, 128>}, {pipeline_mode = #tpu.pipeline_mode<synchronous>, transform_indices = @transform_19, window_bounds = array<i64: 1, 128>}, {transform_indices = @transform_20, window_bounds = array<i64: 1, 16, 128>}]} {
    %c0 = arith.constant 0 : index
    %c0_0 = arith.constant 0 : index
    %c0_1 = arith.constant 0 : index
    %0 = vector.load %arg1[%c0, %c0_0, %c0_1] : memref<1x16x128xf32, #tpu.memory_space<vmem>>, vector<1x16x128xf32>
    %1 = vector.shape_cast %0 : vector<1x16x128xf32> to vector<16x128xf32>
    %cst = arith.constant dense<0.000000e+00> : vector<16xf32>
    %2 = vector.multi_reduction <add>, %1, %cst [1] : vector<16x128xf32> to vector<16xf32>
    %3 = vector.shape_cast %2 : vector<16xf32> to vector<16x1xf32>
    %cst_2 = arith.constant 1.280000e+02 : f32
    %4 = vector.broadcast %cst_2 : f32 to vector<16x1xf32>
    %5 = arith.divf %3, %4 : vector<16x1xf32>
    %6 = vector.broadcast %5 : vector<16x1xf32> to vector<16x128xf32>
    %7 = arith.subf %1, %6 : vector<16x128xf32>
    %8 = arith.mulf %7, %7 : vector<16x128xf32>
    %cst_3 = arith.constant dense<0.000000e+00> : vector<16xf32>
    %9 = vector.multi_reduction <add>, %8, %cst_3 [1] : vector<16x128xf32> to vector<16xf32>
    %10 = vector.shape_cast %9 : vector<16xf32> to vector<16x1xf32>
    %cst_4 = arith.constant 1.280000e+02 : f32
    %11 = vector.broadcast %cst_4 : f32 to vector<16x1xf32>
    %12 = arith.divf %10, %11 : vector<16x1xf32>
    %13 = vector.broadcast %5 : vector<16x1xf32> to vector<16x128xf32>
    %14 = arith.subf %1, %13 : vector<16x128xf32>
    %cst_5 = arith.constant 9.99999974E-6 : f32
    %15 = vector.broadcast %cst_5 : f32 to vector<16x1xf32>
    %16 = arith.addf %12, %15 : vector<16x1xf32>
    %17 = math.rsqrt %16 : vector<16x1xf32>
    %18 = vector.broadcast %17 : vector<16x1xf32> to vector<16x128xf32>
    %19 = arith.mulf %14, %18 : vector<16x128xf32>
    %c0_6 = arith.constant 0 : index
    %c0_7 = arith.constant 0 : index
    %20 = vector.load %arg2[%c0_6, %c0_7] : memref<1x128xf32, #tpu.memory_space<vmem>>, vector<1x128xf32>
    %21 = vector.broadcast %20 : vector<1x128xf32> to vector<16x128xf32>
    %22 = arith.mulf %19, %21 : vector<16x128xf32>
    %c0_8 = arith.constant 0 : index
    %c0_9 = arith.constant 0 : index
    %23 = vector.load %arg3[%c0_8, %c0_9] : memref<1x128xf32, #tpu.memory_space<vmem>>, vector<1x128xf32>
    %24 = vector.broadcast %23 : vector<1x128xf32> to vector<16x128xf32>
    %25 = arith.addf %22, %24 : vector<16x128xf32>
    %cst_10 = arith.constant 0.000000e+00 : f32
    %26 = vector.broadcast %cst_10 : f32 to vector<46x128xf32>
    %c0_11 = arith.constant 0 : index
    %c0_12 = arith.constant 0 : index
    %27 = vector.load %arg22[%c0_11, %c0_12] : memref<46x128xf32, #tpu.memory_space<vmem>>, vector<46x128xf32>
    tpu.vector_store %arg22[%c0_11, %c0_12], %26 {strides = array<i32>} : memref<46x128xf32, #tpu.memory_space<vmem>>, vector<46x128xf32>,
    %c15 = arith.constant 15 : index
    %c0_13 = arith.constant 0 : index
    %28 = vector.load %arg22[%c15, %c0_13] : memref<46x128xf32, #tpu.memory_space<vmem>>, vector<16x128xf32>
    tpu.vector_store %arg22[%c15, %c0_13], %25 {strides = array<i32>} : memref<46x128xf32, #tpu.memory_space<vmem>>, vector<16x128xf32>,
    %c0_14 = arith.constant 0 : index
    %c0_15 = arith.constant 0 : index
    %29 = vector.load %arg22[%c0_14, %c0_15] : memref<46x128xf32, #tpu.memory_space<vmem>>, vector<46x128xf32>
    %c0_16 = arith.constant 0 : index
    %c0_17 = arith.constant 0 : index
    %30 = vector.load %arg4[%c0_16, %c0_17] : memref<31x128xf32, #tpu.memory_space<vmem>>, vector<31x128xf32>
    %cst_18 = arith.constant 0.000000e+00 : f32
    %31 = vector.broadcast %cst_18 : f32 to vector<16x128xf32>
    %32 = vector.extract_strided_slice %29 {offsets = [0, 0], sizes = [16, 128], strides = [1, 1]} : vector<46x128xf32> to vector<16x128xf32>
    %33 = vector.extract_strided_slice %30 {offsets = [0, 0], sizes = [1, 128], strides = [1, 1]} : vector<31x128xf32> to vector<1x128xf32>
    %34 = vector.broadcast %33 : vector<1x128xf32> to vector<16x128xf32>
    %35 = arith.mulf %32, %34 : vector<16x128xf32>
    %36 = arith.addf %31, %35 : vector<16x128xf32>
    %37 = vector.extract_strided_slice %29 {offsets = [1, 0], sizes = [16, 128], strides = [1, 1]} : vector<46x128xf32> to vector<16x128xf32>
    %38 = vector.extract_strided_slice %30 {offsets = [1, 0], sizes = [1, 128], strides = [1, 1]} : vector<31x128xf32> to vector<1x128xf32>
    %39 = vector.broadcast %38 : vector<1x128xf32> to vector<16x128xf32>
    %40 = arith.mulf %37, %39 : vector<16x128xf32>
    %41 = arith.addf %36, %40 : vector<16x128xf32>
    %42 = vector.extract_strided_slice %29 {offsets = [2, 0], sizes = [16, 128], strides = [1, 1]} : vector<46x128xf32> to vector<16x128xf32>
    %43 = vector.extract_strided_slice %30 {offsets = [2, 0], sizes = [1, 128], strides = [1, 1]} : vector<31x128xf32> to vector<1x128xf32>
    %44 = vector.broadcast %43 : vector<1x128xf32> to vector<16x128xf32>
    %45 = arith.mulf %42, %44 : vector<16x128xf32>
    %46 = arith.addf %41, %45 : vector<16x128xf32>
    %47 = vector.extract_strided_slice %29 {offsets = [3, 0], sizes = [16, 128], strides = [1, 1]} : vector<46x128xf32> to vector<16x128xf32>
    %48 = vector.extract_strided_slice %30 {offsets = [3, 0], sizes = [1, 128], strides = [1, 1]} : vector<31x128xf32> to vector<1x128xf32>
    %49 = vector.broadcast %48 : vector<1x128xf32> to vector<16x128xf32>
    %50 = arith.mulf %47, %49 : vector<16x128xf32>
    %51 = arith.addf %46, %50 : vector<16x128xf32>
    %52 = vector.extract_strided_slice %29 {offsets = [4, 0], sizes = [16, 128], strides = [1, 1]} : vector<46x128xf32> to vector<16x128xf32>
    %53 = vector.extract_strided_slice %30 {offsets = [4, 0], sizes = [1, 128], strides = [1, 1]} : vector<31x128xf32> to vector<1x128xf32>
    %54 = vector.broadcast %53 : vector<1x128xf32> to vector<16x128xf32>
    %55 = arith.mulf %52, %54 : vector<16x128xf32>
    %56 = arith.addf %51, %55 : vector<16x128xf32>
    %57 = vector.extract_strided_slice %29 {offsets = [5, 0], sizes = [16, 128], strides = [1, 1]} : vector<46x128xf32> to vector<16x128xf32>
    %58 = vector.extract_strided_slice %30 {offsets = [5, 0], sizes = [1, 128], strides = [1, 1]} : vector<31x128xf32> to vector<1x128xf32>
    %59 = vector.broadcast %58 : vector<1x128xf32> to vector<16x128xf32>
    %60 = arith.mulf %57, %59 : vector<16x128xf32>
    %61 = arith.addf %56, %60 : vector<16x128xf32>
    %62 = vector.extract_strided_slice %29 {offsets = [6, 0], sizes = [16, 128], strides = [1, 1]} : vector<46x128xf32> to vector<16x128xf32>
    %63 = vector.extract_strided_slice %30 {offsets = [6, 0], sizes = [1, 128], strides = [1, 1]} : vector<31x128xf32> to vector<1x128xf32>
    %64 = vector.broadcast %63 : vector<1x128xf32> to vector<16x128xf32>
    %65 = arith.mulf %62, %64 : vector<16x128xf32>
    %66 = arith.addf %61, %65 : vector<16x128xf32>
    %67 = vector.extract_strided_slice %29 {offsets = [7, 0], sizes = [16, 128], strides = [1, 1]} : vector<46x128xf32> to vector<16x128xf32>
    %68 = vector.extract_strided_slice %30 {offsets = [7, 0], sizes = [1, 128], strides = [1, 1]} : vector<31x128xf32> to vector<1x128xf32>
    %69 = vector.broadcast %68 : vector<1x128xf32> to vector<16x128xf32>
    %70 = arith.mulf %67, %69 : vector<16x128xf32>
    %71 = arith.addf %66, %70 : vector<16x128xf32>
    %72 = vector.extract_strided_slice %29 {offsets = [8, 0], sizes = [16, 128], strides = [1, 1]} : vector<46x128xf32> to vector<16x128xf32>
    %73 = vector.extract_strided_slice %30 {offsets = [8, 0], sizes = [1, 128], strides = [1, 1]} : vector<31x128xf32> to vector<1x128xf32>
    %74 = vector.broadcast %73 : vector<1x128xf32> to vector<16x128xf32>
    %75 = arith.mulf %72, %74 : vector<16x128xf32>
    %76 = arith.addf %71, %75 : vector<16x128xf32>
    %77 = vector.extract_strided_slice %29 {offsets = [9, 0], sizes = [16, 128], strides = [1, 1]} : vector<46x128xf32> to vector<16x128xf32>
    %78 = vector.extract_strided_slice %30 {offsets = [9, 0], sizes = [1, 128], strides = [1, 1]} : vector<31x128xf32> to vector<1x128xf32>
    %79 = vector.broadcast %78 : vector<1x128xf32> to vector<16x128xf32>
    %80 = arith.mulf %77, %79 : vector<16x128xf32>
    %81 = arith.addf %76, %80 : vector<16x128xf32>
    %82 = vector.extract_strided_slice %29 {offsets = [10, 0], sizes = [16, 128], strides = [1, 1]} : vector<46x128xf32> to vector<16x128xf32>
    %83 = vector.extract_strided_slice %30 {offsets = [10, 0], sizes = [1, 128], strides = [1, 1]} : vector<31x128xf32> to vector<1x128xf32>
    %84 = vector.broadcast %83 : vector<1x128xf32> to vector<16x128xf32>
    %85 = arith.mulf %82, %84 : vector<16x128xf32>
    %86 = arith.addf %81, %85 : vector<16x128xf32>
    %87 = vector.extract_strided_slice %29 {offsets = [11, 0], sizes = [16, 128], strides = [1, 1]} : vector<46x128xf32> to vector<16x128xf32>
    %88 = vector.extract_strided_slice %30 {offsets = [11, 0], sizes = [1, 128], strides = [1, 1]} : vector<31x128xf32> to vector<1x128xf32>
    %89 = vector.broadcast %88 : vector<1x128xf32> to vector<16x128xf32>
    %90 = arith.mulf %87, %89 : vector<16x128xf32>
    %91 = arith.addf %86, %90 : vector<16x128xf32>
    %92 = vector.extract_strided_slice %29 {offsets = [12, 0], sizes = [16, 128], strides = [1, 1]} : vector<46x128xf32> to vector<16x128xf32>
    %93 = vector.extract_strided_slice %30 {offsets = [12, 0], sizes = [1, 128], strides = [1, 1]} : vector<31x128xf32> to vector<1x128xf32>
    %94 = vector.broadcast %93 : vector<1x128xf32> to vector<16x128xf32>
    %95 = arith.mulf %92, %94 : vector<16x128xf32>
    %96 = arith.addf %91, %95 : vector<16x128xf32>
    %97 = vector.extract_strided_slice %29 {offsets = [13, 0], sizes = [16, 128], strides = [1, 1]} : vector<46x128xf32> to vector<16x128xf32>
    %98 = vector.extract_strided_slice %30 {offsets = [13, 0], sizes = [1, 128], strides = [1, 1]} : vector<31x128xf32> to vector<1x128xf32>
    %99 = vector.broadcast %98 : vector<1x128xf32> to vector<16x128xf32>
    %100 = arith.mulf %97, %99 : vector<16x128xf32>
    %101 = arith.addf %96, %100 : vector<16x128xf32>
    %102 = vector.extract_strided_slice %29 {offsets = [14, 0], sizes = [16, 128], strides = [1, 1]} : vector<46x128xf32> to vector<16x128xf32>
    %103 = vector.extract_strided_slice %30 {offsets = [14, 0], sizes = [1, 128], strides = [1, 1]} : vector<31x128xf32> to vector<1x128xf32>
    %104 = vector.broadcast %103 : vector<1x128xf32> to vector<16x128xf32>
    %105 = arith.mulf %102, %104 : vector<16x128xf32>
    %106 = arith.addf %101, %105 : vector<16x128xf32>
    %107 = vector.extract_strided_slice %29 {offsets = [15, 0], sizes = [16, 128], strides = [1, 1]} : vector<46x128xf32> to vector<16x128xf32>
    %108 = vector.extract_strided_slice %30 {offsets = [15, 0], sizes = [1, 128], strides = [1, 1]} : vector<31x128xf32> to vector<1x128xf32>
    %109 = vector.broadcast %108 : vector<1x128xf32> to vector<16x128xf32>
    %110 = arith.mulf %107, %109 : vector<16x128xf32>
    %111 = arith.addf %106, %110 : vector<16x128xf32>
    %112 = vector.extract_strided_slice %29 {offsets = [16, 0], sizes = [16, 128], strides = [1, 1]} : vector<46x128xf32> to vector<16x128xf32>
    %113 = vector.extract_strided_slice %30 {offsets = [16, 0], sizes = [1, 128], strides = [1, 1]} : vector<31x128xf32> to vector<1x128xf32>
    %114 = vector.broadcast %113 : vector<1x128xf32> to vector<16x128xf32>
    %115 = arith.mulf %112, %114 : vector<16x128xf32>
    %116 = arith.addf %111, %115 : vector<16x128xf32>
    %117 = vector.extract_strided_slice %29 {offsets = [17, 0], sizes = [16, 128], strides = [1, 1]} : vector<46x128xf32> to vector<16x128xf32>
    %118 = vector.extract_strided_slice %30 {offsets = [17, 0], sizes = [1, 128], strides = [1, 1]} : vector<31x128xf32> to vector<1x128xf32>
    %119 = vector.broadcast %118 : vector<1x128xf32> to vector<16x128xf32>
    %120 = arith.mulf %117, %119 : vector<16x128xf32>
    %121 = arith.addf %116, %120 : vector<16x128xf32>
    %122 = vector.extract_strided_slice %29 {offsets = [18, 0], sizes = [16, 128], strides = [1, 1]} : vector<46x128xf32> to vector<16x128xf32>
    %123 = vector.extract_strided_slice %30 {offsets = [18, 0], sizes = [1, 128], strides = [1, 1]} : vector<31x128xf32> to vector<1x128xf32>
    %124 = vector.broadcast %123 : vector<1x128xf32> to vector<16x128xf32>
    %125 = arith.mulf %122, %124 : vector<16x128xf32>
    %126 = arith.addf %121, %125 : vector<16x128xf32>
    %127 = vector.extract_strided_slice %29 {offsets = [19, 0], sizes = [16, 128], strides = [1, 1]} : vector<46x128xf32> to vector<16x128xf32>
    %128 = vector.extract_strided_slice %30 {offsets = [19, 0], sizes = [1, 128], strides = [1, 1]} : vector<31x128xf32> to vector<1x128xf32>
    %129 = vector.broadcast %128 : vector<1x128xf32> to vector<16x128xf32>
    %130 = arith.mulf %127, %129 : vector<16x128xf32>
    %131 = arith.addf %126, %130 : vector<16x128xf32>
    %132 = vector.extract_strided_slice %29 {offsets = [20, 0], sizes = [16, 128], strides = [1, 1]} : vector<46x128xf32> to vector<16x128xf32>
    %133 = vector.extract_strided_slice %30 {offsets = [20, 0], sizes = [1, 128], strides = [1, 1]} : vector<31x128xf32> to vector<1x128xf32>
    %134 = vector.broadcast %133 : vector<1x128xf32> to vector<16x128xf32>
    %135 = arith.mulf %132, %134 : vector<16x128xf32>
    %136 = arith.addf %131, %135 : vector<16x128xf32>
    %137 = vector.extract_strided_slice %29 {offsets = [21, 0], sizes = [16, 128], strides = [1, 1]} : vector<46x128xf32> to vector<16x128xf32>
    %138 = vector.extract_strided_slice %30 {offsets = [21, 0], sizes = [1, 128], strides = [1, 1]} : vector<31x128xf32> to vector<1x128xf32>
    %139 = vector.broadcast %138 : vector<1x128xf32> to vector<16x128xf32>
    %140 = arith.mulf %137, %139 : vector<16x128xf32>
    %141 = arith.addf %136, %140 : vector<16x128xf32>
    %142 = vector.extract_strided_slice %29 {offsets = [22, 0], sizes = [16, 128], strides = [1, 1]} : vector<46x128xf32> to vector<16x128xf32>
    %143 = vector.extract_strided_slice %30 {offsets = [22, 0], sizes = [1, 128], strides = [1, 1]} : vector<31x128xf32> to vector<1x128xf32>
    %144 = vector.broadcast %143 : vector<1x128xf32> to vector<16x128xf32>
    %145 = arith.mulf %142, %144 : vector<16x128xf32>
    %146 = arith.addf %141, %145 : vector<16x128xf32>
    %147 = vector.extract_strided_slice %29 {offsets = [23, 0], sizes = [16, 128], strides = [1, 1]} : vector<46x128xf32> to vector<16x128xf32>
    %148 = vector.extract_strided_slice %30 {offsets = [23, 0], sizes = [1, 128], strides = [1, 1]} : vector<31x128xf32> to vector<1x128xf32>
    %149 = vector.broadcast %148 : vector<1x128xf32> to vector<16x128xf32>
    %150 = arith.mulf %147, %149 : vector<16x128xf32>
    %151 = arith.addf %146, %150 : vector<16x128xf32>
    %152 = vector.extract_strided_slice %29 {offsets = [24, 0], sizes = [16, 128], strides = [1, 1]} : vector<46x128xf32> to vector<16x128xf32>
    %153 = vector.extract_strided_slice %30 {offsets = [24, 0], sizes = [1, 128], strides = [1, 1]} : vector<31x128xf32> to vector<1x128xf32>
    %154 = vector.broadcast %153 : vector<1x128xf32> to vector<16x128xf32>
    %155 = arith.mulf %152, %154 : vector<16x128xf32>
    %156 = arith.addf %151, %155 : vector<16x128xf32>
    %157 = vector.extract_strided_slice %29 {offsets = [25, 0], sizes = [16, 128], strides = [1, 1]} : vector<46x128xf32> to vector<16x128xf32>
    %158 = vector.extract_strided_slice %30 {offsets = [25, 0], sizes = [1, 128], strides = [1, 1]} : vector<31x128xf32> to vector<1x128xf32>
    %159 = vector.broadcast %158 : vector<1x128xf32> to vector<16x128xf32>
    %160 = arith.mulf %157, %159 : vector<16x128xf32>
    %161 = arith.addf %156, %160 : vector<16x128xf32>
    %162 = vector.extract_strided_slice %29 {offsets = [26, 0], sizes = [16, 128], strides = [1, 1]} : vector<46x128xf32> to vector<16x128xf32>
    %163 = vector.extract_strided_slice %30 {offsets = [26, 0], sizes = [1, 128], strides = [1, 1]} : vector<31x128xf32> to vector<1x128xf32>
    %164 = vector.broadcast %163 : vector<1x128xf32> to vector<16x128xf32>
    %165 = arith.mulf %162, %164 : vector<16x128xf32>
    %166 = arith.addf %161, %165 : vector<16x128xf32>
    %167 = vector.extract_strided_slice %29 {offsets = [27, 0], sizes = [16, 128], strides = [1, 1]} : vector<46x128xf32> to vector<16x128xf32>
    %168 = vector.extract_strided_slice %30 {offsets = [27, 0], sizes = [1, 128], strides = [1, 1]} : vector<31x128xf32> to vector<1x128xf32>
    %169 = vector.broadcast %168 : vector<1x128xf32> to vector<16x128xf32>
    %170 = arith.mulf %167, %169 : vector<16x128xf32>
    %171 = arith.addf %166, %170 : vector<16x128xf32>
    %172 = vector.extract_strided_slice %29 {offsets = [28, 0], sizes = [16, 128], strides = [1, 1]} : vector<46x128xf32> to vector<16x128xf32>
    %173 = vector.extract_strided_slice %30 {offsets = [28, 0], sizes = [1, 128], strides = [1, 1]} : vector<31x128xf32> to vector<1x128xf32>
    %174 = vector.broadcast %173 : vector<1x128xf32> to vector<16x128xf32>
    %175 = arith.mulf %172, %174 : vector<16x128xf32>
    %176 = arith.addf %171, %175 : vector<16x128xf32>
    %177 = vector.extract_strided_slice %29 {offsets = [29, 0], sizes = [16, 128], strides = [1, 1]} : vector<46x128xf32> to vector<16x128xf32>
    %178 = vector.extract_strided_slice %30 {offsets = [29, 0], sizes = [1, 128], strides = [1, 1]} : vector<31x128xf32> to vector<1x128xf32>
    %179 = vector.broadcast %178 : vector<1x128xf32> to vector<16x128xf32>
    %180 = arith.mulf %177, %179 : vector<16x128xf32>
    %181 = arith.addf %176, %180 : vector<16x128xf32>
    %182 = vector.extract_strided_slice %29 {offsets = [30, 0], sizes = [16, 128], strides = [1, 1]} : vector<46x128xf32> to vector<16x128xf32>
    %183 = vector.extract_strided_slice %30 {offsets = [30, 0], sizes = [1, 128], strides = [1, 1]} : vector<31x128xf32> to vector<1x128xf32>
    %184 = vector.broadcast %183 : vector<1x128xf32> to vector<16x128xf32>
    %185 = arith.mulf %182, %184 : vector<16x128xf32>
    %186 = arith.addf %181, %185 : vector<16x128xf32>
    %c0_19 = arith.constant 0 : index
    %c0_20 = arith.constant 0 : index
    %187 = vector.load %arg5[%c0_19, %c0_20] : memref<1x128xf32, #tpu.memory_space<vmem>>, vector<1x128xf32>
    %188 = vector.broadcast %187 : vector<1x128xf32> to vector<16x128xf32>
    %189 = arith.addf %186, %188 : vector<16x128xf32>
    %c0_21 = arith.constant 0 : index
    %c0_22 = arith.constant 0 : index
    %190 = vector.load %arg6[%c0_21, %c0_22] : memref<128x128xf32, #tpu.memory_space<vmem>>, vector<128x128xf32>
    %cst_23 = arith.constant dense<0.000000e+00> : vector<16x128xf32>
    %191 = tpu.matmul %189, %190, %cst_23 {dimension_numbers = #tpu.dot_dimension_numbers<[1], [0], [0], [1], [0, 0, 1, 1], [], []>} : vector<16x128xf32>, vector<128x128xf32>, vector<16x128xf32> -> vector<16x128xf32>
    %c0_24 = arith.constant 0 : index
    %c0_25 = arith.constant 0 : index
    %192 = vector.load %arg7[%c0_24, %c0_25] : memref<1x128xf32, #tpu.memory_space<vmem>>, vector<1x128xf32>
    %193 = vector.broadcast %192 : vector<1x128xf32> to vector<16x128xf32>
    %194 = arith.addf %191, %193 : vector<16x128xf32>
    %cst_26 = arith.constant 0.000000e+00 : f32
    %195 = vector.broadcast %cst_26 : f32 to vector<16x128xf32>
    %196 = arith.subf %195, %194 : vector<16x128xf32>
    %197 = math.exp %196 : vector<16x128xf32>
    %cst_27 = arith.constant 1.000000e+00 : f32
    %198 = vector.broadcast %cst_27 : f32 to vector<16x128xf32>
    %199 = arith.addf %198, %197 : vector<16x128xf32>
    %cst_28 = arith.constant 1.000000e+00 : f32
    %200 = vector.broadcast %cst_28 : f32 to vector<16x128xf32>
    %201 = arith.divf %200, %199 : vector<16x128xf32>
    %202 = arith.mulf %194, %201 : vector<16x128xf32>
    %c0_29 = arith.constant 0 : index
    %c0_30 = arith.constant 0 : index
    %203 = vector.load %arg8[%c0_29, %c0_30] : memref<128x5xf32, #tpu.memory_space<vmem>>, vector<128x5xf32>
    %cst_31 = arith.constant dense<0.000000e+00> : vector<16x5xf32>
    %204 = tpu.matmul %202, %203, %cst_31 {dimension_numbers = #tpu.dot_dimension_numbers<[1], [0], [0], [1], [0, 0, 1, 1], [], []>} : vector<16x128xf32>, vector<128x5xf32>, vector<16x5xf32> -> vector<16x5xf32>
    %c0_32 = arith.constant 0 : index
    %c0_33 = arith.constant 0 : index
    %205 = vector.load %arg9[%c0_32, %c0_33] : memref<1x5xf32, #tpu.memory_space<vmem>>, vector<1x5xf32>
    %206 = vector.broadcast %205 : vector<1x5xf32> to vector<16x5xf32>
    %207 = arith.addf %204, %206 : vector<16x5xf32>
    %208 = tpu.iota {dimensions = array<i32: 1>} : vector<16x5xi32>
    %209 = arith.sitofp %208 : vector<16x5xi32> to vector<16x5xf32>
    %cst_34 = arith.constant dense<0xFF800000> : vector<16xf32>
    %210 = vector.multi_reduction <maximumf>, %207, %cst_34 [1] : vector<16x5xf32> to vector<16xf32>
    %211 = vector.shape_cast %210 : vector<16xf32> to vector<16x1xf32>
    %212 = vector.broadcast %211 : vector<16x1xf32> to vector<16x5xf32>
    %213 = arith.cmpf oge, %207, %212 : vector<16x5xf32>
    %cst_35 = arith.constant 5.000000e+00 : f32
    %214 = vector.broadcast %cst_35 : f32 to vector<16x5xf32>
    %215 = arith.select %213, %209, %214 : vector<16x5xi1>, vector<16x5xf32>
    %cst_36 = arith.constant dense<0x7F800000> : vector<16xf32>
    %216 = vector.multi_reduction <minimumf>, %215, %cst_36 [1] : vector<16x5xf32> to vector<16xf32>
    %217 = vector.shape_cast %216 : vector<16xf32> to vector<16x1xf32>
    %218 = vector.broadcast %217 : vector<16x1xf32> to vector<16x5xf32>
    %219 = arith.cmpf oeq, %209, %218 : vector<16x5xf32>
    %cst_37 = arith.constant -1.000000e+30 : f32
    %220 = vector.broadcast %cst_37 : f32 to vector<16x5xf32>
    %221 = arith.select %219, %220, %207 : vector<16x5xi1>, vector<16x5xf32>
    %cst_38 = arith.constant dense<0xFF800000> : vector<16xf32>
    %222 = vector.multi_reduction <maximumf>, %221, %cst_38 [1] : vector<16x5xf32> to vector<16xf32>
    %223 = vector.shape_cast %222 : vector<16xf32> to vector<16x1xf32>
    %224 = vector.broadcast %223 : vector<16x1xf32> to vector<16x5xf32>
    %225 = arith.cmpf oge, %221, %224 : vector<16x5xf32>
    %cst_39 = arith.constant 5.000000e+00 : f32
    %226 = vector.broadcast %cst_39 : f32 to vector<16x5xf32>
    %227 = arith.select %225, %209, %226 : vector<16x5xi1>, vector<16x5xf32>
    %cst_40 = arith.constant dense<0x7F800000> : vector<16xf32>
    %228 = vector.multi_reduction <minimumf>, %227, %cst_40 [1] : vector<16x5xf32> to vector<16xf32>
    %229 = vector.shape_cast %228 : vector<16xf32> to vector<16x1xf32>
    %230 = vector.broadcast %229 : vector<16x1xf32> to vector<16x5xf32>
    %231 = arith.cmpf oeq, %209, %230 : vector<16x5xf32>
    %232 = arith.ori %219, %231 : vector<16x5xi1>
    %cst_41 = arith.constant -1.000000e+30 : f32
    %233 = vector.broadcast %cst_41 : f32 to vector<16x5xf32>
    %234 = arith.select %232, %207, %233 : vector<16x5xi1>, vector<16x5xf32>
    %cst_42 = arith.constant dense<0xFF800000> : vector<16xf32>
    %235 = vector.multi_reduction <maximumf>, %234, %cst_42 [1] : vector<16x5xf32> to vector<16xf32>
    %236 = vector.shape_cast %235 : vector<16xf32> to vector<16x1xf32>
    %237 = vector.broadcast %236 : vector<16x1xf32> to vector<16x5xf32>
    %238 = arith.subf %234, %237 : vector<16x5xf32>
    %239 = math.exp %238 : vector<16x5xf32>
    %cst_43 = arith.constant 0.000000e+00 : f32
    %240 = vector.broadcast %cst_43 : f32 to vector<16x5xf32>
    %241 = arith.select %232, %239, %240 : vector<16x5xi1>, vector<16x5xf32>
    %cst_44 = arith.constant dense<0.000000e+00> : vector<16xf32>
    %242 = vector.multi_reduction <add>, %241, %cst_44 [1] : vector<16x5xf32> to vector<16xf32>
    %243 = vector.shape_cast %242 : vector<16xf32> to vector<16x1xf32>
    %244 = tpu.reciprocal %243 {approx = true} : vector<16x1xf32> -> vector<16x1xf32>
    %245 = vector.broadcast %244 : vector<16x1xf32> to vector<16x5xf32>
    %246 = arith.mulf %241, %245 : vector<16x5xf32>
    %c0_45 = arith.constant 0 : index
    %c0_46 = arith.constant 0 : index
    %247 = vector.load %arg10[%c0_45, %c0_46] : memref<128x1280xf32, #tpu.memory_space<vmem>>, vector<128x1280xf32>
    %cst_47 = arith.constant dense<0.000000e+00> : vector<16x1280xf32>
    %248 = tpu.matmul %189, %247, %cst_47 {dimension_numbers = #tpu.dot_dimension_numbers<[1], [0], [0], [1], [0, 0, 1, 1], [], []>} : vector<16x128xf32>, vector<128x1280xf32>, vector<16x1280xf32> -> vector<16x1280xf32>
    %c0_48 = arith.constant 0 : index
    %c0_49 = arith.constant 0 : index
    %249 = vector.load %arg11[%c0_48, %c0_49] : memref<1x1280xf32, #tpu.memory_space<vmem>>, vector<1x1280xf32>
    %250 = vector.broadcast %249 : vector<1x1280xf32> to vector<16x1280xf32>
    %251 = arith.addf %248, %250 : vector<16x1280xf32>
    %252 = vector.extract_strided_slice %251 {offsets = [0, 0], sizes = [16, 256], strides = [1, 1]} : vector<16x1280xf32> to vector<16x256xf32>
    %253 = vector.extract_strided_slice %252 {offsets = [0, 0], sizes = [16, 128], strides = [1, 1]} : vector<16x256xf32> to vector<16x128xf32>
    %254 = vector.extract_strided_slice %252 {offsets = [0, 128], sizes = [16, 128], strides = [1, 1]} : vector<16x256xf32> to vector<16x128xf32>
    %cst_50 = arith.constant 0.000000e+00 : f32
    %255 = vector.broadcast %cst_50 : f32 to vector<16x128xf32>
    %256 = arith.subf %255, %254 : vector<16x128xf32>
    %257 = math.exp %256 : vector<16x128xf32>
    %cst_51 = arith.constant 1.000000e+00 : f32
    %258 = vector.broadcast %cst_51 : f32 to vector<16x128xf32>
    %259 = arith.addf %258, %257 : vector<16x128xf32>
    %cst_52 = arith.constant 1.000000e+00 : f32
    %260 = vector.broadcast %cst_52 : f32 to vector<16x128xf32>
    %261 = arith.divf %260, %259 : vector<16x128xf32>
    %262 = arith.mulf %254, %261 : vector<16x128xf32>
    %263 = arith.mulf %253, %262 : vector<16x128xf32>
    %c0_53 = arith.constant 0 : index
    %c0_54 = arith.constant 0 : index
    %c0_55 = arith.constant 0 : index
    %264 = vector.load %arg12[%c0_53, %c0_54, %c0_55] : memref<5x128x256xf32, #tpu.memory_space<vmem>>, vector<1x128x256xf32>
    %265 = vector.shape_cast %264 : vector<1x128x256xf32> to vector<128x256xf32>
    %cst_56 = arith.constant dense<0.000000e+00> : vector<16x256xf32>
    %266 = tpu.matmul %263, %265, %cst_56 {dimension_numbers = #tpu.dot_dimension_numbers<[1], [0], [0], [1], [0, 0, 1, 1], [], []>} : vector<16x128xf32>, vector<128x256xf32>, vector<16x256xf32> -> vector<16x256xf32>
    %c0_57 = arith.constant 0 : index
    %c0_58 = arith.constant 0 : index
    %c0_59 = arith.constant 0 : index
    %267 = vector.load %arg13[%c0_57, %c0_58, %c0_59] : memref<5x1x256xf32, #tpu.memory_space<vmem>>, vector<1x1x256xf32>
    %268 = vector.shape_cast %267 : vector<1x1x256xf32> to vector<1x256xf32>
    %269 = vector.broadcast %268 : vector<1x256xf32> to vector<16x256xf32>
    %270 = arith.addf %266, %269 : vector<16x256xf32>
    %271 = vector.extract_strided_slice %270 {offsets = [0, 0], sizes = [16, 128], strides = [1, 1]} : vector<16x256xf32> to vector<16x128xf32>
    %272 = vector.extract_strided_slice %270 {offsets = [0, 128], sizes = [16, 128], strides = [1, 1]} : vector<16x256xf32> to vector<16x128xf32>
    %cst_60 = arith.constant 0.000000e+00 : f32
    %273 = vector.broadcast %cst_60 : f32 to vector<16x128xf32>
    %274 = arith.subf %273, %272 : vector<16x128xf32>
    %275 = math.exp %274 : vector<16x128xf32>
    %cst_61 = arith.constant 1.000000e+00 : f32
    %276 = vector.broadcast %cst_61 : f32 to vector<16x128xf32>
    %277 = arith.addf %276, %275 : vector<16x128xf32>
    %cst_62 = arith.constant 1.000000e+00 : f32
    %278 = vector.broadcast %cst_62 : f32 to vector<16x128xf32>
    %279 = arith.divf %278, %277 : vector<16x128xf32>
    %280 = arith.mulf %272, %279 : vector<16x128xf32>
    %281 = arith.mulf %271, %280 : vector<16x128xf32>
    %c0_63 = arith.constant 0 : index
    %c0_64 = arith.constant 0 : index
    %c0_65 = arith.constant 0 : index
    %282 = vector.load %arg14[%c0_63, %c0_64, %c0_65] : memref<5x128x128xf32, #tpu.memory_space<vmem>>, vector<1x128x128xf32>
    %283 = vector.shape_cast %282 : vector<1x128x128xf32> to vector<128x128xf32>
    %cst_66 = arith.constant dense<0.000000e+00> : vector<16x128xf32>
    %284 = tpu.matmul %281, %283, %cst_66 {dimension_numbers = #tpu.dot_dimension_numbers<[1], [0], [0], [1], [0, 0, 1, 1], [], []>} : vector<16x128xf32>, vector<128x128xf32>, vector<16x128xf32> -> vector<16x128xf32>
    %c0_67 = arith.constant 0 : index
    %c0_68 = arith.constant 0 : index
    %c0_69 = arith.constant 0 : index
    %285 = vector.load %arg15[%c0_67, %c0_68, %c0_69] : memref<5x1x128xf32, #tpu.memory_space<vmem>>, vector<1x1x128xf32>
    %286 = vector.shape_cast %285 : vector<1x1x128xf32> to vector<1x128xf32>
    %287 = vector.broadcast %286 : vector<1x128xf32> to vector<16x128xf32>
    %288 = arith.addf %284, %287 : vector<16x128xf32>
    %289 = vector.extract_strided_slice %246 {offsets = [0, 0], sizes = [16, 1], strides = [1, 1]} : vector<16x5xf32> to vector<16x1xf32>
    %290 = vector.broadcast %289 : vector<16x1xf32> to vector<16x128xf32>
    %291 = arith.mulf %290, %288 : vector<16x128xf32>
    %292 = arith.addf %189, %291 : vector<16x128xf32>
    %293 = vector.extract_strided_slice %251 {offsets = [0, 256], sizes = [16, 256], strides = [1, 1]} : vector<16x1280xf32> to vector<16x256xf32>
    %294 = vector.extract_strided_slice %293 {offsets = [0, 0], sizes = [16, 128], strides = [1, 1]} : vector<16x256xf32> to vector<16x128xf32>
    %295 = vector.extract_strided_slice %293 {offsets = [0, 128], sizes = [16, 128], strides = [1, 1]} : vector<16x256xf32> to vector<16x128xf32>
    %cst_70 = arith.constant 0.000000e+00 : f32
    %296 = vector.broadcast %cst_70 : f32 to vector<16x128xf32>
    %297 = arith.subf %296, %295 : vector<16x128xf32>
    %298 = math.exp %297 : vector<16x128xf32>
    %cst_71 = arith.constant 1.000000e+00 : f32
    %299 = vector.broadcast %cst_71 : f32 to vector<16x128xf32>
    %300 = arith.addf %299, %298 : vector<16x128xf32>
    %cst_72 = arith.constant 1.000000e+00 : f32
    %301 = vector.broadcast %cst_72 : f32 to vector<16x128xf32>
    %302 = arith.divf %301, %300 : vector<16x128xf32>
    %303 = arith.mulf %295, %302 : vector<16x128xf32>
    %304 = arith.mulf %294, %303 : vector<16x128xf32>
    %c1 = arith.constant 1 : index
    %c0_73 = arith.constant 0 : index
    %c0_74 = arith.constant 0 : index
    %305 = vector.load %arg12[%c1, %c0_73, %c0_74] : memref<5x128x256xf32, #tpu.memory_space<vmem>>, vector<1x128x256xf32>
    %306 = vector.shape_cast %305 : vector<1x128x256xf32> to vector<128x256xf32>
    %cst_75 = arith.constant dense<0.000000e+00> : vector<16x256xf32>
    %307 = tpu.matmul %304, %306, %cst_75 {dimension_numbers = #tpu.dot_dimension_numbers<[1], [0], [0], [1], [0, 0, 1, 1], [], []>} : vector<16x128xf32>, vector<128x256xf32>, vector<16x256xf32> -> vector<16x256xf32>
    %c1_76 = arith.constant 1 : index
    %c0_77 = arith.constant 0 : index
    %c0_78 = arith.constant 0 : index
    %308 = vector.load %arg13[%c1_76, %c0_77, %c0_78] : memref<5x1x256xf32, #tpu.memory_space<vmem>>, vector<1x1x256xf32>
    %309 = vector.shape_cast %308 : vector<1x1x256xf32> to vector<1x256xf32>
    %310 = vector.broadcast %309 : vector<1x256xf32> to vector<16x256xf32>
    %311 = arith.addf %307, %310 : vector<16x256xf32>
    %312 = vector.extract_strided_slice %311 {offsets = [0, 0], sizes = [16, 128], strides = [1, 1]} : vector<16x256xf32> to vector<16x128xf32>
    %313 = vector.extract_strided_slice %311 {offsets = [0, 128], sizes = [16, 128], strides = [1, 1]} : vector<16x256xf32> to vector<16x128xf32>
    %cst_79 = arith.constant 0.000000e+00 : f32
    %314 = vector.broadcast %cst_79 : f32 to vector<16x128xf32>
    %315 = arith.subf %314, %313 : vector<16x128xf32>
    %316 = math.exp %315 : vector<16x128xf32>
    %cst_80 = arith.constant 1.000000e+00 : f32
    %317 = vector.broadcast %cst_80 : f32 to vector<16x128xf32>
    %318 = arith.addf %317, %316 : vector<16x128xf32>
    %cst_81 = arith.constant 1.000000e+00 : f32
    %319 = vector.broadcast %cst_81 : f32 to vector<16x128xf32>
    %320 = arith.divf %319, %318 : vector<16x128xf32>
    %321 = arith.mulf %313, %320 : vector<16x128xf32>
    %322 = arith.mulf %312, %321 : vector<16x128xf32>
    %c1_82 = arith.constant 1 : index
    %c0_83 = arith.constant 0 : index
    %c0_84 = arith.constant 0 : index
    %323 = vector.load %arg14[%c1_82, %c0_83, %c0_84] : memref<5x128x128xf32, #tpu.memory_space<vmem>>, vector<1x128x128xf32>
    %324 = vector.shape_cast %323 : vector<1x128x128xf32> to vector<128x128xf32>
    %cst_85 = arith.constant dense<0.000000e+00> : vector<16x128xf32>
    %325 = tpu.matmul %322, %324, %cst_85 {dimension_numbers = #tpu.dot_dimension_numbers<[1], [0], [0], [1], [0, 0, 1, 1], [], []>} : vector<16x128xf32>, vector<128x128xf32>, vector<16x128xf32> -> vector<16x128xf32>
    %c1_86 = arith.constant 1 : index
    %c0_87 = arith.constant 0 : index
    %c0_88 = arith.constant 0 : index
    %326 = vector.load %arg15[%c1_86, %c0_87, %c0_88] : memref<5x1x128xf32, #tpu.memory_space<vmem>>, vector<1x1x128xf32>
    %327 = vector.shape_cast %326 : vector<1x1x128xf32> to vector<1x128xf32>
    %328 = vector.broadcast %327 : vector<1x128xf32> to vector<16x128xf32>
    %329 = arith.addf %325, %328 : vector<16x128xf32>
    %330 = vector.extract_strided_slice %246 {offsets = [0, 1], sizes = [16, 1], strides = [1, 1]} : vector<16x5xf32> to vector<16x1xf32>
    %331 = vector.broadcast %330 : vector<16x1xf32> to vector<16x128xf32>
    %332 = arith.mulf %331, %329 : vector<16x128xf32>
    %333 = arith.addf %292, %332 : vector<16x128xf32>
    %334 = vector.extract_strided_slice %251 {offsets = [0, 512], sizes = [16, 256], strides = [1, 1]} : vector<16x1280xf32> to vector<16x256xf32>
    %335 = vector.extract_strided_slice %334 {offsets = [0, 0], sizes = [16, 128], strides = [1, 1]} : vector<16x256xf32> to vector<16x128xf32>
    %336 = vector.extract_strided_slice %334 {offsets = [0, 128], sizes = [16, 128], strides = [1, 1]} : vector<16x256xf32> to vector<16x128xf32>
    %cst_89 = arith.constant 0.000000e+00 : f32
    %337 = vector.broadcast %cst_89 : f32 to vector<16x128xf32>
    %338 = arith.subf %337, %336 : vector<16x128xf32>
    %339 = math.exp %338 : vector<16x128xf32>
    %cst_90 = arith.constant 1.000000e+00 : f32
    %340 = vector.broadcast %cst_90 : f32 to vector<16x128xf32>
    %341 = arith.addf %340, %339 : vector<16x128xf32>
    %cst_91 = arith.constant 1.000000e+00 : f32
    %342 = vector.broadcast %cst_91 : f32 to vector<16x128xf32>
    %343 = arith.divf %342, %341 : vector<16x128xf32>
    %344 = arith.mulf %336, %343 : vector<16x128xf32>
    %345 = arith.mulf %335, %344 : vector<16x128xf32>
    %c2 = arith.constant 2 : index
    %c0_92 = arith.constant 0 : index
    %c0_93 = arith.constant 0 : index
    %346 = vector.load %arg12[%c2, %c0_92, %c0_93] : memref<5x128x256xf32, #tpu.memory_space<vmem>>, vector<1x128x256xf32>
    %347 = vector.shape_cast %346 : vector<1x128x256xf32> to vector<128x256xf32>
    %cst_94 = arith.constant dense<0.000000e+00> : vector<16x256xf32>
    %348 = tpu.matmul %345, %347, %cst_94 {dimension_numbers = #tpu.dot_dimension_numbers<[1], [0], [0], [1], [0, 0, 1, 1], [], []>} : vector<16x128xf32>, vector<128x256xf32>, vector<16x256xf32> -> vector<16x256xf32>
    %c2_95 = arith.constant 2 : index
    %c0_96 = arith.constant 0 : index
    %c0_97 = arith.constant 0 : index
    %349 = vector.load %arg13[%c2_95, %c0_96, %c0_97] : memref<5x1x256xf32, #tpu.memory_space<vmem>>, vector<1x1x256xf32>
    %350 = vector.shape_cast %349 : vector<1x1x256xf32> to vector<1x256xf32>
    %351 = vector.broadcast %350 : vector<1x256xf32> to vector<16x256xf32>
    %352 = arith.addf %348, %351 : vector<16x256xf32>
    %353 = vector.extract_strided_slice %352 {offsets = [0, 0], sizes = [16, 128], strides = [1, 1]} : vector<16x256xf32> to vector<16x128xf32>
    %354 = vector.extract_strided_slice %352 {offsets = [0, 128], sizes = [16, 128], strides = [1, 1]} : vector<16x256xf32> to vector<16x128xf32>
    %cst_98 = arith.constant 0.000000e+00 : f32
    %355 = vector.broadcast %cst_98 : f32 to vector<16x128xf32>
    %356 = arith.subf %355, %354 : vector<16x128xf32>
    %357 = math.exp %356 : vector<16x128xf32>
    %cst_99 = arith.constant 1.000000e+00 : f32
    %358 = vector.broadcast %cst_99 : f32 to vector<16x128xf32>
    %359 = arith.addf %358, %357 : vector<16x128xf32>
    %cst_100 = arith.constant 1.000000e+00 : f32
    %360 = vector.broadcast %cst_100 : f32 to vector<16x128xf32>
    %361 = arith.divf %360, %359 : vector<16x128xf32>
    %362 = arith.mulf %354, %361 : vector<16x128xf32>
    %363 = arith.mulf %353, %362 : vector<16x128xf32>
    %c2_101 = arith.constant 2 : index
    %c0_102 = arith.constant 0 : index
    %c0_103 = arith.constant 0 : index
    %364 = vector.load %arg14[%c2_101, %c0_102, %c0_103] : memref<5x128x128xf32, #tpu.memory_space<vmem>>, vector<1x128x128xf32>
    %365 = vector.shape_cast %364 : vector<1x128x128xf32> to vector<128x128xf32>
    %cst_104 = arith.constant dense<0.000000e+00> : vector<16x128xf32>
    %366 = tpu.matmul %363, %365, %cst_104 {dimension_numbers = #tpu.dot_dimension_numbers<[1], [0], [0], [1], [0, 0, 1, 1], [], []>} : vector<16x128xf32>, vector<128x128xf32>, vector<16x128xf32> -> vector<16x128xf32>
    %c2_105 = arith.constant 2 : index
    %c0_106 = arith.constant 0 : index
    %c0_107 = arith.constant 0 : index
    %367 = vector.load %arg15[%c2_105, %c0_106, %c0_107] : memref<5x1x128xf32, #tpu.memory_space<vmem>>, vector<1x1x128xf32>
    %368 = vector.shape_cast %367 : vector<1x1x128xf32> to vector<1x128xf32>
    %369 = vector.broadcast %368 : vector<1x128xf32> to vector<16x128xf32>
    %370 = arith.addf %366, %369 : vector<16x128xf32>
    %371 = vector.extract_strided_slice %246 {offsets = [0, 2], sizes = [16, 1], strides = [1, 1]} : vector<16x5xf32> to vector<16x1xf32>
    %372 = vector.broadcast %371 : vector<16x1xf32> to vector<16x128xf32>
    %373 = arith.mulf %372, %370 : vector<16x128xf32>
    %374 = arith.addf %333, %373 : vector<16x128xf32>
    %375 = vector.extract_strided_slice %251 {offsets = [0, 768], sizes = [16, 256], strides = [1, 1]} : vector<16x1280xf32> to vector<16x256xf32>
    %376 = vector.extract_strided_slice %375 {offsets = [0, 0], sizes = [16, 128], strides = [1, 1]} : vector<16x256xf32> to vector<16x128xf32>
    %377 = vector.extract_strided_slice %375 {offsets = [0, 128], sizes = [16, 128], strides = [1, 1]} : vector<16x256xf32> to vector<16x128xf32>
    %cst_108 = arith.constant 0.000000e+00 : f32
    %378 = vector.broadcast %cst_108 : f32 to vector<16x128xf32>
    %379 = arith.subf %378, %377 : vector<16x128xf32>
    %380 = math.exp %379 : vector<16x128xf32>
    %cst_109 = arith.constant 1.000000e+00 : f32
    %381 = vector.broadcast %cst_109 : f32 to vector<16x128xf32>
    %382 = arith.addf %381, %380 : vector<16x128xf32>
    %cst_110 = arith.constant 1.000000e+00 : f32
    %383 = vector.broadcast %cst_110 : f32 to vector<16x128xf32>
    %384 = arith.divf %383, %382 : vector<16x128xf32>
    %385 = arith.mulf %377, %384 : vector<16x128xf32>
    %386 = arith.mulf %376, %385 : vector<16x128xf32>
    %c3 = arith.constant 3 : index
    %c0_111 = arith.constant 0 : index
    %c0_112 = arith.constant 0 : index
    %387 = vector.load %arg12[%c3, %c0_111, %c0_112] : memref<5x128x256xf32, #tpu.memory_space<vmem>>, vector<1x128x256xf32>
    %388 = vector.shape_cast %387 : vector<1x128x256xf32> to vector<128x256xf32>
    %cst_113 = arith.constant dense<0.000000e+00> : vector<16x256xf32>
    %389 = tpu.matmul %386, %388, %cst_113 {dimension_numbers = #tpu.dot_dimension_numbers<[1], [0], [0], [1], [0, 0, 1, 1], [], []>} : vector<16x128xf32>, vector<128x256xf32>, vector<16x256xf32> -> vector<16x256xf32>
    %c3_114 = arith.constant 3 : index
    %c0_115 = arith.constant 0 : index
    %c0_116 = arith.constant 0 : index
    %390 = vector.load %arg13[%c3_114, %c0_115, %c0_116] : memref<5x1x256xf32, #tpu.memory_space<vmem>>, vector<1x1x256xf32>
    %391 = vector.shape_cast %390 : vector<1x1x256xf32> to vector<1x256xf32>
    %392 = vector.broadcast %391 : vector<1x256xf32> to vector<16x256xf32>
    %393 = arith.addf %389, %392 : vector<16x256xf32>
    %394 = vector.extract_strided_slice %393 {offsets = [0, 0], sizes = [16, 128], strides = [1, 1]} : vector<16x256xf32> to vector<16x128xf32>
    %395 = vector.extract_strided_slice %393 {offsets = [0, 128], sizes = [16, 128], strides = [1, 1]} : vector<16x256xf32> to vector<16x128xf32>
    %cst_117 = arith.constant 0.000000e+00 : f32
    %396 = vector.broadcast %cst_117 : f32 to vector<16x128xf32>
    %397 = arith.subf %396, %395 : vector<16x128xf32>
    %398 = math.exp %397 : vector<16x128xf32>
    %cst_118 = arith.constant 1.000000e+00 : f32
    %399 = vector.broadcast %cst_118 : f32 to vector<16x128xf32>
    %400 = arith.addf %399, %398 : vector<16x128xf32>
    %cst_119 = arith.constant 1.000000e+00 : f32
    %401 = vector.broadcast %cst_119 : f32 to vector<16x128xf32>
    %402 = arith.divf %401, %400 : vector<16x128xf32>
    %403 = arith.mulf %395, %402 : vector<16x128xf32>
    %404 = arith.mulf %394, %403 : vector<16x128xf32>
    %c3_120 = arith.constant 3 : index
    %c0_121 = arith.constant 0 : index
    %c0_122 = arith.constant 0 : index
    %405 = vector.load %arg14[%c3_120, %c0_121, %c0_122] : memref<5x128x128xf32, #tpu.memory_space<vmem>>, vector<1x128x128xf32>
    %406 = vector.shape_cast %405 : vector<1x128x128xf32> to vector<128x128xf32>
    %cst_123 = arith.constant dense<0.000000e+00> : vector<16x128xf32>
    %407 = tpu.matmul %404, %406, %cst_123 {dimension_numbers = #tpu.dot_dimension_numbers<[1], [0], [0], [1], [0, 0, 1, 1], [], []>} : vector<16x128xf32>, vector<128x128xf32>, vector<16x128xf32> -> vector<16x128xf32>
    %c3_124 = arith.constant 3 : index
    %c0_125 = arith.constant 0 : index
    %c0_126 = arith.constant 0 : index
    %408 = vector.load %arg15[%c3_124, %c0_125, %c0_126] : memref<5x1x128xf32, #tpu.memory_space<vmem>>, vector<1x1x128xf32>
    %409 = vector.shape_cast %408 : vector<1x1x128xf32> to vector<1x128xf32>
    %410 = vector.broadcast %409 : vector<1x128xf32> to vector<16x128xf32>
    %411 = arith.addf %407, %410 : vector<16x128xf32>
    %412 = vector.extract_strided_slice %246 {offsets = [0, 3], sizes = [16, 1], strides = [1, 1]} : vector<16x5xf32> to vector<16x1xf32>
    %413 = vector.broadcast %412 : vector<16x1xf32> to vector<16x128xf32>
    %414 = arith.mulf %413, %411 : vector<16x128xf32>
    %415 = arith.addf %374, %414 : vector<16x128xf32>
    %416 = vector.extract_strided_slice %251 {offsets = [0, 1024], sizes = [16, 256], strides = [1, 1]} : vector<16x1280xf32> to vector<16x256xf32>
    %417 = vector.extract_strided_slice %416 {offsets = [0, 0], sizes = [16, 128], strides = [1, 1]} : vector<16x256xf32> to vector<16x128xf32>
    %418 = vector.extract_strided_slice %416 {offsets = [0, 128], sizes = [16, 128], strides = [1, 1]} : vector<16x256xf32> to vector<16x128xf32>
    %cst_127 = arith.constant 0.000000e+00 : f32
    %419 = vector.broadcast %cst_127 : f32 to vector<16x128xf32>
    %420 = arith.subf %419, %418 : vector<16x128xf32>
    %421 = math.exp %420 : vector<16x128xf32>
    %cst_128 = arith.constant 1.000000e+00 : f32
    %422 = vector.broadcast %cst_128 : f32 to vector<16x128xf32>
    %423 = arith.addf %422, %421 : vector<16x128xf32>
    %cst_129 = arith.constant 1.000000e+00 : f32
    %424 = vector.broadcast %cst_129 : f32 to vector<16x128xf32>
    %425 = arith.divf %424, %423 : vector<16x128xf32>
    %426 = arith.mulf %418, %425 : vector<16x128xf32>
    %427 = arith.mulf %417, %426 : vector<16x128xf32>
    %c4 = arith.constant 4 : index
    %c0_130 = arith.constant 0 : index
    %c0_131 = arith.constant 0 : index
    %428 = vector.load %arg12[%c4, %c0_130, %c0_131] : memref<5x128x256xf32, #tpu.memory_space<vmem>>, vector<1x128x256xf32>
    %429 = vector.shape_cast %428 : vector<1x128x256xf32> to vector<128x256xf32>
    %cst_132 = arith.constant dense<0.000000e+00> : vector<16x256xf32>
    %430 = tpu.matmul %427, %429, %cst_132 {dimension_numbers = #tpu.dot_dimension_numbers<[1], [0], [0], [1], [0, 0, 1, 1], [], []>} : vector<16x128xf32>, vector<128x256xf32>, vector<16x256xf32> -> vector<16x256xf32>
    %c4_133 = arith.constant 4 : index
    %c0_134 = arith.constant 0 : index
    %c0_135 = arith.constant 0 : index
    %431 = vector.load %arg13[%c4_133, %c0_134, %c0_135] : memref<5x1x256xf32, #tpu.memory_space<vmem>>, vector<1x1x256xf32>
    %432 = vector.shape_cast %431 : vector<1x1x256xf32> to vector<1x256xf32>
    %433 = vector.broadcast %432 : vector<1x256xf32> to vector<16x256xf32>
    %434 = arith.addf %430, %433 : vector<16x256xf32>
    %435 = vector.extract_strided_slice %434 {offsets = [0, 0], sizes = [16, 128], strides = [1, 1]} : vector<16x256xf32> to vector<16x128xf32>
    %436 = vector.extract_strided_slice %434 {offsets = [0, 128], sizes = [16, 128], strides = [1, 1]} : vector<16x256xf32> to vector<16x128xf32>
    %cst_136 = arith.constant 0.000000e+00 : f32
    %437 = vector.broadcast %cst_136 : f32 to vector<16x128xf32>
    %438 = arith.subf %437, %436 : vector<16x128xf32>
    %439 = math.exp %438 : vector<16x128xf32>
    %cst_137 = arith.constant 1.000000e+00 : f32
    %440 = vector.broadcast %cst_137 : f32 to vector<16x128xf32>
    %441 = arith.addf %440, %439 : vector<16x128xf32>
    %cst_138 = arith.constant 1.000000e+00 : f32
    %442 = vector.broadcast %cst_138 : f32 to vector<16x128xf32>
    %443 = arith.divf %442, %441 : vector<16x128xf32>
    %444 = arith.mulf %436, %443 : vector<16x128xf32>
    %445 = arith.mulf %435, %444 : vector<16x128xf32>
    %c4_139 = arith.constant 4 : index
    %c0_140 = arith.constant 0 : index
    %c0_141 = arith.constant 0 : index
    %446 = vector.load %arg14[%c4_139, %c0_140, %c0_141] : memref<5x128x128xf32, #tpu.memory_space<vmem>>, vector<1x128x128xf32>
    %447 = vector.shape_cast %446 : vector<1x128x128xf32> to vector<128x128xf32>
    %cst_142 = arith.constant dense<0.000000e+00> : vector<16x128xf32>
    %448 = tpu.matmul %445, %447, %cst_142 {dimension_numbers = #tpu.dot_dimension_numbers<[1], [0], [0], [1], [0, 0, 1, 1], [], []>} : vector<16x128xf32>, vector<128x128xf32>, vector<16x128xf32> -> vector<16x128xf32>
    %c4_143 = arith.constant 4 : index
    %c0_144 = arith.constant 0 : index
    %c0_145 = arith.constant 0 : index
    %449 = vector.load %arg15[%c4_143, %c0_144, %c0_145] : memref<5x1x128xf32, #tpu.memory_space<vmem>>, vector<1x1x128xf32>
    %450 = vector.shape_cast %449 : vector<1x1x128xf32> to vector<1x128xf32>
    %451 = vector.broadcast %450 : vector<1x128xf32> to vector<16x128xf32>
    %452 = arith.addf %448, %451 : vector<16x128xf32>
    %453 = vector.extract_strided_slice %246 {offsets = [0, 4], sizes = [16, 1], strides = [1, 1]} : vector<16x5xf32> to vector<16x1xf32>
    %454 = vector.broadcast %453 : vector<16x1xf32> to vector<16x128xf32>
    %455 = arith.mulf %454, %452 : vector<16x128xf32>
    %456 = arith.addf %415, %455 : vector<16x128xf32>
    %c0_146 = arith.constant 0 : index
    %c0_147 = arith.constant 0 : index
    %457 = vector.load %arg20[%c0_146, %c0_147] : memref<1x128xf32, #tpu.memory_space<vmem>>, vector<1x128xf32>
    %458 = vector.broadcast %457 : vector<1x128xf32> to vector<16x128xf32>
    %459 = arith.mulf %25, %458 : vector<16x128xf32>
    %460 = arith.addf %459, %456 : vector<16x128xf32>
    %cst_148 = arith.constant dense<0.000000e+00> : vector<128xf32>
    %461 = vector.multi_reduction <add>, %460, %cst_148 [0] : vector<16x128xf32> to vector<128xf32>
    %462 = vector.shape_cast %461 : vector<128xf32> to vector<1x128xf32>
    %cst_149 = arith.constant 1.600000e+01 : f32
    %463 = vector.broadcast %cst_149 : f32 to vector<1x128xf32>
    %464 = arith.divf %462, %463 : vector<1x128xf32>
    %c0_150 = arith.constant 0 : index
    %c0_151 = arith.constant 0 : index
    %465 = vector.load %arg16[%c0_150, %c0_151] : memref<128x16xf32, #tpu.memory_space<vmem>>, vector<128x16xf32>
    %cst_152 = arith.constant dense<0.000000e+00> : vector<1x16xf32>
    %466 = tpu.matmul %464, %465, %cst_152 {dimension_numbers = #tpu.dot_dimension_numbers<[1], [0], [0], [1], [0, 0, 1, 1], [], []>} : vector<1x128xf32>, vector<128x16xf32>, vector<1x16xf32> -> vector<1x16xf32>
    %c0_153 = arith.constant 0 : index
    %c0_154 = arith.constant 0 : index
    %467 = vector.load %arg17[%c0_153, %c0_154] : memref<1x16xf32, #tpu.memory_space<vmem>>, vector<1x16xf32>
    %468 = arith.addf %466, %467 : vector<1x16xf32>
    %cst_155 = arith.constant 0.000000e+00 : f32
    %469 = vector.broadcast %cst_155 : f32 to vector<1x16xf32>
    %470 = arith.subf %469, %468 : vector<1x16xf32>
    %471 = math.exp %470 : vector<1x16xf32>
    %cst_156 = arith.constant 1.000000e+00 : f32
    %472 = vector.broadcast %cst_156 : f32 to vector<1x16xf32>
    %473 = arith.addf %472, %471 : vector<1x16xf32>
    %cst_157 = arith.constant 1.000000e+00 : f32
    %474 = vector.broadcast %cst_157 : f32 to vector<1x16xf32>
    %475 = arith.divf %474, %473 : vector<1x16xf32>
    %476 = arith.mulf %468, %475 : vector<1x16xf32>
    %c0_158 = arith.constant 0 : index
    %c0_159 = arith.constant 0 : index
    %477 = vector.load %arg18[%c0_158, %c0_159] : memref<16x128xf32, #tpu.memory_space<vmem>>, vector<16x128xf32>
    %cst_160 = arith.constant dense<0.000000e+00> : vector<1x128xf32>
    %478 = tpu.matmul %476, %477, %cst_160 {dimension_numbers = #tpu.dot_dimension_numbers<[1], [0], [0], [1], [0, 0, 1, 1], [], []>} : vector<1x16xf32>, vector<16x128xf32>, vector<1x128xf32> -> vector<1x128xf32>
    %c0_161 = arith.constant 0 : index
    %c0_162 = arith.constant 0 : index
    %479 = vector.load %arg19[%c0_161, %c0_162] : memref<1x128xf32, #tpu.memory_space<vmem>>, vector<1x128xf32>
    %480 = arith.addf %478, %479 : vector<1x128xf32>
    %cst_163 = arith.constant 0.000000e+00 : f32
    %481 = vector.broadcast %cst_163 : f32 to vector<1x128xf32>
    %482 = arith.subf %481, %480 : vector<1x128xf32>
    %483 = math.exp %482 : vector<1x128xf32>
    %cst_164 = arith.constant 1.000000e+00 : f32
    %484 = vector.broadcast %cst_164 : f32 to vector<1x128xf32>
    %485 = arith.addf %484, %483 : vector<1x128xf32>
    %cst_165 = arith.constant 1.000000e+00 : f32
    %486 = vector.broadcast %cst_165 : f32 to vector<1x128xf32>
    %487 = arith.divf %486, %485 : vector<1x128xf32>
    %488 = vector.broadcast %487 : vector<1x128xf32> to vector<16x128xf32>
    %489 = arith.mulf %456, %488 : vector<16x128xf32>
    %490 = arith.addf %1, %489 : vector<16x128xf32>
    %c0_166 = arith.constant 0 : index
    %c0_167 = arith.constant 0 : index
    %c0_168 = arith.constant 0 : index
    %491 = vector.load %arg21[%c0_166, %c0_167, %c0_168] : memref<1x16x128xf32, #tpu.memory_space<vmem>>, vector<1x16x128xf32>
    %492 = vector.shape_cast %491 : vector<1x16x128xf32> to vector<16x128xf32>
    %493 = vector.shape_cast %490 : vector<16x128xf32> to vector<1x16x128xf32>
    tpu.vector_store %arg21[%c0_166, %c0_167, %c0_168], %493 {strides = array<i32>} : memref<1x16x128xf32, #tpu.memory_space<vmem>>, vector<1x16x128xf32>,
    return
  }
  func.func @transform_0(%arg0: i32) -> (i32, i32, i32) {
    %c0_i32 = arith.constant 0 : i32
    %c0_i32_0 = arith.constant 0 : i32
    %c0_i32_1 = arith.constant 0 : i32
    return %arg0, %c0_i32, %c0_i32_0 : i32, i32, i32
  }
  func.func @transform_1(%arg0: i32) -> (i32, i32) {
    %c0_i32 = arith.constant 0 : i32
    %c0_i32_0 = arith.constant 0 : i32
    %c0_i32_1 = arith.constant 0 : i32
    return %c0_i32, %c0_i32_0 : i32, i32
  }
  func.func @transform_2(%arg0: i32) -> (i32, i32) {
    %c0_i32 = arith.constant 0 : i32
    %c0_i32_0 = arith.constant 0 : i32
    %c0_i32_1 = arith.constant 0 : i32
    return %c0_i32, %c0_i32_0 : i32, i32
  }
  func.func @transform_3(%arg0: i32) -> (i32, i32) {
    %c0_i32 = arith.constant 0 : i32
    %c0_i32_0 = arith.constant 0 : i32
    %c0_i32_1 = arith.constant 0 : i32
    return %c0_i32, %c0_i32_0 : i32, i32
  }
  func.func @transform_4(%arg0: i32) -> (i32, i32) {
    %c0_i32 = arith.constant 0 : i32
    %c0_i32_0 = arith.constant 0 : i32
    %c0_i32_1 = arith.constant 0 : i32
    return %c0_i32, %c0_i32_0 : i32, i32
  }
  func.func @transform_5(%arg0: i32) -> (i32, i32) {
    %c0_i32 = arith.constant 0 : i32
    %c0_i32_0 = arith.constant 0 : i32
    %c0_i32_1 = arith.constant 0 : i32
    return %c0_i32, %c0_i32_0 : i32, i32
  }
  func.func @transform_6(%arg0: i32) -> (i32, i32) {
    %c0_i32 = arith.constant 0 : i32
    %c0_i32_0 = arith.constant 0 : i32
    %c0_i32_1 = arith.constant 0 : i32
    return %c0_i32, %c0_i32_0 : i32, i32
  }
  func.func @transform_7(%arg0: i32) -> (i32, i32) {
    %c0_i32 = arith.constant 0 : i32
    %c0_i32_0 = arith.constant 0 : i32
    %c0_i32_1 = arith.constant 0 : i32
    return %c0_i32, %c0_i32_0 : i32, i32
  }
  func.func @transform_8(%arg0: i32) -> (i32, i32) {
    %c0_i32 = arith.constant 0 : i32
    %c0_i32_0 = arith.constant 0 : i32
    %c0_i32_1 = arith.constant 0 : i32
    return %c0_i32, %c0_i32_0 : i32, i32
  }
  func.func @transform_9(%arg0: i32) -> (i32, i32) {
    %c0_i32 = arith.constant 0 : i32
    %c0_i32_0 = arith.constant 0 : i32
    %c0_i32_1 = arith.constant 0 : i32
    return %c0_i32, %c0_i32_0 : i32, i32
  }
  func.func @transform_10(%arg0: i32) -> (i32, i32) {
    %c0_i32 = arith.constant 0 : i32
    %c0_i32_0 = arith.constant 0 : i32
    %c0_i32_1 = arith.constant 0 : i32
    return %c0_i32, %c0_i32_0 : i32, i32
  }
  func.func @transform_11(%arg0: i32) -> (i32, i32, i32) {
    %c0_i32 = arith.constant 0 : i32
    %c0_i32_0 = arith.constant 0 : i32
    %c0_i32_1 = arith.constant 0 : i32
    %c0_i32_2 = arith.constant 0 : i32
    return %c0_i32, %c0_i32_0, %c0_i32_1 : i32, i32, i32
  }
  func.func @transform_12(%arg0: i32) -> (i32, i32, i32) {
    %c0_i32 = arith.constant 0 : i32
    %c0_i32_0 = arith.constant 0 : i32
    %c0_i32_1 = arith.constant 0 : i32
    %c0_i32_2 = arith.constant 0 : i32
    return %c0_i32, %c0_i32_0, %c0_i32_1 : i32, i32, i32
  }
  func.func @transform_13(%arg0: i32) -> (i32, i32, i32) {
    %c0_i32 = arith.constant 0 : i32
    %c0_i32_0 = arith.constant 0 : i32
    %c0_i32_1 = arith.constant 0 : i32
    %c0_i32_2 = arith.constant 0 : i32
    return %c0_i32, %c0_i32_0, %c0_i32_1 : i32, i32, i32
  }
  func.func @transform_14(%arg0: i32) -> (i32, i32, i32) {
    %c0_i32 = arith.constant 0 : i32
    %c0_i32_0 = arith.constant 0 : i32
    %c0_i32_1 = arith.constant 0 : i32
    %c0_i32_2 = arith.constant 0 : i32
    return %c0_i32, %c0_i32_0, %c0_i32_1 : i32, i32, i32
  }
  func.func @transform_15(%arg0: i32) -> (i32, i32) {
    %c0_i32 = arith.constant 0 : i32
    %c0_i32_0 = arith.constant 0 : i32
    %c0_i32_1 = arith.constant 0 : i32
    return %c0_i32, %c0_i32_0 : i32, i32
  }
  func.func @transform_16(%arg0: i32) -> (i32, i32) {
    %c0_i32 = arith.constant 0 : i32
    %c0_i32_0 = arith.constant 0 : i32
    %c0_i32_1 = arith.constant 0 : i32
    return %c0_i32, %c0_i32_0 : i32, i32
  }
  func.func @transform_17(%arg0: i32) -> (i32, i32) {
    %c0_i32 = arith.constant 0 : i32
    %c0_i32_0 = arith.constant 0 : i32
    %c0_i32_1 = arith.constant 0 : i32
    return %c0_i32, %c0_i32_0 : i32, i32
  }
  func.func @transform_18(%arg0: i32) -> (i32, i32) {
    %c0_i32 = arith.constant 0 : i32
    %c0_i32_0 = arith.constant 0 : i32
    %c0_i32_1 = arith.constant 0 : i32
    return %c0_i32, %c0_i32_0 : i32, i32
  }
  func.func @transform_19(%arg0: i32) -> (i32, i32) {
    %c0_i32 = arith.constant 0 : i32
    %c0_i32_0 = arith.constant 0 : i32
    %c0_i32_1 = arith.constant 0 : i32
    return %c0_i32, %c0_i32_0 : i32, i32
  }
  func.func @transform_20(%arg0: i32) -> (i32, i32, i32) {
    %c0_i32 = arith.constant 0 : i32
    %c0_i32_0 = arith.constant 0 : i32
    %c0_i32_1 = arith.constant 0 : i32
    return %arg0, %c0_i32, %c0_i32_0 : i32, i32, i32
  }
}

</mosaic_0001>

<bundles_post_ra>
// kernel: tpu_custom_call.1
= control target key start
LH: loop header
LB: loop body
LE: loop exit
PB: predicated region body
PF: predicated region fallthrough
CT: control target
= control target key end

     0   :  { %s6614_s0 = inlined_call_operand.vmem [shape: f32[2,16,128], index: 0, kind: input, shape index: {}]   ;;  %s6615_s1 = inlined_call_operand.vmem [shape: f32[1,128], index: 1, kind: input, shape index: {}]   ;;  %s6616_s2 = inlined_call_operand.vmem [shape: f32[1,128], index: 2, kind: input, shape index: {}]   ;;  %s6617_s3 = inlined_call_operand.vmem [shape: f32[31,128], index: 3, kind: input, shape index: {}]   ;;  %s6618_s4 = inlined_call_operand.vmem [shape: f32[1,128], index: 4, kind: input, shape index: {}]   ;;  %s6619_s5 = inlined_call_operand.vmem [shape: f32[128,128], index: 5, kind: input, shape index: {}]   ;;  %s6620_s6 = inlined_call_operand.vmem [shape: f32[1,128], index: 6, kind: input, shape index: {}]   ;;  %s6621_s7 = inlined_call_operand.vmem [shape: f32[128,5], index: 7, kind: input, shape index: {}]   ;;  %s6622_s8 = inlined_call_operand.vmem [shape: f32[1,5], index: 8, kind: input, shape index: {}]   ;;  %s6623_s9 = inlined_call_operand.hbm [shape: f32[128,1280], index: 9, kind: input, shape index: {}]   ;;  %s6624_s10 = inlined_call_operand.vmem [shape: f32[1,1280], index: 10, kind: input, shape index: {}]   ;;  %s6625_s11 = inlined_call_operand.hbm [shape: f32[5,128,256], index: 11, kind: input, shape index: {}]   ;;  %s6626_s12 = inlined_call_operand.vmem [shape: f32[5,1,256], index: 12, kind: input, shape index: {}]   ;;  %s6627_s13 = inlined_call_operand.hbm [shape: f32[5,128,128], index: 13, kind: input, shape index: {}]   ;;  %s6628_s14 = inlined_call_operand.vmem [shape: f32[5,1,128], index: 14, kind: input, shape index: {}]   ;;  %s6629_s15 = inlined_call_operand.vmem [shape: f32[128,16], index: 15, kind: input, shape index: {}]   ;;  %s6630_s16 = inlined_call_operand.vmem [shape: f32[1,16], index: 16, kind: input, shape index: {}]   ;;  %s6631_s17 = inlined_call_operand.vmem [shape: f32[16,128], index: 17, kind: input, shape index: {}]   ;;  %s6632_s18 = inlined_call_operand.vmem [shape: f32[1,128], index: 18, kind: input, shape index: {}]   ;;  %s6633_s19 = inlined_call_operand.vmem [shape: f32[1,128], index: 19, kind: input, shape index: {}]   ;;  %s6634_s20 = inlined_call_operand.hbm [shape: f32[2,16,128], index: 20, kind: output, shape index: {}]  }
   0x1   :  { %6667 = sst [smem:[#allocation27_spill]] %s6614_s0 }
   0x2   :  { %6668 = sst [smem:[#allocation28_spill]] %s6615_s1 }
   0x3   :  { %6669 = sst [smem:[#allocation29_spill]] %s6616_s2 }
   0x4   :  { %6670 = sst [smem:[#allocation30_spill]] %s6617_s3 }
   0x5   :  { %6671 = sst [smem:[#allocation31_spill]] %s6618_s4 }
   0x6   :  { %6672 = sst [smem:[#allocation32_spill]] %s6625_s11 }
   0x7   :  { %6673 = sst [smem:[#allocation33_spill]] %s6632_s18 }
   0x8   :  { %6674 = sst [smem:[#allocation34_spill]] %s6634_s20 }
   0x9   :  { %25 = vsyncpa [#allocation4], 0 }
   0xa   :  { %26 = vsyncpa [#allocation7], 0 }
   0xb   :  { %27 = vsyncpa [#allocation5], 0 }
   0xc   :  { %29 = vsyncpa [#allocation5 + $0x1], 0  ;;  %s5357_s1 = smov 0   ;;  %s5359_s22 = smov 0  }
   0xd   :  { %s5361_s23 = smov 0   ;;  %s5363_s24 = smov 0  }
   0xe LB: > { %6675 = sst [smem:[#allocation13_spill]] %s5218_s1  ;;  %s5378_s2 = sadd.s32 4294967295, %s5230_s24   ;;  %s5230_s24 = sphi %s5363_s24, %s6741_s24   ;;  %s5226_s23 = sphi %s5361_s23, %s6744_s23   ;;  %s5222_s22 = sphi %s5359_s22, %s6743_s22   ;;  %s5218_s1 = sphi %s5357_s1, %s6742_s1  }
   0xf   : > { %6676 = sst [smem:[#allocation14_spill]] %s5222_s22  ;;  %s3820_s25 = sadd.s32 4294967294, %s5230_s24  }
  0x10   : > { %6677 = sst [smem:[#allocation15_spill]] %s5226_s23  ;;  %s5382_s3 = sadd.s32 1, %s5230_s24  }
  0x11   : > { %6678 = sst [smem:[#allocation16_spill]] %s5230_s24  ;;  %s467_s26 = sadd.s32 1, %s5226_s23 }
  0x12   : > { %6679 = sst [smem:[#allocation17_spill]] %s5382_s3  ;;  %s464_s27 = ssub.s32 %s5230_s24, %s5382_s3 }
  0x13   : > { %p477_p0 = scmp.ne.s32.totalorder %s5226_s23, %s5222_s22  ;;  %p465_p1 = scmp.eq.s32.totalorder %s464_s27, 0 }
  0x14   : > { %p478_p2 = scmp.eq.s32.totalorder %s5378_s2, 1  ;;  %p483_p3 = scmp.ne.s32.totalorder %s5222_s22, %s5218_s1 }
  0x15   : > { %p484_p4 = scmp.eq.s32.totalorder %s3820_s25, 1  ;;  %p3821_p7 = scmp.ge.s32.totalorder %s5230_s24, 1 }
  0x16   : > { %s5393_s28 = scalar_select %p465_p1, %s5226_s23, %s467_s26  }
  0x17   : > { %p5395_p5 = por %p478_p2, %p477_p0  ;;  %p5399_p6 = por %p484_p4, %p483_p3 }
  0x18   : > { %6680 = sst [smem:[#allocation18_spill]] %s5393_s28  ;;  %p491_p8 = scmp.lt.s32.totalorder %s5230_s24, 3 }
  0x19   : > { %s6681_s4 = scalar_select %p5395_p5, 1, 0 }
  0x1a   : > { %s6683_s29 = scalar_select %p5399_p6, 1, 0 }
  0x1b   : > { %6682 = sst [smem:[#allocation19_spill]] %s6681_s4  ;;  %p6642_p9 = scmp.eq.s32.totalorder %s5378_s2, 0 }
  0x1c   : > { %6684 = sst [smem:[#allocation20_spill]] %s6683_s29  ;;  %p5406_p10 = pnand %p3821_p7, %p491_p8 }
  0x1d   : > { %s5232_s0 = smov [#allocation6]   ;;  %s5233_s26 = smov [#allocation3]  }
  0x1e   : > { %s6685_s30 = scalar_select %p5406_p10, 1, 0 }
  0x1f   : > { %s543_s21 = sshll.u32 %s5232_s0, 4  ;;  %p4878_p11 = pneg %p5406_p10  ;;  %s544_s21 = int_to_ptr.vmem [resolvable:$true] %s543_s21 }
  0x20   : > { %s527_s27 = sshll.u32 %s5233_s26, 4  ;;  %s6687_s11 = sld [smem:[#allocation32_spill]]  ;;  %s5418_s27 = int_to_ptr.vmem [resolvable:$true] %s527_s27 }
  0x21   : > { %p5414_p12 = pnand %p6642_p9, %p4878_p11 }
  0x23   : > { %p5428_p0 = pneg %p5414_p12 }
  0x26   : > { %s5076_s3 = scalar_lea.hbm %s6687_s11, 20480 }
  0x27   : > { %p5077_p13 = scmp.ne.s32.totalorder %s6687_s11, %s5076_s3  ;;  %p5083_p3 = scmp.lt.u32.totalorder %s5076_s3, %s6687_s11 }
  0x29   : > { %p5079_p1 = pnand %p5428_p0, %p5077_p13 }
  0x2b   : > { %p5080_p2 = pneg %p5079_p1 }
  0x2d   : > { %p5085_p4 = pnand %p5083_p3, %p5080_p2 }
  0x2f   : > { %5088 = shalt.err (!%p5085_p4)
}
  0x30   : > { %s5089_s23 = scalar_lea.vmem %s544_s21, 20480  ;;  %p5097_p9 = scmp.lt.s32.totalorder %s544_s21, %s544_s21 }
  0x31   : > { %p5090_p7 = scmp.ne.s32.totalorder %s544_s21, %s5089_s23  ;;  %p5098_p6 = scmp.lt.s32.totalorder %s5089_s23, %s5089_s23 }
  0x33   : > { %p5092_p8 = pnand %p5090_p7, %p5428_p0  ;;  %p5099_p5 = por %p5098_p6, %p5097_p9 }
  0x35   : > { %p5093_p11 = pneg %p5092_p8 }
  0x37   : > { %p5100_p10 = pnand %p5099_p5, %p5093_p11 }
  0x39   : > { %5103 = shalt.err (!%p5100_p10)
}
  0x3a   : > { %s5234_s1 = smov 256   ;;  %s5235_s28 = smov 16  }
  0x3b   : > { %4884 = dma.hbm_to_vmem [thread:$0]  (!%p5414_p12), %s6687_s11, 20480, %s544_s21, [#allocation7], %s5234_s1, %s5234_s1, %s5235_s28  }
  0x3c   : > { %s5104_s20 = scalar_lea.hbm %s6623_s9, 20480 }
  0x3d   : > { %p5105_p13 = scmp.ne.s32.totalorder %s6623_s9, %s5104_s20  ;;  %p5111_p9 = scmp.lt.u32.totalorder %s5104_s20, %s6623_s9 }
  0x3f   : > { %p5107_p5 = pnand %p5105_p13, %p5428_p0 }
  0x41   : > { %p5108_p6 = pneg %p5107_p5 }
  0x43   : > { %p5113_p10 = pnand %p5111_p9, %p5108_p6 }
  0x45   : > { %5116 = shalt.err (!%p5113_p10)
}
  0x46   : > { %s5117_s21 = scalar_lea.vmem %s5418_s27, 20480  ;;  %p5125_p4 = scmp.lt.s32.totalorder %s5418_s27, %s5418_s27 }
  0x47   : > { %p5118_p1 = scmp.ne.s32.totalorder %s5418_s27, %s5117_s21  ;;  %p5126_p7 = scmp.lt.s32.totalorder %s5117_s21, %s5117_s21 }
  0x49   : > { %p5120_p2 = pnand %p5118_p1, %p5428_p0  ;;  %p5127_p8 = por %p5126_p7, %p5125_p4 }
  0x4b   : > { %p5121_p3 = pneg %p5120_p2 }
  0x4d   : > { %p5128_p11 = pnand %p5127_p8, %p5121_p3 }
  0x4f   : > { %5131 = shalt.err (!%p5128_p11)
}
  0x50   : > { %s5236_s18 = smov 1280   ;;  %s5237_s20 = smov 80  }
  0x51   : > { %4881 = dma.hbm_to_vmem [thread:$0]  (!%p5414_p12), %s6623_s9, 20480, %s5418_s27, [#allocation4], %s5236_s18, %s5236_s18, %s5237_s20  }
  0x52   : > { %s5238_s1 = smov [#allocation8]   ;;  %s5132_s29 = scalar_lea.hbm %s6627_s13, 10240 }
  0x53   : > { %s559_s28 = sshll.u32 %s5238_s1, 4  ;;  %p5133_p13 = scmp.ne.s32.totalorder %s6627_s13, %s5132_s29  ;;  %s560_s28 = int_to_ptr.vmem [resolvable:$true] %s559_s28 }
  0x54   : > { %p5139_p9 = scmp.lt.u32.totalorder %s5132_s29, %s6627_s13 }
  0x55   : > { %p5135_p5 = pnand %p5133_p13, %p5428_p0 }
  0x57   : > { %p5136_p6 = pneg %p5135_p5 }
  0x59   : > { %p5141_p10 = pnand %p5139_p9, %p5136_p6 }
  0x5b   : > { %5144 = shalt.err (!%p5141_p10)
}
  0x5c   : > { %s5145_s27 = scalar_lea.vmem %s560_s28, 10240  ;;  %p5153_p4 = scmp.lt.s32.totalorder %s560_s28, %s560_s28 }
  0x5d   : > { %p5146_p1 = scmp.ne.s32.totalorder %s560_s28, %s5145_s27  ;;  %p5154_p7 = scmp.lt.s32.totalorder %s5145_s27, %s5145_s27 }
  0x5f   : > { %p5148_p2 = pnand %p5146_p1, %p5428_p0  ;;  %p5155_p8 = por %p5154_p7, %p5153_p4 }
  0x61   : > { %p5149_p3 = pneg %p5148_p2 }
  0x63   : > { %p5156_p11 = pnand %p5155_p8, %p5149_p3 }
  0x65   : > { %5159 = shalt.err (!%p5156_p11)
}
  0x66   : > { %s5239_s18 = smov 128   ;;  %s5240_s20 = smov 8  }
  0x67   : > { %4887 = dma.hbm_to_vmem [thread:$0]  (!%p5414_p12), %s6627_s13, 10240, %s560_s28, [#allocation7], %s5239_s18, %s5239_s18, %s5240_s20  }
  0x68   : > { %p6689_p13 = scmp.ne.s32.totalorder %s6685_s30, 0 }
  0x6a   : > { %601 = sbr.rel (%p6689_p13) target bundleno = 2584 (0xa18), region = 100 }
  0x71   : > { %p6690_p5 = scmp.eq.s32.totalorder %s5378_s2, 0 }
  0x73   : > { %5205 = dma.done.wait (%p6690_p5), [#allocation4], 20480   ;;  %p6691_p0 = pmov %p6690_p5 }
  0x75   : > { %5207 = vsyncadd (%p6691_p0), [#allocation4], 4294946816  ;;  %p6692_p6 = pmov %p6691_p0 }
  0x76   : > { %p6693_p9 = pmov %p6691_p0 }
  0x77   : > { %5209 = dma.done.wait (%p6692_p6), [#allocation7], 30720  }
  0x78   : > { %5211 = vsyncadd (%p6693_p9), [#allocation7], 4294936576  ;;  %p667_p10 = scmp.lt.s32.totalorder %s5378_s2, 1  ;;  %s6694_s1 = sld [smem:[#allocation27_spill]]  ;;  %v6650_v2 = vmov 0.0   ;;  %v1294_v11 = vld [vmem:[%s6619_s5] sm:$0xff]  ;;  %v6649_v43 = vlaneseq }
  0x79   : > { %716 = vst [vmem:[#allocation2 + $0x8] sm:$0xff] %v6650_v2  ;;  %717 = vst [vmem:[#allocation2 + $0x10] sm:$0xff] %v6650_v2  ;;  %v1295_v12 = vld [vmem:[%s6619_s5 + $0x8] sm:$0xff]  ;;  %v1296_v13 = vld [vmem:[%s6619_s5 + $0x10] sm:$0xff]  ;;  %s6696_s29 = sld [smem:[#allocation30_spill]]  ;;  %s6698_s21 = sld [smem:[#allocation28_spill]] }
  0x7a   : > { %s668_s25 = scalar_select %p667_p10, %s5378_s2, 1  ;;  %715 = vst [vmem:[#allocation2] sm:$0xff] %v6650_v2  ;;  %718 = vst [vmem:[#allocation2 + $0x18] sm:$0xff] %v6650_v2  ;;  %v4293_v14 = vpack.c.bf16 %v1295_v12, %v1294_v11  ;;  %v1297_v15 = vld [vmem:[%s6619_s5 + $0x18] sm:$0xff]  ;;  %v1298_v17 = vld [vmem:[%s6619_s5 + $0x20] sm:$0xff]  ;;  %v734_v45 = vshrl.u32 %v6649_v43, 7 }
  0x7b   : > { %720 = vst [vmem:[#allocation2 + $0x28] sm:$0x3f] %v6650_v2  ;;  %v4297_v16 = vpack.c.bf16 %v1297_v15, %v1296_v13  ;;  %v1299_v18 = vld [vmem:[%s6619_s5 + $0x28] sm:$0xff]  ;;  %v1300_v20 = vld [vmem:[%s6619_s5 + $0x30] sm:$0xff]  ;;  %v1301_v21 = vld [vmem:[%s6619_s5 + $0x38] sm:$0xff]  ;;  %s6703_s20 = sld [smem:[#allocation29_spill]] }
  0x7c   : > { %s3858_s0 = sshll.u32 %s668_s25, 4  ;;  %4294 = vmatprep.subr.bf16.mxu0 %v4293_v14  ;;  %v4301_v19 = vpack.c.bf16 %v1299_v18, %v1298_v17  ;;  %v4305_v22 = vpack.c.bf16 %v1301_v21, %v1300_v20  ;;  %v1302_v23 = vld [vmem:[%s6619_s5 + $0x40] sm:$0xff]  ;;  %v1303_v24 = vld [vmem:[%s6619_s5 + $0x48] sm:$0xff]  ;;  %v1304_v26 = vld [vmem:[%s6619_s5 + $0x50] sm:$0xff]  ;;  %v5566_v46 = vsub.s32 1, %v734_v45  ;;  %v5568_v47 = vsub.s32 2, %v734_v45 }
  0x7d   : > { %4296 = vmatpush3.bf16.msra.mxu0 %v4293_v14  ;;  %v4309_v25 = vpack.c.bf16 %v1303_v24, %v1302_v23  ;;  %v1305_v27 = vld [vmem:[%s6619_s5 + $0x58] sm:$0xff]  ;;  %v1306_v29 = vld [vmem:[%s6619_s5 + $0x60] sm:$0xff]  ;;  %v1307_v30 = vld [vmem:[%s6619_s5 + $0x68] sm:$0xff]  ;;  %v5573_v49 = vsub.s32 3, %v734_v45  ;;  %v5578_v52 = vsub.s32 4, %v734_v45  ;;  %v5580_v53 = vsub.s32 5, %v734_v45 }
  0x7e   : > { %s5500_s28 = scalar_lea.vmem %s6694_s1, %s3858_s0  ;;  %4298 = vmatprep.subr.bf16.mxu0 %v4297_v16  ;;  %v4313_v28 = vpack.c.bf16 %v1305_v27, %v1304_v26  ;;  %v4317_v31 = vpack.c.bf16 %v1307_v30, %v1306_v29  ;;  %v1308_v32 = vld [vmem:[%s6619_s5 + $0x70] sm:$0xff]  ;;  %v1309_v33 = vld [vmem:[%s6619_s5 + $0x78] sm:$0xff]  ;;  %v1585_v36 = vld [vmem:[#allocation3 + $0x58] sm:$0xff]  ;;  %6695 = vst [vmem:[#allocation21_spill] sm:$0xff] %v5568_v47  ;;  %v5582_v54 = vsub.s32 6, %v734_v45  ;;  %v5585_v56 = vsub.s32 7, %v734_v45 }
  0x7f   : > { %v672_v0 = vld [vmem:[%s5500_s28] sm:$0xff]  ;;  %v673_v1 = vld [vmem:[%s5500_s28 + $0x8] sm:$0xff]  ;;  %v4321_v34 = vpack.c.bf16 %v1309_v33, %v1308_v32  ;;  %v1575_v35 = vld [vmem:[#allocation3 + $0x8] sm:$0xff]  ;;  %6697 = vst [vmem:[#allocation22_spill] sm:$0xff] %v5573_v49  ;;  %vm751_vm0 = vcmask 1046528   ;;  %vm771_vm1 = vcmask 1045504  }
  0x80   : > { %674 = vadd.xlane.f32.xlu0 %v672_v0  ;;  %v4357_v37 = vpack.c.bf16 %v1585_v36, %v1575_v35  ;;  %v729_v48 = vld [vmem:[%s6696_s29] sm:$0xff]  ;;  %6699 = vst [vmem:[#allocation23_spill] sm:$0xff] %v5578_v52  ;;  %6700 = vst [vmem:[#allocation24_spill] sm:$0xff] %v5580_v53  ;;  %v730_v15 = vld [vmem:[%s6696_s29 + $0x8] sm:$0xff]  ;;  %vm791_vm2 = vcmask 1044480   ;;  %vm811_vm3 = vcmask 1043456  }
  0x81   : > { %4300 = vmatpush3.bf16.msra.mxu0 %v4297_v16  ;;  %v3833_v51 = vld [vmem:[%s6698_s21] ss:$0 sm:$0xff]  ;;  %6701 = vst [vmem:[#allocation25_spill] sm:$0xff] %v5582_v54  ;;  %6702 = vst [vmem:[#allocation26_spill] sm:$0xff] %v5585_v56  ;;  %v5591_v58 = vrot.slane %v729_v48, %v5566_v46  ;;  %v5594_v59 = vrot.slane %v729_v48, %v5568_v47  ;;  %v5597_v61 = vrot.slane %v729_v48, %v5573_v49  ;;  %v5675_v36 = vld [vmem:[%s6696_s29 + $0x18] sm:$0x7f] }
  0x82   : > { %4302 = vmatprep.subr.bf16.mxu0 %v4301_v19  ;;  %v3834_v57 = vld [vmem:[%s6703_s20] ss:$0 sm:$0xff]  ;;  %v5600_v63 = vrot.slane %v729_v48, %v5578_v52  ;;  %v5653_v29 = vrot.slane %v730_v15, %v5568_v47  ;;  %v5656_v30 = vrot.slane %v730_v15, %v5573_v49  ;;  %v5661_v32 = vrot.slane %v730_v15, %v5578_v52  ;;  %s6716_s3 = sld [smem:[#allocation31_spill]]  ;;  %s6732_s1 = sld [smem:[#allocation14_spill]] }
  0x83   : > { %v5619_v11 = vmul.f32 0.0, %v5597_v61  ;;  %v5664_v33 = vrot.slane %v730_v15, %v5580_v53  ;;  %v5670_v35 = vrot.slane %v730_v15, %v5585_v56  ;;  %vm831_vm4 = vcmask 1042432   ;;  %s6733_s26 = sld [smem:[#allocation33_spill]]  ;;  %s3859_s27 = sshll.u32 %s5378_s2, 8 }
  0x84   : > { %676 = vadd.xlane.f32.xlu0 %v673_v1  ;;  %v5622_v12 = vmul.f32 0.0, %v5600_v63  ;;  %vm851_vm5 = vcmask 1041408   ;;  %vm871_vm6 = vcmask 1040384   ;;  %vm1507_vm7 = vcmask 39936   ;;  %s6734_s18 = sld [smem:[#allocation19_spill]]  ;;  %s6735_s0 = sld [smem:[#allocation34_spill]] }
  0x85   : > { %4304 = vmatpush3.bf16.msra.mxu0 %v4301_v19  ;;  %v792_v21 = vrot.slane %v5619_v11, 3 }
  0x86   : > { %4306 = vmatprep.subr.bf16.mxu0 %v4305_v22  ;;  %v812_v23 = vrot.slane %v5622_v12, 4 }
  0x88   : > { %s664_s23 = sand.u32 1, %s6732_s1   ;;  %s5249_s1 = smov [#allocation9]  }
  0x89   : > { %4308 = vmatpush3.bf16.msra.mxu0 %v4305_v22  ;;  %v731_v22 = vld [vmem:[%s6696_s29 + $0x10] sm:$0xff]  ;;  %s3830_s21 = sshll.u32 %s664_s23, 4  ;;  %s6573_s2 = scalar_lea.sflag [#allocation5], %s664_s23 }
  0x8a   : > { %4310 = vmatprep.subr.bf16.mxu0 %v4309_v25  ;;  %s666_s20 = scalar_lea.vmem [#allocation9], %s3830_s21  ;;  %s6567_s4 = scalar_lea.hbm %s6735_s0, %s3859_s27 }
  0x8b   : > { %s3727_s22 = sshll.u32 %s666_s20, 4  ;;  %p6736_p1 = scmp.ne.s32.totalorder %s6734_s18, 0  ;;  %s6569_s22 = int_to_ptr.vmem [resolvable:$true] %s3727_s22 }
  0x8c   : > { %s5160_s30 = scalar_lea.vmem %s6569_s22, 256  ;;  %s5164_s24 = sshll.u32 %s5249_s1, 4  ;;  %s5165_s24 = int_to_ptr.vmem [resolvable:$false] %s5164_s24 }
  0x8d   : > { %4312 = vmatpush3.bf16.msra.mxu0 %v4309_v25  ;;  %p5161_p12 = scmp.ne.s32.totalorder %s6569_s22, %s5160_s30  ;;  %p5167_p4 = scmp.lt.s32.totalorder %s6569_s22, %s5165_s24 }
  0x8e   : > { %4314 = vmatprep.subr.bf16.mxu0 %v4313_v28 }
  0x8f   : > { %p5162_p2 = pnand %p5161_p12, %p6736_p1 }
  0x91   : > { %4316 = vmatpush3.bf16.msra.mxu0 %v4313_v28  ;;  %v5650_v28 = vrot.slane %v730_v15, %v5566_v46  ;;  %p5163_p3 = pneg %p5162_p2 }
  0x92   : > { %4318 = vmatprep.subr.bf16.mxu0 %v4317_v31 }
  0x95   : > { %4320 = vmatpush3.bf16.msra.mxu0 %v4317_v31 }
  0x96   : > { %4322 = vmatprep.subr.bf16.mxu0 %v4321_v34 }
  0x99   : > { %4324 = vmatpush3.bf16.msra.mxu0 %v4321_v34  ;;  %v5667_v34 = vrot.slane %v730_v15, %v5582_v54 }
  0x9a   : > { %4358 = vmatprep.subr.bf16.mxu0 %v4357_v37 }
 0x10d   : > { %v675_v3 = vpop.xlane.xlu0 %674 }
 0x10e   : > { %v679_v4 = vmul.f32 0.0078125, %v675_v3 }
 0x110   : > { %v5509_v5 = vsub.f32 %v672_v0, %v679_v4  ;;  %v5603_v0 = vrot.slane %v729_v48, %v5580_v53 }
 0x111   : > { %v677_v6 = vpop.xlane.xlu0 %676 }
 0x112   : > { %v680_v7 = vmul.f32 0.0078125, %v677_v6  ;;  %v683_v8 = vmul.f32 %v5509_v5, %v5509_v5  ;;  %v5612_v6 = vrot.slane %v729_v48, %v5585_v56 }
 0x114   : > { %v5513_v9 = vsub.f32 %v673_v1, %v680_v7  ;;  %685 = vadd.xlane.f32.xlu1 %v683_v8  ;;  %v5606_v1 = vrot.slane %v729_v48, %v5582_v54  ;;  %v745_v7 = vmul.f32 0.0, %v5591_v58  ;;  %v5616_v8 = vmul.f32 0.0, %v5594_v59 }
 0x115   : > { %v5635_v17 = vmul.f32 0.0, %v5612_v6 }
 0x116   : > { %v684_v10 = vmul.f32 %v5513_v9, %v5513_v9  ;;  %v5628_v13 = vmul.f32 0.0, %v5606_v1  ;;  %v752_v18 = vrot.slane %v745_v7, 1  ;;  %v772_v19 = vrot.slane %v5616_v8, 2 }
 0x117   : > { %v872_v27 = vrot.slane %v5635_v17, 7 }
 0x118   : > { %687 = vadd.xlane.f32.xlu1 %v684_v10  ;;  %v852_v25 = vrot.slane %v5628_v13, 6 }
 0x1a1   : > { %v686_v38 = vpop.xlane.xlu1 %685 }
 0x1a2   : > { %v689_v39 = vmul.f32 0.0078125, %v686_v38 }
 0x1a4   : > { %v691_v40 = vadd.f32 1e-05, %v689_v39 }
 0x1a5   : > { %v688_v41 = vpop.xlane.xlu1 %687 }
 0x1a6   : > { %4960 = vrsqrt.f32 %v691_v40  ;;  %v690_v42 = vmul.f32 0.0078125, %v688_v41  ;;  %v5687_v41 = vrot.slane %v731_v22, %v5566_v46 }
 0x1a8   : > { %v692_v44 = vadd.f32 1e-05, %v690_v42  ;;  %v5690_v42 = vrot.slane %v731_v22, %v5568_v47 }
 0x1aa   : > { %4962 = vrsqrt.f32 %v692_v44  ;;  %v5693_v44 = vrot.slane %v731_v22, %v5573_v49 }
 0x1b0   : > { %v4961_v50 = vpop.eup %4960 }
 0x1b1   : > { %v695_v55 = vmul.f32 %v4961_v50, %v5509_v5  ;;  %v5609_v5 = vsub.s32 0, %v734_v45  ;;  %v5696_v45 = vrot.slane %v731_v22, %v5578_v52 }
 0x1b3   : > { %v704_v60 = vmul.f32 %v3833_v51, %v695_v55  ;;  %v736_v16 = vrot.slane %v729_v48, %v5609_v5  ;;  %v5646_v26 = vrot.slane %v730_v15, %v5609_v5  ;;  %v5684_v40 = vrot.slane %v731_v22, %v5609_v5 }
 0x1b4   : > { %v4963_v62 = vpop.eup %4962  ;;  %v5701_v55 = vrot.slane %v731_v22, %v5580_v53 }
 0x1b5   : > { %v713_v3 = vadd.f32 %v3834_v57, %v704_v60  ;;  %v696_v4 = vmul.f32 %v4963_v62, %v5513_v9  ;;  %v5625_v9 = vmul.f32 0.0, %v5603_v0  ;;  %v737_v20 = vmul.f32 0.0, %v736_v16 }
 0x1b6   : > { %v5710_v62 = vrot.slane %v731_v22, %v5582_v54 }
 0x1b7   : > { %721 = vst [vmem:[#allocation2 + $0xf] sm:$0xff] %v713_v3  ;;  %v705_v10 = vmul.f32 %v3833_v51, %v696_v4  ;;  %v832_v24 = vrot.slane %v5625_v9, 5  ;;  %v5713_v3 = vrot.slane %v731_v22, %v5585_v56  ;;  %v5717_v4 = vrot.slane %v5675_v36, %v5609_v5 }
 0x1b8   : > { %v5732_v22 = vrot.slane %v5675_v36, %v5566_v46 }
 0x1b9   : > { %v714_v14 = vadd.f32 %v3834_v57, %v705_v10 }
 0x1bb   : > { %722 = vst [vmem:[#allocation2 + $0x17] sm:$0xff] %v714_v14 }
 0x1be   : > { %v5658_v31 = vld [vmem:[#allocation2 + $0x8] sm:$0xff] }
 0x1bf   : > { %v746_v37 = vmul.f32 %v5591_v58, %v5658_v31  ;;  %v766_v38 = vmul.f32 %v5594_v59, %v5658_v31  ;;  %v786_v39 = vmul.f32 %v5597_v61, %v5658_v31  ;;  %v806_v51 = vmul.f32 %v5600_v63, %v5658_v31 }
 0x1c0   : > { %v5707_v60 = vmul.f32 %v5603_v0, %v5658_v31  ;;  %v5728_v15 = vmul.f32 %v5606_v1, %v5658_v31  ;;  %v931_v17 = vmul.f32 %v5656_v30, %v5658_v31 }
 0x1c1   : > { %v753_v48 = vrot.slane %v746_v37, 1  ;;  %v773_v50 = vrot.slane %v766_v38, 2  ;;  %v793_v11 = vrot.slane %v786_v39, 3  ;;  %v813_v38 = vrot.slane %v806_v51, 4 }
 0x1c2   : > { %v5703_v57 = vld [vmem:[#allocation2 + $0x10] sm:$0xff]  ;;  %v833_v39 = vrot.slane %v5707_v60, 5  ;;  %v5751_v51 = vrot.slane %v5675_v36, %v5573_v49 }
 0x1c3   : > { %v747_v7 = vmul.f32 %v5591_v58, %v5703_v57  ;;  %v754_v8 = vsel %vm751_vm0, %v752_v18, %v753_v48  ;;  %v767_v10 = vmul.f32 %v5594_v59, %v5703_v57  ;;  %v787_v14 = vmul.f32 %v5597_v61, %v5703_v57 }
 0x1c4   : > { %v759_v12 = vadd.f32 %v754_v8, %v737_v20  ;;  %v774_v18 = vsel %vm771_vm1, %v772_v19, %v773_v50  ;;  %v738_v59 = vmul.f32 %v736_v16, %v5658_v31  ;;  %v5739_v61 = vmul.f32 %v5612_v6, %v5658_v31 }
 0x1c5   : > { %v755_v58 = vrot.slane %v747_v7, 1  ;;  %v775_v37 = vrot.slane %v767_v10, 2  ;;  %v794_v43 = vsel %vm791_vm2, %v792_v21, %v793_v11  ;;  %v795_v2 = vrot.slane %v787_v14, 3 }
 0x1c6   : > { %v779_v20 = vadd.f32 %v774_v18, %v759_v12  ;;  %v807_v7 = vmul.f32 %v5600_v63, %v5703_v57  ;;  %v5747_v16 = vrot.slane %v5675_v36, %v5568_v47  ;;  %v853_v21 = vrot.slane %v5728_v15, 6 }
 0x1c7   : > { %v756_v8 = vsel %vm751_vm0, %v753_v48, %v755_v58  ;;  %v776_v60 = vsel %vm771_vm1, %v773_v50, %v775_v37  ;;  %v814_v48 = vsel %vm811_vm3, %v812_v23, %v813_v38  ;;  %v5758_v12 = vrot.slane %v5675_v36, %v5578_v52 }
 0x1c8   : > { %v760_v19 = vadd.f32 %v756_v8, %v738_v59  ;;  %v799_v10 = vadd.f32 %v794_v43, %v779_v20  ;;  %v827_v14 = vmul.f32 %v5603_v0, %v5703_v57  ;;  %v873_v58 = vrot.slane %v5739_v61, 7 }
 0x1c9   : > { %v796_v18 = vsel %vm791_vm2, %v793_v11, %v795_v2  ;;  %v815_v59 = vrot.slane %v807_v7, 4  ;;  %v834_v23 = vsel %vm831_vm4, %v832_v24, %v833_v39  ;;  %v5769_v50 = vmul.f32 %v5650_v28, %v5703_v57 }
 0x1ca   : > { %v780_v63 = vadd.f32 %v776_v60, %v760_v19  ;;  %v819_v43 = vadd.f32 %v814_v48, %v799_v10  ;;  %v5772_v20 = vmul.f32 0.0, %v5732_v22  ;;  %v5776_v0 = vrot.slane %v5675_v36, %v5580_v53 }
 0x1cb   : > { %v847_v2 = vmul.f32 %v5606_v1, %v5703_v57  ;;  %v854_v9 = vsel %vm851_vm5, %v852_v25, %v853_v21  ;;  %v893_v24 = vmul.f32 %v5650_v28, %v5658_v31  ;;  %v5787_v11 = vmul.f32 %v5653_v29, %v5703_v57 }
 0x1cc   : > { %v800_v15 = vadd.f32 %v796_v18, %v780_v63  ;;  %v839_v37 = vadd.f32 %v834_v23, %v819_v43  ;;  %v835_v8 = vrot.slane %v827_v14, 5  ;;  %v912_v19 = vmul.f32 %v5653_v29, %v5658_v31 }
 0x1cd   : > { %v5793_v10 = vrot.slane %v5675_v36, %v5582_v54  ;;  %v816_v1 = vsel %vm811_vm3, %v813_v38, %v815_v59  ;;  %v874_v13 = vsel %vm871_vm6, %v872_v27, %v873_v58  ;;  %v6653_v25 = vrot.slane %v5769_v50, 1 }
 0x1ce   : > { %v859_v7 = vadd.f32 %v854_v9, %v839_v37  ;;  %v5804_v60 = vmul.f32 %v5656_v30, %v5703_v57  ;;  %v820_v48 = vadd.f32 %v816_v1, %v800_v15  ;;  %v885_v36 = vmul.f32 %v5646_v26, %v5658_v31 }
 0x1cf   : > { %v6652_v43 = vrot.slane %v5787_v11, 2  ;;  %v855_v38 = vrot.slane %v847_v2, 6  ;;  %v899_v14 = vrot.slane %v893_v24, 1  ;;  %v5813_v27 = vmul.f32 %v5661_v32, %v5703_v57 }
 0x1d0   : > { %v879_v63 = vadd.f32 %v874_v13, %v859_v7  ;;  %v867_v18 = vmul.f32 %v5612_v6, %v5703_v57  ;;  %v918_v23 = vrot.slane %v912_v19, 2  ;;  %v950_v15 = vmul.f32 %v5661_v32, %v5658_v31 }
 0x1d1   : > { %v836_v37 = vsel %vm831_vm4, %v833_v39, %v835_v8  ;;  %v901_v2 = vsel %vm751_vm0, %v899_v14, %v6653_v25  ;;  %v6657_v9 = vrot.slane %v5804_v60, 3  ;;  %v5826_v24 = vmul.f32 %v5664_v33, %v5703_v57 }
 0x1d2   : > { %v887_v59 = vadd.f32 %v885_v36, %v879_v63  ;;  %v840_v7 = vadd.f32 %v836_v37, %v820_v48  ;;  %v920_v6 = vsel %vm771_vm1, %v918_v23, %v6652_v43  ;;  %v5832_v19 = vmul.f32 0.0, %v5747_v16  ;;  %v5852_v43 = vld [vmem:[#allocation2 + $0x18] sm:$0xff] }
 0x1d3   : > { %v937_v39 = vrot.slane %v931_v17, 3  ;;  %v6654_v8 = vrot.slane %v5813_v27, 4  ;;  %v969_v13 = vmul.f32 %v5664_v33, %v5658_v31  ;;  %v5839_v63 = vmul.f32 %v5667_v34, %v5703_v57 }
 0x1d4   : > { %v906_v1 = vadd.f32 %v901_v2, %v887_v59  ;;  %v856_v48 = vsel %vm851_vm5, %v853_v21, %v855_v38  ;;  %v875_v36 = vrot.slane %v867_v18, 7  ;;  %v956_v59 = vrot.slane %v950_v15, 4 }
 0x1d5   : > { %v939_v23 = vsel %vm791_vm2, %v937_v39, %v6657_v9  ;;  %v6656_v17 = vrot.slane %v5826_v24, 5  ;;  %v988_v37 = vmul.f32 %v5667_v34, %v5658_v31  ;;  %v5850_v2 = vmul.f32 %v5670_v35, %v5703_v57 }
 0x1d6   : > { %v925_v14 = vadd.f32 %v920_v6, %v906_v1  ;;  %v860_v25 = vadd.f32 %v856_v48, %v840_v7  ;;  %v5855_v38 = vmul.f32 0.0, %v5751_v51  ;;  %v5858_v18 = vmul.f32 0.0, %v5758_v12 }
 0x1d7   : > { %v958_v15 = vsel %vm811_vm3, %v956_v59, %v6654_v8  ;;  %v975_v1 = vrot.slane %v969_v13, 5  ;;  %v6655_v6 = vrot.slane %v5839_v63, 6  ;;  %v1007_v39 = vmul.f32 %v5670_v35, %v5658_v31 }
 0x1d8   : > { %v944_v21 = vadd.f32 %v939_v23, %v925_v14  ;;  %v876_v7 = vsel %vm871_vm6, %v873_v58, %v875_v36  ;;  %v1034_v14 = vmul.f32 %v5687_v41, %v5703_v57  ;;  %v994_v13 = vrot.slane %v988_v37, 6 }
 0x1d9   : > { %v977_v59 = vsel %vm831_vm4, %v975_v1, %v6656_v17  ;;  %v6658_v8 = vrot.slane %v5850_v2, 7  ;;  %v5878_v31 = vmul.f32 %v5687_v41, %v5852_v43  ;;  %v880_v61 = vadd.f32 %v876_v7, %v860_v25 }
 0x1da   : > { %v963_v48 = vadd.f32 %v958_v15, %v944_v21  ;;  %v895_v58 = vmul.f32 %v5650_v28, %v5852_v43  ;;  %v5883_v21 = vmul.f32 0.0, %v5776_v0  ;;  %v996_v15 = vsel %vm851_vm5, %v994_v13, %v6655_v6 }
 0x1db   : > { %v1013_v1 = vrot.slane %v1007_v39, 7  ;;  %v1053_v37 = vmul.f32 %v5690_v42, %v5703_v57  ;;  %v5892_v23 = vmul.f32 %v5690_v42, %v5852_v43  ;;  %v1040_v7 = vrot.slane %v1034_v14, 1 }
 0x1dc   : > { %v982_v36 = vadd.f32 %v977_v59, %v963_v48  ;;  %v1072_v28 = vmul.f32 %v5693_v44, %v5703_v57  ;;  %v5898_v48 = vmul.f32 %v5693_v44, %v5852_v43  ;;  %v1091_v13 = vmul.f32 %v5696_v45, %v5703_v57 }
 0x1dd   : > { %v1015_v39 = vsel %vm871_vm6, %v1013_v1, %v6658_v8  ;;  %v886_v14 = vmul.f32 %v5646_v26, %v5703_v57  ;;  %v1026_v17 = vmul.f32 %v5684_v40, %v5703_v57  ;;  %v1059_v9 = vrot.slane %v1053_v37, 2 }
 0x1de   : > { %v1001_v25 = vadd.f32 %v996_v15, %v982_v36  ;;  %v5908_v36 = vmul.f32 %v5696_v45, %v5852_v43  ;;  %v902_v15 = vrot.slane %v895_v58, 1  ;;  %v1110_v8 = vmul.f32 %v5701_v55, %v5703_v57 }
 0x1df   : > { %v5919_v59 = vmul.f32 %v5701_v55, %v5852_v43  ;;  %v888_v54 = vadd.f32 %v886_v14, %v880_v61  ;;  %v1078_v47 = vrot.slane %v1072_v28, 3  ;;  %v1079_v26 = vrot.slane %v5898_v48, 3 }
 0x1e0   : > { %v1020_v6 = vadd.f32 %v1015_v39, %v1001_v25  ;;  %v6704_v58 = vrot.slane %v5878_v31, 1  ;;  %v1097_v39 = vrot.slane %v1091_v13, 4  ;;  %v6666_v37 = vrot.slane %v5908_v36, 4 }
 0x1e1   : > { %v1129_v1 = vmul.f32 %v5710_v62, %v5703_v57  ;;  %v6705_v49 = vrot.slane %v5769_v50, 1  ;;  %v6706_v61 = vrot.slane %v5892_v23, 2  ;;  %v1116_v28 = vrot.slane %v1110_v8, 5 }
 0x1e2   : > { %v1028_v56 = vadd.f32 %v1026_v17, %v1020_v6  ;;  %v1042_v25 = vsel %vm751_vm0, %v1040_v7, %v6704_v58  ;;  %v5933_v17 = vmul.f32 %v5710_v62, %v5852_v43  ;;  %v1201_v6 = vrot.slane %v5832_v19, 2 }
 0x1e3   : > { %v903_v52 = vsel %vm751_vm0, %v6705_v49, %v902_v15  ;;  %v1061_v7 = vsel %vm771_vm1, %v1059_v9, %v6706_v61  ;;  %v6665_v13 = vrot.slane %v5919_v59, 5  ;;  %v1148_v14 = vmul.f32 %v5713_v3, %v5703_v57 }
 0x1e4   : > { %v1047_v53 = vadd.f32 %v1042_v25, %v1028_v56  ;;  %v907_v50 = vadd.f32 %v903_v52, %v888_v54  ;;  %v1220_v49 = vrot.slane %v5855_v38, 3  ;;  %v914_v56 = vmul.f32 %v5653_v29, %v5852_v43  ;;  %v1605_v38 = vld [vmem:[#allocation3 + $0xf8] sm:$0xff] }
 0x1e5   : > { %v1080_v15 = vsel %vm791_vm2, %v1078_v47, %v1079_v26  ;;  %v1099_v9 = vsel %vm811_vm3, %v1097_v39, %v6666_v37  ;;  %v1135_v8 = vrot.slane %v1129_v1, 6  ;;  %v5953_v25 = vmul.f32 %v5713_v3, %v5852_v43 }
 0x1e6   : > { %v1066_v58 = vadd.f32 %v1061_v7, %v1047_v53  ;;  %v1136_v53 = vrot.slane %v5933_v17, 6  ;;  %v921_v54 = vrot.slane %v914_v56, 2  ;;  %v933_v29 = vmul.f32 %v5656_v30, %v5852_v43 }
 0x1e7   : > { %v1118_v47 = vsel %vm831_vm4, %v1116_v28, %v6665_v13  ;;  %v1154_v57 = vrot.slane %v1148_v14, 7  ;;  %v952_v39 = vmul.f32 %v5661_v32, %v5852_v43  ;;  %v971_v1 = vmul.f32 %v5664_v33, %v5852_v43 }
 0x1e8   : > { %v1085_v52 = vadd.f32 %v1080_v15, %v1066_v58  ;;  %v6707_v7 = vrot.slane %v5787_v11, 2  ;;  %v940_v56 = vrot.slane %v933_v29, 3  ;;  %v990_v30 = vmul.f32 %v5667_v34, %v5852_v43 }
 0x1e9   : > { %v1155_v15 = vrot.slane %v5953_v25, 7  ;;  %v1175_v28 = vmul.f32 %v5732_v22, %v5852_v43  ;;  %v959_v13 = vrot.slane %v952_v39, 4  ;;  %v6708_v37 = vrot.slane %v5804_v60, 3 }
 0x1ea   : > { %v1104_v61 = vadd.f32 %v1099_v9, %v1085_v52  ;;  %v922_v58 = vsel %vm771_vm1, %v6707_v7, %v921_v54  ;;  %v978_v9 = vrot.slane %v971_v1, 5  ;;  %v1009_v11 = vmul.f32 %v5670_v35, %v5852_v43 }
 0x1eb   : > { %v926_v14 = vadd.f32 %v922_v58, %v907_v50  ;;  %v941_v33 = vsel %vm791_vm2, %v6708_v37, %v940_v56  ;;  %v1137_v34 = vsel %vm851_vm5, %v1135_v8, %v1136_v53  ;;  %v1194_v52 = vmul.f32 %v5747_v16, %v5852_v43 }
 0x1ec   : > { %v1123_v32 = vadd.f32 %v1118_v47, %v1104_v61  ;;  %v1036_v50 = vmul.f32 0.0, %v5687_v41  ;;  %v1167_v60 = vmul.f32 %v5717_v4, %v5852_v43  ;;  %v6709_v37 = vrot.slane %v5813_v27, 4 }
 0x1ed   : > { %v945_v54 = vadd.f32 %v941_v33, %v926_v14  ;;  %v997_v39 = vrot.slane %v990_v30, 6  ;;  %v1156_v35 = vsel %vm871_vm6, %v1154_v57, %v1155_v15  ;;  %v1181_v8 = vrot.slane %v1175_v28, 1 }
 0x1ee   : > { %v1142_v29 = vadd.f32 %v1137_v34, %v1123_v32  ;;  %v960_v47 = vsel %vm811_vm3, %v6709_v37, %v959_v13  ;;  %v1213_v1 = vmul.f32 %v5751_v51, %v5852_v43  ;;  %v1232_v41 = vmul.f32 %v5758_v12, %v5852_v43 }
 0x1ef   : > { %v964_v61 = vadd.f32 %v960_v47, %v945_v54  ;;  %v6710_v58 = vrot.slane %v5826_v24, 5  ;;  %v1016_v56 = vrot.slane %v1009_v11, 7  ;;  %v1200_v13 = vrot.slane %v1194_v52, 2 }
 0x1f0   : > { %v1161_v7 = vadd.f32 %v1156_v35, %v1142_v29  ;;  %v1239_v30 = vrot.slane %v5858_v18, 4  ;;  %v6001_v14 = vmul.f32 0.0, %v5793_v10  ;;  %v6711_v32 = vrot.slane %v5839_v63, 6  ;;  %v1594_v18 = vld [vmem:[#allocation3 + $0xa0] sm:$0xff] }
 0x1f1   : > { %v979_v27 = vsel %vm831_vm4, %v6710_v58, %v978_v9  ;;  %v1055_v34 = vmul.f32 0.0, %v5690_v42  ;;  %v1074_v54 = vmul.f32 0.0, %v5693_v44  ;;  %v6712_v24 = vrot.slane %v5772_v20, 1 }
 0x1f2   : > { %v983_v57 = vadd.f32 %v979_v27, %v964_v61  ;;  %v1169_v28 = vadd.f32 %v1167_v60, %v1161_v7  ;;  %v998_v33 = vsel %vm851_vm5, %v6711_v32, %v997_v39  ;;  %v1219_v11 = vrot.slane %v1213_v1, 3 }
 0x1f3   : > { %v1183_v9 = vsel %vm751_vm0, %v1181_v8, %v6712_v24  ;;  %v1251_v52 = vmul.f32 %v5776_v0, %v5852_v43  ;;  %v1238_v47 = vrot.slane %v1232_v41, 4  ;;  %v6713_v60 = vrot.slane %v5850_v2, 7 }
 0x1f4   : > { %v1002_v29 = vadd.f32 %v998_v33, %v983_v57  ;;  %v1188_v37 = vadd.f32 %v1183_v9, %v1169_v28  ;;  %v1043_v39 = vrot.slane %v1036_v50, 1  ;;  %v1202_v42 = vsel %vm771_vm1, %v1200_v13, %v1201_v6  ;;  %v728_v9 = vld [vmem:[#allocation2 + $0x28] sm:$0x3f] }
 0x1f5   : > { %v1017_v63 = vsel %vm871_vm6, %v6713_v60, %v1016_v56  ;;  %v1270_v44 = vmul.f32 %v5793_v10, %v5852_v43  ;;  %v1027_v8 = vmul.f32 %v5684_v40, %v5852_v43  ;;  %v1062_v61 = vrot.slane %v1055_v34, 2 }
 0x1f6   : > { %v1021_v35 = vadd.f32 %v1017_v63, %v1002_v29  ;;  %v1207_v1 = vadd.f32 %v1202_v42, %v1188_v37  ;;  %v1093_v7 = vmul.f32 0.0, %v5696_v45  ;;  %v1221_v2 = vsel %vm791_vm2, %v1219_v11, %v1220_v49 }
 0x1f7   : > { %v1257_v50 = vrot.slane %v1251_v52, 5  ;;  %v1258_v41 = vrot.slane %v5883_v21, 5  ;;  %v6714_v56 = vrot.slane %v5878_v31, 1  ;;  %v1081_v57 = vrot.slane %v1074_v54, 3 }
 0x1f8   : > { %v1029_v58 = vadd.f32 %v1027_v8, %v1021_v35  ;;  %v1226_v27 = vadd.f32 %v1221_v2, %v1207_v1  ;;  %v1112_v40 = vmul.f32 0.0, %v5701_v55  ;;  %v1240_v45 = vsel %vm811_vm3, %v1238_v47, %v1239_v30 }
 0x1f9   : > { %v1044_v13 = vsel %vm751_vm0, %v6714_v56, %v1043_v39  ;;  %v1276_v43 = vrot.slane %v1270_v44, 6  ;;  %v1277_v28 = vrot.slane %v6001_v14, 6  ;;  %v6715_v21 = vrot.slane %v5892_v23, 2  ;;  %v3835_v23 = vld [vmem:[%s6716_s3] ss:$0 sm:$0xff]  ;;  %s5166_s3 = scalar_lea.vmem %s5165_s24, 512 }
 0x1fa   : > { %v1048_v32 = vadd.f32 %v1044_v13, %v1029_v58  ;;  %v1245_v33 = vadd.f32 %v1240_v45, %v1226_v27  ;;  %v1100_v24 = vrot.slane %v1093_v7, 4  ;;  %v1131_v31 = vmul.f32 0.0, %v5710_v62  ;;  %p5168_p7 = scmp.lt.s32.totalorder %s5166_s3, %s5160_s30 }
 0x1fb   : > { %v1063_v34 = vsel %vm771_vm1, %v6715_v21, %v1062_v61  ;;  %v1259_v54 = vsel %vm831_vm4, %v1257_v50, %v1258_v41  ;;  %v1082_v52 = vsel %vm791_vm2, %v1079_v26, %v1081_v57  ;;  %v1119_v29 = vrot.slane %v1112_v40, 5  ;;  %v1595_v21 = vld [vmem:[#allocation3 + $0xa8] sm:$0xff] }
 0x1fc   : > { %v1067_v55 = vadd.f32 %v1063_v34, %v1048_v32  ;;  %v1264_v11 = vadd.f32 %v1259_v54, %v1245_v33  ;;  %v1150_v14 = vmul.f32 0.0, %v5713_v3  ;;  %v1278_v37 = vsel %vm851_vm5, %v1276_v43, %v1277_v28  ;;  %v1584_v33 = vld [vmem:[#allocation3 + $0x50] sm:$0xff]  ;;  %p5169_p8 = por %p5168_p7, %p5167_p4 }
 0x1fd   : > { %v6717_v60 = vrot.slane %v5908_v36, 4  ;;  %v1138_v39 = vrot.slane %v1131_v31, 6  ;;  %v1177_v48 = vmul.f32 %v5732_v22, %v728_v9  ;;  %v6718_v3 = vrot.slane %v5919_v59, 5  ;;  %v1604_v54 = vld [vmem:[#allocation3 + $0xf0] sm:$0xff] }
 0x1fe   : > { %v1086_v47 = vadd.f32 %v1082_v52, %v1067_v55  ;;  %v1283_v62 = vadd.f32 %v1278_v37, %v1264_v11  ;;  %v1157_v35 = vrot.slane %v1150_v14, 7  ;;  %v1196_v8 = vmul.f32 %v5747_v16, %v728_v9  ;;  %v1614_v11 = vld [vmem:[#allocation3 + $0x140] sm:$0xff]  ;;  %v1624_v52 = vld [vmem:[#allocation3 + $0x190] sm:$0xff]  ;;  %v1645_v14 = vld [vmem:[#allocation3 + $0x238] sm:$0xff]  ;;  %p5170_p11 = pnand %p5169_p8, %p5163_p3 }
 0x1ff   : > { %v1101_v63 = vsel %vm811_vm3, %v6717_v60, %v1100_v24  ;;  %v1120_v44 = vsel %vm831_vm4, %v6718_v3, %v1119_v29  ;;  %v1139_v36 = vsel %vm851_vm5, %v1136_v53, %v1138_v39  ;;  %v1184_v61 = vrot.slane %v1177_v48, 1  ;;  %v1635_v29 = vld [vmem:[#allocation3 + $0x1e8] sm:$0xff]  ;;  %v1664_v3 = vld [vmem:[#allocation3 + $0x2d0] sm:$0xff] }
 0x200   : > { %v1105_v42 = vadd.f32 %v1101_v63, %v1086_v47  ;;  %v6053_v26 = vadd.f32 %v3835_v23, %v1283_v62  ;;  %v1215_v22 = vmul.f32 %v5751_v51, %v728_v9  ;;  %v1168_v2 = vmul.f32 0.0, %v5717_v4  ;;  %v1634_v47 = vld [vmem:[#allocation3 + $0x1e0] sm:$0xff]  ;;  %v1644_v62 = vld [vmem:[#allocation3 + $0x230] sm:$0xff]  ;;  %v1655_v60 = vld [vmem:[#allocation3 + $0x288] sm:$0xff] }
 0x201   : > { %v1158_v59 = vsel %vm871_vm6, %v1155_v15, %v1157_v35  ;;  %v1203_v50 = vrot.slane %v1196_v8, 2  ;;  %v1234_v16 = vmul.f32 %v5758_v12, %v728_v9  ;;  %v6719_v27 = vrot.slane %v5772_v20, 1  ;;  %v1665_v63 = vld [vmem:[#allocation3 + $0x2d8] sm:$0xff] }
 0x202   : > { %v1124_v1 = vadd.f32 %v1120_v44, %v1105_v42  ;;  %4038 = vmatprep.mubr.f32.mxu0 %v6053_v26  ;;  %v1222_v56 = vrot.slane %v1215_v22, 3  ;;  %v1253_v53 = vmul.f32 %v5776_v0, %v728_v9  ;;  %v1272_v25 = vmul.f32 %v5793_v10, %v728_v9  ;;  %v1574_v10 = vld [vmem:[#allocation3] sm:$0xff]  ;;  %v1625_v9 = vld [vmem:[#allocation3 + $0x198] sm:$0xff]  ;;  %v1675_v44 = vld [vmem:[#allocation3 + $0x328] sm:$0xff] }
 0x203   : > { %v1185_v17 = vsel %vm751_vm0, %v6719_v27, %v1184_v61  ;;  %v1204_v4 = vsel %vm771_vm1, %v1201_v6, %v1203_v50  ;;  %v1241_v51 = vrot.slane %v1234_v16, 4  ;;  %v4361_v31 = vpack.c.bf16 %v1605_v38, %v1595_v21  ;;  %v1654_v42 = vld [vmem:[#allocation3 + $0x280] sm:$0xff]  ;;  %v1685_v35 = vld [vmem:[#allocation3 + $0x378] sm:$0xff]  ;;  %v1684_v61 = vld [vmem:[#allocation3 + $0x370] sm:$0xff] }
 0x204   : > { %v1143_v7 = vadd.f32 %v1139_v36, %v1124_v1  ;;  %v1223_v12 = vsel %vm791_vm2, %v1220_v49, %v1222_v56  ;;  %v1260_v57 = vrot.slane %v1253_v53, 5  ;;  %v1279_v0 = vrot.slane %v1272_v25, 6  ;;  %v1674_v36 = vld [vmem:[#allocation3 + $0x320] sm:$0xff]  ;;  %v1695_v22 = vld [vmem:[#allocation3 + $0x3c8] sm:$0xff]  ;;  %v1704_v16 = vld [vmem:[#allocation3 + $0x410] sm:$0xff] }
 0x205   : > { %v1242_v40 = vsel %vm811_vm3, %v1239_v30, %v1241_v51  ;;  %v4359_v49 = vpack.c.bf16 %v1584_v33, %v1574_v10  ;;  %v1615_v30 = vld [vmem:[#allocation3 + $0x148] sm:$0xff]  ;;  %v6720_v55 = vmov 0.0   ;;  %v4367_v37 = vpack.c.bf16 %v1624_v52, %v1614_v11  ;;  %v1694_v50 = vld [vmem:[#allocation3 + $0x3c0] sm:$0xff]  ;;  %v1725_v27 = vld [vmem:[#allocation3 + $0x4b8] sm:$0xff] }
 0x206   : > { %v1162_v58 = vadd.f32 %v1158_v59, %v1143_v7  ;;  %v1261_v19 = vsel %vm831_vm4, %v1258_v41, %v1260_v57  ;;  %v1280_v6 = vsel %vm851_vm5, %v1277_v28, %v1279_v0  ;;  %v4363_v41 = vpack.c.bf16 %v1604_v54, %v1594_v18  ;;  %v1705_v7 = vld [vmem:[#allocation3 + $0x418] sm:$0xff]  ;;  %v1714_v53 = vld [vmem:[#allocation3 + $0x460] sm:$0xff]  ;;  %v1588_v57 = vld [vmem:[#allocation3 + $0x70] sm:$0xff] }
 0x207   : > { %v4365_v28 = vpack.c.bf16 %v1625_v9, %v1615_v30  ;;  %v4371_v39 = vpack.c.bf16 %v1644_v62, %v1634_v47  ;;  %v4373_v48 = vpack.c.bf16 %v1665_v63, %v1655_v60  ;;  %v4375_v8 = vpack.c.bf16 %v1664_v3, %v1654_v42  ;;  %v1589_v51 = vld [vmem:[#allocation3 + $0x78] sm:$0xff]  ;;  %v1618_v21 = vld [vmem:[#allocation3 + $0x160] sm:$0xff]  ;;  %v1628_v38 = vld [vmem:[#allocation3 + $0x1b0] sm:$0xff] }
 0x208   : > { %v1170_v13 = vadd.f32 %v1168_v2, %v1162_v58  ;;  %v4377_v1 = vpack.c.bf16 %v1685_v35, %v1675_v44  ;;  %v4379_v2 = vpack.c.bf16 %v1684_v61, %v1674_v36  ;;  %v4381_v59 = vpack.c.bf16 %v1705_v7, %v1695_v22  ;;  %v1715_v58 = vld [vmem:[#allocation3 + $0x468] sm:$0xff]  ;;  %v1638_v54 = vld [vmem:[#allocation3 + $0x200] sm:$0xff]  ;;  %v1648_v30 = vld [vmem:[#allocation3 + $0x250] sm:$0xff] }
 0x209   : > { %v4385_v56 = vpack.c.bf16 %v1725_v27, %v1715_v58  ;;  %v1659_v9 = vld [vmem:[#allocation3 + $0x2a8] sm:$0xff]  ;;  %v1658_v52 = vld [vmem:[#allocation3 + $0x2a0] sm:$0xff]  ;;  %v1709_v63 = vld [vmem:[#allocation3 + $0x438] sm:$0xff]  ;;  %vm5248_vm2 = vmmov 0   ;;  %vm3623_vm3 = vcmask 130048  }
 0x20a   : > { %v1189_v15 = vadd.f32 %v1185_v17, %v1170_v13  ;;  %v4383_v17 = vpack.c.bf16 %v1704_v16, %v1694_v50  ;;  %v1724_v13 = vld [vmem:[#allocation3 + $0x4b0] sm:$0xff]  ;;  %v1678_v62 = vld [vmem:[#allocation3 + $0x340] sm:$0xff]  ;;  %v1699_v60 = vld [vmem:[#allocation3 + $0x3e8] sm:$0xff] }
 0x20b   : > { %v4387_v25 = vpack.c.bf16 %v1724_v13, %v1714_v53  ;;  %v1698_v42 = vld [vmem:[#allocation3 + $0x3e0] sm:$0xff]  ;;  %v1708_v3 = vld [vmem:[#allocation3 + $0x430] sm:$0xff]  ;;  %v1719_v44 = vld [vmem:[#allocation3 + $0x488] sm:$0xff] }
 0x20c   : > { %v1208_v20 = vadd.f32 %v1204_v4, %v1189_v15  ;;  %v1579_v4 = vld [vmem:[#allocation3 + $0x28] sm:$0xff]  ;;  %v1729_v35 = vld [vmem:[#allocation3 + $0x4d8] sm:$0xff]  ;;  %v1718_v36 = vld [vmem:[#allocation3 + $0x480] sm:$0xff] }
 0x20d   : > { %v4421_v15 = vpack.c.bf16 %v1589_v51, %v1579_v4  ;;  %v1728_v61 = vld [vmem:[#allocation3 + $0x4d0] sm:$0xff]  ;;  %v1583_v22 = vld [vmem:[#allocation3 + $0x48] sm:$0xff]  ;;  %v1593_v7 = vld [vmem:[#allocation3 + $0x98] sm:$0xff] }
 0x20e   : > { %v1227_v45 = vadd.f32 %v1223_v12, %v1208_v20  ;;  %v1578_v12 = vld [vmem:[#allocation3 + $0x20] sm:$0xff]  ;;  %v1599_v20 = vld [vmem:[#allocation3 + $0xc8] sm:$0xff]  ;;  %v1592_v16 = vld [vmem:[#allocation3 + $0x90] sm:$0xff] }
 0x20f   : > { %v4423_v0 = vpack.c.bf16 %v1588_v57, %v1578_v12  ;;  %v1582_v50 = vld [vmem:[#allocation3 + $0x40] sm:$0xff]  ;;  %v1603_v58 = vld [vmem:[#allocation3 + $0xe8] sm:$0xff]  ;;  %v1613_v27 = vld [vmem:[#allocation3 + $0x138] sm:$0xff] }
 0x210   : > { %v1246_v43 = vadd.f32 %v1242_v40, %v1227_v45  ;;  %v1609_v40 = vld [vmem:[#allocation3 + $0x118] sm:$0xff]  ;;  %v1602_v53 = vld [vmem:[#allocation3 + $0xe0] sm:$0xff]  ;;  %v1612_v13 = vld [vmem:[#allocation3 + $0x130] sm:$0xff] }
 0x211   : > { %v4425_v45 = vpack.c.bf16 %v1609_v40, %v1599_v20  ;;  %v1623_v4 = vld [vmem:[#allocation3 + $0x188] sm:$0xff]  ;;  %v1633_v51 = vld [vmem:[#allocation3 + $0x1d8] sm:$0xff]  ;;  %v1622_v57 = vld [vmem:[#allocation3 + $0x180] sm:$0xff] }
 0x212   : > { %v1265_v32 = vadd.f32 %v1261_v19, %v1246_v43  ;;  %v1598_v19 = vld [vmem:[#allocation3 + $0xc0] sm:$0xff]  ;;  %v1608_v43 = vld [vmem:[#allocation3 + $0x110] sm:$0xff]  ;;  %v4493_v12 = vpack.c.bf16 %v1633_v51, %v1623_v4  ;;  %v1643_v40 = vld [vmem:[#allocation3 + $0x228] sm:$0xff] }
 0x213   : > { %v4427_v10 = vpack.c.bf16 %v1608_v43, %v1598_v19  ;;  %v1632_v20 = vld [vmem:[#allocation3 + $0x1d0] sm:$0xff]  ;;  %v1642_v43 = vld [vmem:[#allocation3 + $0x220] sm:$0xff]  ;;  %v1421_v4 = vld [vmem:[%s6621_s7 + $0x78] sm:$0xff] }
 0x214   : > { %v1284_v34 = vadd.f32 %v1280_v6, %v1265_v32  ;;  %v1619_v6 = vld [vmem:[#allocation3 + $0x168] sm:$0xff]  ;;  %v1629_v32 = vld [vmem:[#allocation3 + $0x1b8] sm:$0xff] }
 0x215   : > { %v4429_v33 = vpack.c.bf16 %v1629_v32, %v1619_v6  ;;  %v1652_v6 = vld [vmem:[#allocation3 + $0x270] sm:$0xff]  ;;  %v1663_v32 = vld [vmem:[#allocation3 + $0x2c8] sm:$0xff] }
 0x216   : > { %v6085_v24 = vadd.f32 %v3835_v23, %v1284_v34  ;;  %v4369_v23 = vpack.c.bf16 %v1645_v14, %v1635_v29  ;;  %v1639_v34 = vld [vmem:[#allocation3 + $0x208] sm:$0xff]  ;;  %v1668_v29 = vld [vmem:[#allocation3 + $0x2f0] sm:$0xff] }
 0x217   : > { %v1679_v14 = vld [vmem:[#allocation3 + $0x348] sm:$0xff] }
 0x218   : > { %4039 = vmatmul.mubr.f32.vlgmr.msra.gmra.mrb[0].mxu0 %v6085_v24 }
 0x219   : > { %4360 = vmatpush1.bf16.msra.mxu0 %v4359_v49  ;;  %1852 = vmatprep.mubr.f32.mxu0 %v6720_v55  ;;  %v1649_v49 = vld [vmem:[#allocation3 + $0x258] sm:$0xff] }
 0x21a   : > { %4362 = vmatprep.subr.bf16.mxu0 %v4361_v31  ;;  %v4431_v31 = vpack.c.bf16 %v1628_v38, %v1618_v21  ;;  %v4433_v18 = vpack.c.bf16 %v1649_v49, %v1639_v34  ;;  %v1662_v38 = vld [vmem:[#allocation3 + $0x2c0] sm:$0xff]  ;;  %v1672_v34 = vld [vmem:[#allocation3 + $0x310] sm:$0xff]  ;;  %v1683_v49 = vld [vmem:[#allocation3 + $0x368] sm:$0xff] }
 0x21d   : > { %4364 = vmatpush1.bf16.msra.mxu0 %v4363_v41  ;;  %v1669_v41 = vld [vmem:[#allocation3 + $0x2f8] sm:$0xff] }
 0x21e   : > { %4366 = vmatprep.subr.bf16.mxu0 %v4365_v28  ;;  %v4435_v28 = vpack.c.bf16 %v1648_v30, %v1638_v54  ;;  %v4437_v11 = vpack.c.bf16 %v1669_v41, %v1659_v9  ;;  %v1682_v30 = vld [vmem:[#allocation3 + $0x360] sm:$0xff]  ;;  %v1692_v9 = vld [vmem:[#allocation3 + $0x3b0] sm:$0xff]  ;;  %v1703_v41 = vld [vmem:[#allocation3 + $0x408] sm:$0xff] }
 0x221   : > { %4368 = vmatpush1.bf16.msra.mxu0 %v4367_v37  ;;  %v1689_v37 = vld [vmem:[#allocation3 + $0x398] sm:$0xff] }
 0x222   : > { %4370 = vmatprep.subr.bf16.mxu0 %v4369_v23  ;;  %v4439_v23 = vpack.c.bf16 %v1668_v29, %v1658_v52  ;;  %v4441_v47 = vpack.c.bf16 %v1689_v37, %v1679_v14  ;;  %v1702_v29 = vld [vmem:[#allocation3 + $0x400] sm:$0xff]  ;;  %v1712_v14 = vld [vmem:[#allocation3 + $0x450] sm:$0xff]  ;;  %v1723_v37 = vld [vmem:[#allocation3 + $0x4a8] sm:$0xff] }
 0x225   : > { %4372 = vmatpush1.bf16.msra.mxu0 %v4371_v39 }
 0x226   : > { %4374 = vmatprep.subr.bf16.mxu0 %v4373_v48  ;;  %v4445_v48 = vpack.c.bf16 %v1709_v63, %v1699_v60  ;;  %v1732_v60 = vld [vmem:[#allocation3 + $0x4f0] sm:$0xff] }
 0x229   : > { %4376 = vmatpush1.bf16.msra.mxu0 %v4375_v8  ;;  %v4447_v8 = vpack.c.bf16 %v1708_v3, %v1698_v42  ;;  %v1408_v3 = vld [vmem:[%s6621_s7 + $0x10] sm:$0xff] }
 0x22a   : > { %4378 = vmatprep.subr.bf16.mxu0 %v4377_v1  ;;  %v4449_v1 = vpack.c.bf16 %v1729_v35, %v1719_v44  ;;  %v1409_v44 = vld [vmem:[%s6621_s7 + $0x18] sm:$0xff] }
 0x22b   : > { %v4329_v35 = vpack.c.bf16 %v1409_v44, %v1408_v3 }
 0x22d   : > { %4380 = vmatpush1.bf16.msra.mxu0 %v4379_v2  ;;  %v4451_v2 = vpack.c.bf16 %v1728_v61, %v1718_v36  ;;  %v1412_v36 = vld [vmem:[%s6621_s7 + $0x30] sm:$0xff] }
 0x22e   : > { %4382 = vmatprep.subr.bf16.mxu0 %v4381_v59  ;;  %v4485_v59 = vpack.c.bf16 %v1593_v7, %v1583_v22  ;;  %v1413_v22 = vld [vmem:[%s6621_s7 + $0x38] sm:$0xff] }
 0x22f   : > { %v4337_v7 = vpack.c.bf16 %v1413_v22, %v1412_v36  ;;  %v1647_v22 = vld [vmem:[#allocation3 + $0x248] sm:$0xff] }
 0x231   : > { %4384 = vmatpush1.bf16.msra.mxu0 %v4383_v17  ;;  %v4487_v17 = vpack.c.bf16 %v1592_v16, %v1582_v50  ;;  %v1416_v16 = vld [vmem:[%s6621_s7 + $0x50] sm:$0xff] }
 0x232   : > { %4386 = vmatprep.subr.bf16.mxu0 %v4385_v56  ;;  %v4489_v56 = vpack.c.bf16 %v1613_v27, %v1603_v58  ;;  %v1417_v58 = vld [vmem:[%s6621_s7 + $0x58] sm:$0xff] }
 0x233   : > { %v4345_v27 = vpack.c.bf16 %v1417_v58, %v1416_v16  ;;  %v1646_v16 = vld [vmem:[#allocation3 + $0x240] sm:$0xff] }
 0x235   : > { %4388 = vmatpush1.bf16.msra.mxu0 %v4387_v25  ;;  %v6094_v25 = vld [vmem:[#allocation2] sm:$0xff] }
 0x236   : > { %4422 = vmatprep.subr.bf16.mxu0 %v4421_v15  ;;  %v4491_v15 = vpack.c.bf16 %v1612_v13, %v1602_v53  ;;  %v1420_v13 = vld [vmem:[%s6621_s7 + $0x70] sm:$0xff] }
 0x237   : > { %v4353_v51 = vpack.c.bf16 %v1421_v4, %v1420_v13  ;;  %v1656_v13 = vld [vmem:[#allocation3 + $0x290] sm:$0xff]  ;;  %v1666_v4 = vld [vmem:[#allocation3 + $0x2e0] sm:$0xff] }
 0x238   : > { %1853 = vmatmul.mubr.f32.vlgmr.msra.gmra.mrb[2].mxu0 %v6053_v26 }
 0x239   : > { %4424 = vmatpush1.bf16.msra.mxu0 %v4423_v0  ;;  %1858 = vmatprep.mubr.f32.mxu0 %v6720_v55  ;;  %v1653_v0 = vld [vmem:[#allocation3 + $0x278] sm:$0xff] }
 0x23a   : > { %4426 = vmatprep.subr.bf16.mxu0 %v4425_v45  ;;  %v4495_v45 = vpack.c.bf16 %v1632_v20, %v1622_v57  ;;  %v4497_v19 = vpack.c.bf16 %v1653_v0, %v1643_v40  ;;  %v3836_v20 = vld [vmem:[%s6620_s6] ss:$0 sm:$0xff] }
 0x23c   : > { %1859 = vmatmul.mubr.f32.gmra.mrb[4].mxu0 %v6085_v24 }
 0x23d   : > { %4428 = vmatpush1.bf16.msra.mxu0 %v4427_v10  ;;  %2006 = vmatprep.mubr.f32.mxu0 %v6720_v55  ;;  %v1688_v55 = vld [vmem:[#allocation3 + $0x390] sm:$0xff]  ;;  %v1673_v10 = vld [vmem:[#allocation3 + $0x318] sm:$0xff] }
 0x23e   : > { %4430 = vmatprep.subr.bf16.mxu0 %v4429_v33  ;;  %v4443_v39 = vpack.c.bf16 %v1688_v55, %v1678_v62  ;;  %v4499_v33 = vpack.c.bf16 %v1652_v6, %v1642_v43  ;;  %v4501_v21 = vpack.c.bf16 %v1673_v10, %v1663_v32  ;;  %v1722_v55 = vld [vmem:[#allocation3 + $0x4a0] sm:$0xff] }
 0x23f   : > { %v4515_v63 = vpack.c.bf16 %v1732_v60, %v1722_v55  ;;  %v1617_v60 = vld [vmem:[#allocation3 + $0x158] sm:$0xff] }
 0x241   : > { %4432 = vmatpush1.bf16.msra.mxu0 %v4431_v31  ;;  %v1693_v31 = vld [vmem:[#allocation3 + $0x3b8] sm:$0xff] }
 0x242   : > { %4434 = vmatprep.subr.bf16.mxu0 %v4433_v18  ;;  %v4503_v18 = vpack.c.bf16 %v1672_v34, %v1662_v38  ;;  %v4505_v54 = vpack.c.bf16 %v1693_v31, %v1683_v49  ;;  %v6156_v49 = vld [vmem:[%s6624_s10] sm:$0xff] }
 0x243   : > { %v1576_v31 = vld [vmem:[#allocation3 + $0x10] sm:$0xff] }
 0x245   : > { %4436 = vmatpush1.bf16.msra.mxu0 %v4435_v28  ;;  %v1713_v28 = vld [vmem:[#allocation3 + $0x458] sm:$0xff] }
 0x246   : > { %4438 = vmatprep.subr.bf16.mxu0 %v4437_v11  ;;  %v4507_v11 = vpack.c.bf16 %v1692_v9, %v1682_v30  ;;  %v4509_v52 = vpack.c.bf16 %v1713_v28, %v1703_v41  ;;  %v1745_v30 = vrot.slane %v6156_v49, %v5566_v46  ;;  %v1597_v9 = vld [vmem:[#allocation3 + $0xb8] sm:$0xff]  ;;  %v1607_v41 = vld [vmem:[#allocation3 + $0x108] sm:$0xff] }
 0x249   : > { %4440 = vmatpush1.bf16.msra.mxu0 %v4439_v23  ;;  %v1733_v23 = vld [vmem:[#allocation3 + $0x4f8] sm:$0xff] }
 0x24a   : > { %4442 = vmatprep.subr.bf16.mxu0 %v4441_v47  ;;  %v4511_v47 = vpack.c.bf16 %v1712_v14, %v1702_v29  ;;  %v4513_v62 = vpack.c.bf16 %v1733_v23, %v1723_v37  ;;  %v4393_v23 = vpack.c.bf16 %v1607_v41, %v1597_v9  ;;  %v1726_v9 = vld [vmem:[#allocation3 + $0x4c0] sm:$0xff]  ;;  %v1581_v41 = vld [vmem:[#allocation3 + $0x38] sm:$0xff] }
 0x24d   : > { %4444 = vmatpush1.bf16.msra.mxu0 %v4443_v39  ;;  %v1406_v39 = vld [vmem:[%s6621_s7] sm:$0xff] }
 0x24e   : > { %4446 = vmatprep.subr.bf16.mxu0 %v4445_v48  ;;  %v1407_v48 = vld [vmem:[%s6621_s7 + $0x8] sm:$0xff] }
 0x24f   : > { %v4325_v42 = vpack.c.bf16 %v1407_v48, %v1406_v39 }
 0x251   : > { %4448 = vmatpush1.bf16.msra.mxu0 %v4447_v8  ;;  %4326 = vmatprep.subr.bf16.mxu1 %v4325_v42  ;;  %v1410_v8 = vld [vmem:[%s6621_s7 + $0x20] sm:$0xff] }
 0x252   : > { %4450 = vmatprep.subr.bf16.mxu0 %v4449_v1  ;;  %4328 = vmatpush3.bf16.msra.mxu1 %v4325_v42  ;;  %v1411_v1 = vld [vmem:[%s6621_s7 + $0x28] sm:$0xff] }
 0x253   : > { %4330 = vmatprep.subr.bf16.mxu1 %v4329_v35  ;;  %v4333_v61 = vpack.c.bf16 %v1411_v1, %v1410_v8  ;;  %v1626_v8 = vld [vmem:[#allocation3 + $0x1a0] sm:$0xff] }
 0x255   : > { %4452 = vmatpush1.bf16.msra.mxu0 %v4451_v2  ;;  %v1414_v2 = vld [vmem:[%s6621_s7 + $0x40] sm:$0xff] }
 0x256   : > { %4486 = vmatprep.subr.bf16.mxu0 %v4485_v59  ;;  %4332 = vmatpush3.bf16.msra.mxu1 %v4329_v35  ;;  %v1415_v59 = vld [vmem:[%s6621_s7 + $0x48] sm:$0xff]  ;;  %v1616_v35 = vld [vmem:[#allocation3 + $0x150] sm:$0xff] }
 0x257   : > { %4334 = vmatprep.subr.bf16.mxu1 %v4333_v61  ;;  %v4341_v50 = vpack.c.bf16 %v1415_v59, %v1414_v2  ;;  %v4399_v2 = vpack.c.bf16 %v1626_v8, %v1616_v35 }
 0x258   : > { %2007 = vmatmul.mubr.f32.vlgmr.msra.gmra.mrb[6].mxu0 %v6053_v26 }
 0x259   : > { %4488 = vmatpush1.bf16.msra.mxu0 %v4487_v17  ;;  %2012 = vmatprep.mubr.f32.mxu0 %v6094_v25  ;;  %v1418_v17 = vld [vmem:[%s6621_s7 + $0x60] sm:$0xff] }
 0x25a   : > { %4490 = vmatprep.subr.bf16.mxu0 %v4489_v56  ;;  %4336 = vmatpush3.bf16.msra.mxu1 %v4333_v61  ;;  %v1419_v56 = vld [vmem:[%s6621_s7 + $0x68] sm:$0xff] }
 0x25b   : > { %4338 = vmatprep.subr.bf16.mxu1 %v4337_v7  ;;  %v4349_v53 = vpack.c.bf16 %v1419_v56, %v1418_v17  ;;  %v1637_v61 = vld [vmem:[#allocation3 + $0x1f8] sm:$0xff]  ;;  %v1667_v17 = vld [vmem:[#allocation3 + $0x2e8] sm:$0xff] }
 0x25c   : > { %2013 = vmatmul.mubr.f32.gmra.mrb[8].mxu0 %v6085_v24  ;;  %v4401_v59 = vpack.c.bf16 %v1647_v22, %v1637_v61  ;;  %v1600_v61 = vld [vmem:[#allocation3 + $0xd0] sm:$0xff]  ;;  %v1610_v22 = vld [vmem:[#allocation3 + $0x120] sm:$0xff] }
 0x25d   : > { %4492 = vmatpush1.bf16.msra.mxu0 %v4491_v15  ;;  %2160 = vmatprep.mubr.f32.mxu0 %v6094_v25  ;;  %v1577_v15 = vld [vmem:[#allocation3 + $0x18] sm:$0xff] }
 0x25e   : > { %4494 = vmatprep.subr.bf16.mxu0 %v4493_v12  ;;  %4340 = vmatpush3.bf16.msra.mxu1 %v4337_v7  ;;  %v1587_v12 = vld [vmem:[#allocation3 + $0x68] sm:$0xff] }
 0x25f   : > { %4342 = vmatprep.subr.bf16.mxu1 %v4341_v50  ;;  %v4389_v57 = vpack.c.bf16 %v1587_v12, %v1577_v15  ;;  %v1687_v15 = vld [vmem:[#allocation3 + $0x388] sm:$0xff]  ;;  %v4407_v12 = vpack.c.bf16 %v1666_v4, %v1656_v13  ;;  %v1620_v13 = vld [vmem:[#allocation3 + $0x170] sm:$0xff]  ;;  %v1630_v4 = vld [vmem:[#allocation3 + $0x1c0] sm:$0xff] }
 0x261   : > { %4496 = vmatpush1.bf16.msra.mxu0 %v4495_v45 }
 0x262   : > { %4498 = vmatprep.subr.bf16.mxu0 %v4497_v19  ;;  %4344 = vmatpush3.bf16.msra.mxu1 %v4341_v50  ;;  %v1636_v50 = vld [vmem:[#allocation3 + $0x1f0] sm:$0xff] }
 0x263   : > { %4346 = vmatprep.subr.bf16.mxu1 %v4345_v27  ;;  %v4403_v56 = vpack.c.bf16 %v1646_v16, %v1636_v50  ;;  %v1631_v50 = vld [vmem:[#allocation3 + $0x1c8] sm:$0xff] }
 0x265   : > { %4500 = vmatpush1.bf16.msra.mxu0 %v4499_v33 }
 0x266   : > { %4502 = vmatprep.subr.bf16.mxu0 %v4501_v21  ;;  %4348 = vmatpush3.bf16.msra.mxu1 %v4345_v27  ;;  %v1657_v27 = vld [vmem:[#allocation3 + $0x298] sm:$0xff] }
 0x267   : > { %4350 = vmatprep.subr.bf16.mxu1 %v4349_v53 }
 0x269   : > { %4504 = vmatpush1.bf16.msra.mxu0 %v4503_v18  ;;  %v1586_v18 = vld [vmem:[#allocation3 + $0x60] sm:$0xff] }
 0x26a   : > { %4506 = vmatprep.subr.bf16.mxu0 %v4505_v54  ;;  %4352 = vmatpush3.bf16.msra.mxu1 %v4349_v53  ;;  %v4391_v29 = vpack.c.bf16 %v1586_v18, %v1576_v31  ;;  %v4405_v53 = vpack.c.bf16 %v1667_v17, %v1657_v27  ;;  %v4459_v17 = vpack.c.bf16 %v1610_v22, %v1600_v61  ;;  %v6200_v61 = vld [vmem:[%s6624_s10 + $0x8] sm:$0x3]  ;;  %v6722_v22 = vld [vmem:[#allocation23_spill] sm:$0xff] }
 0x26b   : > { %4354 = vmatprep.subr.bf16.mxu1 %v4353_v51 }
 0x26d   : > { %4508 = vmatpush1.bf16.msra.mxu0 %v4507_v11 }
 0x26e   : > { %4510 = vmatprep.subr.bf16.mxu0 %v4509_v52  ;;  %4356 = vmatpush3.bf16.msra.mxu1 %v4353_v51  ;;  %v1677_v51 = vld [vmem:[#allocation3 + $0x338] sm:$0xff] }
 0x26f   : > { %4390 = vmatprep.subr.bf16.mxu1 %v4389_v57  ;;  %v4409_v57 = vpack.c.bf16 %v1687_v15, %v1677_v51 }
 0x271   : > { %4512 = vmatpush1.bf16.msra.mxu0 %v4511_v47  ;;  %v1596_v47 = vld [vmem:[#allocation3 + $0xb0] sm:$0xff] }
 0x272   : > { %4514 = vmatprep.subr.bf16.mxu0 %v4513_v62  ;;  %v1606_v62 = vld [vmem:[#allocation3 + $0x100] sm:$0xff] }
 0x273   : > { %v4395_v42 = vpack.c.bf16 %v1606_v62, %v1596_v47  ;;  %v6721_v47 = vld [vmem:[#allocation24_spill] sm:$0xff] }
 0x274   : > { %v1761_v62 = vrot.slane %v6156_v49, %v6721_v47 }
 0x275   : > { %4516 = vmatpush1.bf16.msra.mxu0 %v4515_v63  ;;  %v1627_v63 = vld [vmem:[#allocation3 + $0x1a8] sm:$0xff] }
 0x276   : > { %v4397_v44 = vpack.c.bf16 %v1627_v63, %v1617_v60  ;;  %v1601_v60 = vld [vmem:[#allocation3 + $0xd8] sm:$0xff]  ;;  %v1611_v63 = vld [vmem:[#allocation3 + $0x128] sm:$0xff] }
 0x278   : > { %2161 = vmatmul.mubr.f32.vlgmr.msra.gmra.mrb[10].mxu0 %v6053_v26 }
 0x279   : > { %2166 = vmatprep.mubr.f32.mxu0 %v6094_v25 }
 0x27c   : > { %2167 = vmatmul.mubr.f32.gmra.mrb[12].mxu0 %v6085_v24 }
 0x2eb   : > { %v4040_v40 = vpop.f32.mrb[0].mxu0 }
 0x2ec   : > { %v1389_v0 = vadd.f32 %v4040_v40, %v3836_v20  ;;  %v1383_v45 = vpop.f32.mrb[1].mxu0  ;;  %v1686_v40 = vld [vmem:[#allocation3 + $0x380] sm:$0xff] }
 0x2ed   : > { %v1384_v19 = vadd.f32 %v3836_v20, %v1383_v45  ;;  %v1676_v20 = vld [vmem:[#allocation3 + $0x330] sm:$0xff]  ;;  %v1697_v45 = vld [vmem:[#allocation3 + $0x3d8] sm:$0xff] }
 0x2ee   : > { %v1393_v43 = vsub.f32 0.0, %v1389_v0 }
 0x2ef   : > { %v1392_v6 = vsub.f32 0.0, %v1384_v19 }
 0x2f0   : > { %v1396_v32 = vmul.f32 1.442695, %v1393_v43 }
 0x2f1   : > { %v1394_v10 = vmul.f32 1.442695, %v1392_v6  ;;  %v4411_v6 = vpack.c.bf16 %v1686_v40, %v1676_v20  ;;  %v4463_v20 = vpack.c.bf16 %v1630_v4, %v1620_v13 }
 0x2f2   : > { %4964 = vpow2.f32 %v1396_v32 }
 0x2f3   : > { %4966 = vpow2.f32 %v1394_v10  ;;  %v1696_v10 = vld [vmem:[#allocation3 + $0x3d0] sm:$0xff] }
 0x2fc   : > { %v4965_v33 = vpop.eup %4964 }
 0x2fd   : > { %v4967_v21 = vpop.eup %4966  ;;  %v1399_v38 = vadd.f32 1.0, %v4965_v33  ;;  %v1706_v33 = vld [vmem:[#allocation3 + $0x420] sm:$0xff] }
 0x2fe   : > { %v1398_v34 = vadd.f32 1.0, %v4967_v21  ;;  %v4415_v18 = vpack.c.bf16 %v1706_v33, %v1696_v10  ;;  %v1660_v33 = vld [vmem:[#allocation3 + $0x2b0] sm:$0xff] }
 0x2ff   : > { %4968 = vrcp.f32 %v1399_v38  ;;  %v1717_v38 = vld [vmem:[#allocation3 + $0x478] sm:$0xff] }
 0x300   : > { %4970 = vrcp.f32 %v1398_v34  ;;  %v1727_v34 = vld [vmem:[#allocation3 + $0x4c8] sm:$0xff] }
 0x309   : > { %v4969_v54 = vpop.eup %4968 }
 0x30a   : > { %v4971_v28 = vpop.eup %4970  ;;  %v1405_v14 = vmul.f32 %v4969_v54, %v1389_v0  ;;  %v4417_v54 = vpack.c.bf16 %v1727_v34, %v1717_v38  ;;  %v1681_v38 = vld [vmem:[#allocation3 + $0x358] sm:$0xff]  ;;  %v1691_v34 = vld [vmem:[#allocation3 + $0x3a8] sm:$0xff] }
 0x30b   : > { %v6160_v11 = vpop.f32.mrb[2].mxu0  ;;  %v1404_v52 = vmul.f32 %v4971_v28, %v1384_v19  ;;  %v1707_v19 = vld [vmem:[#allocation3 + $0x428] sm:$0xff] }
 0x30c   : > { %v1856_v37 = vpop.f32.mrb[3].mxu0  ;;  %v4413_v32 = vpack.c.bf16 %v1707_v19, %v1697_v45  ;;  %v1591_v28 = vld [vmem:[#allocation3 + $0x88] sm:$0xff]  ;;  %v1650_v45 = vld [vmem:[#allocation3 + $0x260] sm:$0xff] }
 0x30d   : > { %v6162_v55 = vadd.f32 %v1856_v37, %v1745_v30  ;;  %4073 = vmatprep.mubr.f32.mxu1 %v1404_v52  ;;  %v1741_v52 = vrot.slane %v6156_v49, %v5609_v5  ;;  %v1580_v37 = vld [vmem:[#allocation3 + $0x30] sm:$0xff] }
 0x30e   : > { %4074 = vmatmul.mubr.f32.vlgmr.msra.gmra.mrb[0].mxu1 %v1405_v14  ;;  %v4453_v14 = vpack.c.bf16 %v1591_v28, %v1581_v41  ;;  %v1701_v41 = vld [vmem:[#allocation3 + $0x3f8] sm:$0xff]  ;;  %v1711_v28 = vld [vmem:[#allocation3 + $0x448] sm:$0xff] }
 0x30f   : > { %v2173_v39 = vsub.f32 0.0, %v6162_v55  ;;  %v6165_v48 = vpop.f32.mrb[4].mxu0  ;;  %4392 = vmatpush1.bf16.msra.mxu1 %v4391_v29  ;;  %1929 = vmatprep.mubr.f32.mxu1 %v6094_v25 }
 0x310   : > { %v1862_v3 = vpop.f32.mrb[5].mxu0  ;;  %4394 = vmatprep.subr.bf16.mxu1 %v4393_v23  ;;  %v1590_v23 = vld [vmem:[#allocation3 + $0x80] sm:$0xff] }
 0x311   : > { %v2175_v1 = vmul.f32 1.442695, %v2173_v39  ;;  %v6168_v36 = vadd.f32 %v1862_v3, %v1745_v30  ;;  %v1716_v30 = vld [vmem:[#allocation3 + $0x470] sm:$0xff]  ;;  %v4455_v35 = vpack.c.bf16 %v1590_v23, %v1580_v37  ;;  %v1710_v23 = vld [vmem:[#allocation3 + $0x440] sm:$0xff] }
 0x312   : > { %v4419_v29 = vpack.c.bf16 %v1726_v9, %v1716_v30  ;;  %v1690_v30 = vld [vmem:[#allocation3 + $0x3a0] sm:$0xff]  ;;  %v1700_v37 = vld [vmem:[#allocation3 + $0x3f0] sm:$0xff] }
 0x313   : > { %4972 = vpow2.f32 %v2175_v1  ;;  %v2174_v7 = vsub.f32 0.0, %v6168_v36  ;;  %4396 = vmatpush1.bf16.msra.mxu1 %v4395_v42  ;;  %v1855_v42 = vadd.f32 %v6160_v11, %v1741_v52  ;;  %v4457_v1 = vpack.c.bf16 %v1611_v63, %v1601_v60  ;;  %v1731_v60 = vld [vmem:[#allocation3 + $0x4e8] sm:$0xff] }
 0x314   : > { %4398 = vmatprep.subr.bf16.mxu1 %v4397_v44  ;;  %v1861_v11 = vadd.f32 %v6165_v48, %v1741_v52  ;;  %v1651_v48 = vld [vmem:[#allocation3 + $0x268] sm:$0xff] }
 0x315   : > { %v2177_v58 = vmul.f32 1.442695, %v2174_v7 }
 0x317   : > { %4974 = vpow2.f32 %v2177_v58  ;;  %4400 = vmatpush1.bf16.msra.mxu1 %v4399_v2 }
 0x318   : > { %4402 = vmatprep.subr.bf16.mxu1 %v4401_v59  ;;  %v1621_v59 = vld [vmem:[#allocation3 + $0x178] sm:$0xff] }
 0x31b   : > { %4404 = vmatpush1.bf16.msra.mxu1 %v4403_v56 }
 0x31c   : > { %4406 = vmatprep.subr.bf16.mxu1 %v4405_v53  ;;  %v4461_v53 = vpack.c.bf16 %v1631_v50, %v1621_v59  ;;  %v1757_v59 = vrot.slane %v6156_v49, %v6722_v22 }
 0x31d   : > { %v4973_v0 = vpop.eup %4972 }
 0x31e   : > { %v2179_v43 = vadd.f32 1.0, %v4973_v0  ;;  %v1640_v0 = vld [vmem:[#allocation3 + $0x210] sm:$0xff] }
 0x31f   : > { %4408 = vmatpush1.bf16.msra.mxu1 %v4407_v12  ;;  %v1641_v12 = vld [vmem:[#allocation3 + $0x218] sm:$0xff] }
 0x320   : > { %4976 = vrcp.f32 %v2179_v43  ;;  %4410 = vmatprep.subr.bf16.mxu1 %v4409_v57  ;;  %v4465_v40 = vpack.c.bf16 %v1651_v48, %v1641_v12  ;;  %v1661_v43 = vld [vmem:[#allocation3 + $0x2b8] sm:$0xff] }
 0x321   : > { %v4975_v21 = vpop.eup %4974 }
 0x322   : > { %v2180_v31 = vadd.f32 1.0, %v4975_v21  ;;  %v1670_v21 = vld [vmem:[#allocation3 + $0x300] sm:$0xff] }
 0x323   : > { %4412 = vmatpush1.bf16.msra.mxu1 %v4411_v6  ;;  %v1671_v6 = vld [vmem:[#allocation3 + $0x308] sm:$0xff] }
 0x324   : > { %4978 = vrcp.f32 %v2180_v31  ;;  %4414 = vmatprep.subr.bf16.mxu1 %v4413_v32  ;;  %v4467_v32 = vpack.c.bf16 %v1650_v45, %v1640_v0  ;;  %v4469_v10 = vpack.c.bf16 %v1671_v6, %v1661_v43  ;;  %v4471_v31 = vpack.c.bf16 %v1670_v21, %v1660_v33  ;;  %v2200_v43 = vld [vmem:[#allocation6 + $0x58] sm:$0xff] }
 0x327   : > { %4416 = vmatpush1.bf16.msra.mxu1 %v4415_v18  ;;  %v4473_v18 = vpack.c.bf16 %v1691_v34, %v1681_v38  ;;  %v2197_v34 = vld [vmem:[#allocation6 + $0x40] sm:$0xff] }
 0x328   : > { %4418 = vmatprep.subr.bf16.mxu1 %v4417_v54  ;;  %v1680_v54 = vld [vmem:[#allocation3 + $0x350] sm:$0xff] }
 0x32a   : > { %v4977_v39 = vpop.eup %4976 }
 0x32b   : > { %v2185_v3 = vmul.f32 %v4977_v39, %v6162_v55  ;;  %4420 = vmatpush1.bf16.msra.mxu1 %v4419_v29  ;;  %v6177_v44 = vpop.f32.mrb[6].mxu0  ;;  %v4475_v29 = vpack.c.bf16 %v1690_v30, %v1680_v54  ;;  %v4479_v39 = vpack.c.bf16 %v1710_v23, %v1700_v37  ;;  %v2202_v30 = vld [vmem:[#allocation6 + $0x68] sm:$0xff]  ;;  %v2208_v23 = vld [vmem:[#allocation6 + $0x98] sm:$0xff] }
 0x32c   : > { %v2010_v8 = vpop.f32.mrb[7].mxu0  ;;  %4454 = vmatprep.subr.bf16.mxu1 %v4453_v14  ;;  %v4477_v14 = vpack.c.bf16 %v1711_v28, %v1701_v41  ;;  %v2009_v13 = vadd.f32 %v6177_v44, %v1757_v59  ;;  %v2206_v37 = vld [vmem:[#allocation6 + $0x88] sm:$0xff] }
 0x32d   : > { %v6179_v7 = vmul.f32 %v2185_v3, %v1855_v42  ;;  %v6181_v2 = vadd.f32 %v2010_v8, %v1761_v62  ;;  %v1720_v3 = vld [vmem:[#allocation3 + $0x490] sm:$0xff]  ;;  %v2190_v8 = vld [vmem:[#allocation6 + $0x8] sm:$0xff] }
 0x32e   : > { %v4979_v16 = vpop.eup %4978  ;;  %1930 = vmatmul.mubr.f32.vlgmr.msra.gmra.mrb[2].mxu1 %v6053_v26 }
 0x32f   : > { %v2186_v55 = vmul.f32 %v4979_v16, %v6168_v36  ;;  %v2705_v58 = vsub.f32 0.0, %v6181_v2  ;;  %v6187_v27 = vpop.f32.mrb[8].mxu0  ;;  %4456 = vmatpush1.bf16.msra.mxu1 %v4455_v35  ;;  %1935 = vmatprep.mubr.f32.mxu1 %v6094_v25  ;;  %v1730_v35 = vld [vmem:[#allocation3 + $0x4e0] sm:$0xff] }
 0x330   : > { %v2016_v56 = vpop.f32.mrb[9].mxu0  ;;  %4458 = vmatprep.subr.bf16.mxu1 %v4457_v1  ;;  %v2192_v1 = vld [vmem:[#allocation6 + $0x18] sm:$0xff]  ;;  %v4483_v50 = vpack.c.bf16 %v1730_v35, %v1720_v3  ;;  %v2015_v44 = vadd.f32 %v6187_v27, %v1757_v59  ;;  %v2214_v59 = vld [vmem:[#allocation6 + $0xc8] sm:$0xff] }
 0x331   : > { %v2707_v51 = vmul.f32 1.442695, %v2705_v58  ;;  %v6190_v15 = vadd.f32 %v2016_v56, %v1761_v62  ;;  %v6192_v57 = vmul.f32 %v2186_v55, %v1861_v11  ;;  %v1721_v62 = vld [vmem:[#allocation3 + $0x498] sm:$0xff]  ;;  %v4517_v16 = vpack.c.bf16 %v2192_v1, %v2190_v8  ;;  %v2189_v11 = vld [vmem:[#allocation6] sm:$0xff]  ;;  %v2191_v55 = vld [vmem:[#allocation6 + $0x10] sm:$0xff] }
 0x332   : > { %1936 = vmatmul.mubr.f32.gmra.mrb[4].mxu1 %v6085_v24  ;;  %v4481_v42 = vpack.c.bf16 %v1731_v60, %v1721_v62  ;;  %v1777_v58 = vrot.slane %v6200_v61, %v5566_v46  ;;  %v2196_v56 = vld [vmem:[#allocation6 + $0x38] sm:$0xff]  ;;  %v4519_v12 = vpack.c.bf16 %v2191_v55, %v2189_v11  ;;  %v4533_v62 = vpack.c.bf16 %v2208_v23, %v2206_v37  ;;  %v2205_v60 = vld [vmem:[#allocation6 + $0x80] sm:$0xff]  ;;  %v2211_v1 = vld [vmem:[#allocation6 + $0xb0] sm:$0xff] }
 0x333   : > { %4980 = vpow2.f32 %v2707_v51  ;;  %v2706_v36 = vsub.f32 0.0, %v6190_v15  ;;  %4460 = vmatpush1.bf16.msra.mxu1 %v4459_v17  ;;  %2083 = vmatprep.mubr.f32.mxu1 %v6094_v25  ;;  %v2194_v17 = vld [vmem:[#allocation6 + $0x28] sm:$0xff]  ;;  %v2204_v27 = vld [vmem:[#allocation6 + $0x78] sm:$0xff]  ;;  %v2209_v8 = vld [vmem:[#allocation6 + $0xa0] sm:$0xff] }
 0x334   : > { %4462 = vmatprep.subr.bf16.mxu1 %v4461_v53  ;;  %v4529_v28 = vpack.c.bf16 %v2204_v27, %v2202_v30  ;;  %v4539_v11 = vpack.c.bf16 %v2211_v1, %v2209_v8  ;;  %v2461_v27 = vld [vmem:[#allocation6 + $0x130] sm:$0xff]  ;;  %v2470_v37 = vld [vmem:[#allocation6 + $0x178] sm:$0xff]  ;;  %v2476_v8 = vld [vmem:[#allocation6 + $0x1a8] sm:$0xff] }
 0x335   : > { %v2709_v19 = vmul.f32 1.442695, %v2706_v36  ;;  %v4521_v36 = vpack.c.bf16 %v2196_v56, %v2194_v17  ;;  %v2215_v17 = vld [vmem:[#allocation6 + $0xd0] sm:$0xff]  ;;  %v2478_v1 = vld [vmem:[#allocation6 + $0x1b8] sm:$0xff] }
 0x337   : > { %4982 = vpow2.f32 %v2709_v19  ;;  %4464 = vmatpush1.bf16.msra.mxu1 %v4463_v20  ;;  %v2193_v20 = vld [vmem:[#allocation6 + $0x20] sm:$0xff]  ;;  %v2198_v19 = vld [vmem:[#allocation6 + $0x48] sm:$0xff] }
 0x338   : > { %4466 = vmatprep.subr.bf16.mxu1 %v4465_v40  ;;  %v2195_v40 = vld [vmem:[#allocation6 + $0x30] sm:$0xff]  ;;  %v4525_v38 = vpack.c.bf16 %v2200_v43, %v2198_v19 }
 0x339   : > { %v4523_v33 = vpack.c.bf16 %v2195_v40, %v2193_v20  ;;  %v2219_v20 = vld [vmem:[#allocation6 + $0xf0] sm:$0xff]  ;;  %v1773_v40 = vrot.slane %v6200_v61, %v5609_v5 }
 0x33b   : > { %4468 = vmatpush1.bf16.msra.mxu1 %v4467_v32 }
 0x33c   : > { %4470 = vmatprep.subr.bf16.mxu1 %v4469_v10 }
 0x33d   : > { %v4981_v9 = vpop.eup %4980 }
 0x33e   : > { %v2711_v52 = vadd.f32 1.0, %v4981_v9 }
 0x33f   : > { %4472 = vmatpush1.bf16.msra.mxu1 %v4471_v31  ;;  %v2199_v31 = vld [vmem:[#allocation6 + $0x50] sm:$0xff] }
 0x340   : > { %4984 = vrcp.f32 %v2711_v52  ;;  %4474 = vmatprep.subr.bf16.mxu1 %v4473_v18  ;;  %v4527_v41 = vpack.c.bf16 %v2199_v31, %v2197_v34  ;;  %v2201_v52 = vld [vmem:[#allocation6 + $0x60] sm:$0xff]  ;;  %v2457_v31 = vld [vmem:[#allocation6 + $0x110] sm:$0xff] }
 0x341   : > { %v4983_v47 = vpop.eup %4982  ;;  %v2455_v34 = vld [vmem:[#allocation6 + $0x100] sm:$0xff] }
 0x342   : > { %v2712_v63 = vadd.f32 1.0, %v4983_v47 }
 0x343   : > { %4476 = vmatpush1.bf16.msra.mxu1 %v4475_v29  ;;  %v2203_v29 = vld [vmem:[#allocation6 + $0x70] sm:$0xff] }
 0x344   : > { %4986 = vrcp.f32 %v2712_v63  ;;  %4478 = vmatprep.subr.bf16.mxu1 %v4477_v14  ;;  %v4531_v47 = vpack.c.bf16 %v2203_v29, %v2201_v52  ;;  %v2207_v63 = vld [vmem:[#allocation6 + $0x90] sm:$0xff] }
 0x345   : > { %v4535_v3 = vpack.c.bf16 %v2207_v63, %v2205_v60  ;;  %v2465_v52 = vld [vmem:[#allocation6 + $0x150] sm:$0xff]  ;;  %v2472_v60 = vld [vmem:[#allocation6 + $0x188] sm:$0xff] }
 0x347   : > { %4480 = vmatpush1.bf16.msra.mxu1 %v4479_v39  ;;  %v2210_v39 = vld [vmem:[#allocation6 + $0xa8] sm:$0xff] }
 0x348   : > { %4482 = vmatprep.subr.bf16.mxu1 %v4481_v42  ;;  %v2212_v42 = vld [vmem:[#allocation6 + $0xb8] sm:$0xff] }
 0x349   : > { %v4537_v35 = vpack.c.bf16 %v2212_v42, %v2210_v39  ;;  %v2474_v39 = vld [vmem:[#allocation6 + $0x198] sm:$0xff]  ;;  %v2471_v42 = vld [vmem:[#allocation6 + $0x180] sm:$0xff] }
 0x34a   : > { %v4985_v53 = vpop.eup %4984 }
 0x34b   : > { %v2717_v4 = vmul.f32 %v4985_v53, %v6181_v2  ;;  %4484 = vmatpush1.bf16.msra.mxu1 %v4483_v50  ;;  %v6208_v51 = vpop.f32.mrb[10].mxu0  ;;  %v2216_v50 = vld [vmem:[#allocation6 + $0xd8] sm:$0xff]  ;;  %v2218_v53 = vld [vmem:[#allocation6 + $0xe8] sm:$0xff] }
 0x34c   : > { %v2164_v48 = vpop.f32.mrb[11].mxu0  ;;  %4518 = vmatprep.subr.bf16.mxu1 %v4517_v16  ;;  %v4541_v55 = vpack.c.bf16 %v2216_v50, %v2214_v59  ;;  %v4601_v59 = vpack.c.bf16 %v2478_v1, %v2476_v8  ;;  %v2475_v50 = vld [vmem:[#allocation6 + $0x1a0] sm:$0xff] }
 0x34d   : > { %v6210_v0 = vmul.f32 %v2717_v4, %v2009_v13  ;;  %v6212_v45 = vadd.f32 %v2164_v48, %v1777_v58  ;;  %v2220_v13 = vld [vmem:[#allocation6 + $0xf8] sm:$0xff] }
 0x34e   : > { %v4987_v6 = vpop.eup %4986  ;;  %2084 = vmatmul.mubr.f32.vlgmr.msra.gmra.mrb[6].mxu1 %v6053_v26  ;;  %v4545_v48 = vpack.c.bf16 %v2220_v13, %v2218_v53  ;;  %v2481_v53 = vld [vmem:[#allocation6 + $0x1d0] sm:$0xff]  ;;  %v2484_v13 = vld [vmem:[#allocation6 + $0x1e8] sm:$0xff] }
 0x34f   : > { %v2718_v2 = vmul.f32 %v4987_v6, %v6190_v15  ;;  %v3239_v32 = vsub.f32 0.0, %v6212_v45  ;;  %v6218_v10 = vpop.f32.mrb[12].mxu0  ;;  %4520 = vmatpush1.bf16.msra.mxu1 %v4519_v12  ;;  %2089 = vmatprep.mubr.f32.mxu1 %v6094_v25  ;;  %v2163_v6 = vadd.f32 %v6208_v51, %v1773_v40  ;;  %v2456_v51 = vld [vmem:[#allocation6 + $0x108] sm:$0xff] }
 0x350   : > { %v2170_v21 = vpop.f32.mrb[13].mxu0  ;;  %4522 = vmatprep.subr.bf16.mxu1 %v4521_v36  ;;  %v2217_v36 = vld [vmem:[#allocation6 + $0xe0] sm:$0xff] }
 0x351   : > { %v3241_v18 = vmul.f32 1.442695, %v3239_v32  ;;  %v6221_v54 = vadd.f32 %v2170_v21, %v1777_v58  ;;  %v6223_v9 = vmul.f32 %v2718_v2, %v2015_v44  ;;  %v2213_v58 = vld [vmem:[#allocation6 + $0xc0] sm:$0xff]  ;;  %v4547_v19 = vpack.c.bf16 %v2219_v20, %v2217_v36  ;;  %v2485_v20 = vld [vmem:[#allocation6 + $0x1f0] sm:$0xff] }
 0x352   : > { %2090 = vmatmul.mubr.f32.gmra.mrb[8].mxu1 %v6085_v24  ;;  %v4543_v12 = vpack.c.bf16 %v2215_v17, %v2213_v58  ;;  %v2483_v36 = vld [vmem:[#allocation6 + $0x1e0] sm:$0xff] }
 0x353   : > { %4988 = vpow2.f32 %v3241_v18  ;;  %v3240_v15 = vsub.f32 0.0, %v6221_v54  ;;  %4524 = vmatpush1.bf16.msra.mxu1 %v4523_v33  ;;  %2297 = vmatprep.mubr.f32.mxu1 %v6094_v25  ;;  %v2169_v33 = vadd.f32 %v6218_v10, %v1773_v40  ;;  %v4583_v18 = vpack.c.bf16 %v2457_v31, %v2455_v34  ;;  %v2462_v10 = vld [vmem:[#allocation6 + $0x138] sm:$0xff] }
 0x354   : > { %4526 = vmatprep.subr.bf16.mxu1 %v4525_v38  ;;  %v4611_v40 = vpack.c.bf16 %v2485_v20, %v2483_v36  ;;  %v6725_v36 = vld [vmem:[#allocation26_spill] sm:$0xff] }
 0x355   : > { %v3243_v14 = vmul.f32 1.442695, %v3240_v15  ;;  %v1769_v20 = vrot.slane %v6156_v49, %v6725_v36 }
 0x357   : > { %4990 = vpow2.f32 %v3243_v14  ;;  %4528 = vmatpush1.bf16.msra.mxu1 %v4527_v41  ;;  %v2464_v41 = vld [vmem:[#allocation6 + $0x148] sm:$0xff] }
 0x358   : > { %4530 = vmatprep.subr.bf16.mxu1 %v4529_v28  ;;  %v2468_v14 = vld [vmem:[#allocation6 + $0x168] sm:$0xff] }
 0x359   : > { %v4593_v23 = vpack.c.bf16 %v2470_v37, %v2468_v14  ;;  %v2336_v14 = vld [vmem:[#allocation8 + $0x50] sm:$0xff]  ;;  %v2337_v37 = vld [vmem:[#allocation8 + $0x58] sm:$0xff] }
 0x35b   : > { %4532 = vmatpush1.bf16.msra.mxu1 %v4531_v47  ;;  %v2467_v47 = vld [vmem:[#allocation6 + $0x160] sm:$0xff] }
 0x35c   : > { %4534 = vmatprep.subr.bf16.mxu1 %v4533_v62  ;;  %v2469_v62 = vld [vmem:[#allocation6 + $0x170] sm:$0xff] }
 0x35d   : > { %v4989_v22 = vpop.eup %4988  ;;  %v4595_v63 = vpack.c.bf16 %v2469_v62, %v2467_v47  ;;  %v2338_v47 = vld [vmem:[#allocation8 + $0x60] sm:$0xff]  ;;  %v2339_v62 = vld [vmem:[#allocation8 + $0x68] sm:$0xff] }
 0x35e   : > { %v3245_v16 = vadd.f32 1.0, %v4989_v22 }
 0x35f   : > { %4536 = vmatpush1.bf16.msra.mxu1 %v4535_v3  ;;  %v2473_v3 = vld [vmem:[#allocation6 + $0x190] sm:$0xff] }
 0x360   : > { %4992 = vrcp.f32 %v3245_v16  ;;  %4538 = vmatprep.subr.bf16.mxu1 %v4537_v35  ;;  %v4597_v35 = vpack.c.bf16 %v2474_v39, %v2472_v60  ;;  %v4599_v22 = vpack.c.bf16 %v2473_v3, %v2471_v42  ;;  %v2477_v16 = vld [vmem:[#allocation6 + $0x1b0] sm:$0xff]  ;;  %v4573_v60 = vpack.c.bf16 %v2339_v62, %v2338_v47  ;;  %v2341_v39 = vld [vmem:[#allocation8 + $0x78] sm:$0xff]  ;;  %v6723_v3 = vld [vmem:[#allocation22_spill] sm:$0xff] }
 0x361   : > { %v4991_v56 = vpop.eup %4990  ;;  %v4603_v58 = vpack.c.bf16 %v2477_v16, %v2475_v50  ;;  %v2730_v62 = vld [vmem:[#allocation6 + $0x240] sm:$0xff] }
 0x362   : > { %v3246_v4 = vadd.f32 1.0, %v4991_v56  ;;  %v2479_v56 = vld [vmem:[#allocation6 + $0x1c0] sm:$0xff] }
 0x363   : > { %4540 = vmatpush1.bf16.msra.mxu1 %v4539_v11  ;;  %v2480_v11 = vld [vmem:[#allocation6 + $0x1c8] sm:$0xff] }
 0x364   : > { %4994 = vrcp.f32 %v3246_v4  ;;  %4542 = vmatprep.subr.bf16.mxu1 %v4541_v55  ;;  %v2482_v55 = vld [vmem:[#allocation6 + $0x1d8] sm:$0xff] }
 0x365   : > { %v4605_v17 = vpack.c.bf16 %v2482_v55, %v2480_v11  ;;  %v2486_v4 = vld [vmem:[#allocation6 + $0x1f8] sm:$0xff] }
 0x367   : > { %4544 = vmatpush1.bf16.msra.mxu1 %v4543_v12  ;;  %v4607_v12 = vpack.c.bf16 %v2481_v53, %v2479_v56 }
 0x368   : > { %4546 = vmatprep.subr.bf16.mxu1 %v4545_v48  ;;  %v4609_v48 = vpack.c.bf16 %v2486_v4, %v2484_v13 }
 0x36a   : > { %v4993_v43 = vpop.eup %4992 }
 0x36b   : > { %v3251_v44 = vmul.f32 %v4993_v43, %v6212_v45  ;;  %4548 = vmatpush1.bf16.msra.mxu1 %v4547_v19  ;;  %v2458_v45 = vld [vmem:[#allocation6 + $0x118] sm:$0xff]  ;;  %v2723_v19 = vld [vmem:[#allocation6 + $0x208] sm:$0xff] }
 0x36c   : > { %v4581_v38 = vpack.c.bf16 %v2458_v45, %v2456_v51  ;;  %v2725_v43 = vld [vmem:[#allocation6 + $0x218] sm:$0xff]  ;;  %v2328_v45 = vld [vmem:[#allocation8 + $0x10] sm:$0xff] }
 0x36d   : > { %v6232_v2 = vmul.f32 %v3251_v44, %v2163_v6  ;;  %v4645_v6 = vpack.c.bf16 %v2725_v43, %v2723_v19  ;;  %v2326_v44 = vld [vmem:[#allocation8] sm:$0xff]  ;;  %v2724_v19 = vld [vmem:[#allocation6 + $0x210] sm:$0xff] }
 0x36e   : > { %v4995_v32 = vpop.eup %4994  ;;  %2298 = vmatmul.mubr.f32.vlgmr.msra.gmra.mrb[10].mxu1 %v6179_v7  ;;  %4582 = vmatprep.subr.bf16.mxu1 %v4581_v38  ;;  %v2460_v7 = vld [vmem:[#allocation6 + $0x128] sm:$0xff]  ;;  %v2329_v38 = vld [vmem:[#allocation8 + $0x18] sm:$0xff] }
 0x36f   : > { %v3252_v21 = vmul.f32 %v4995_v32, %v6221_v54  ;;  %2303 = vmatprep.mubr.f32.mxu1 %v6094_v25  ;;  %4584 = vmatpush1.bf16.msra.mxu1 %v4583_v18  ;;  %v4585_v30 = vpack.c.bf16 %v2462_v10, %v2460_v7  ;;  %v2459_v54 = vld [vmem:[#allocation6 + $0x120] sm:$0xff]  ;;  %v2327_v32 = vld [vmem:[#allocation8 + $0x8] sm:$0xff]  ;;  %v4553_v18 = vpack.c.bf16 %v2329_v38, %v2328_v45 }
 0x370   : > { %v4587_v15 = vpack.c.bf16 %v2461_v27, %v2459_v54  ;;  %v2330_v54 = vld [vmem:[#allocation8 + $0x20] sm:$0xff]  ;;  %v2331_v27 = vld [vmem:[#allocation8 + $0x28] sm:$0xff] }
 0x371   : > { %v6238_v61 = vmul.f32 %v3252_v21, %v2169_v33  ;;  %4586 = vmatprep.subr.bf16.mxu1 %v4585_v30  ;;  %v4549_v33 = vpack.c.bf16 %v2327_v32, %v2326_v44  ;;  %v3837_v21 = vld [vmem:[%s6622_s8] ss:$0 sm:$0xff]  ;;  %v2729_v44 = vld [vmem:[#allocation6 + $0x238] sm:$0xff] }
 0x372   : > { %2304 = vmatmul.mubr.f32.gmra.mrb[12].mxu1 %v6192_v57  ;;  %v2466_v57 = vld [vmem:[#allocation6 + $0x158] sm:$0xff] }
 0x373   : > { %2564 = vmatprep.mubr.f32.mxu1 %v6094_v25  ;;  %4588 = vmatpush1.bf16.msra.mxu1 %v4587_v15  ;;  %v4589_v28 = vpack.c.bf16 %v2466_v57, %v2464_v41  ;;  %v2463_v25 = vld [vmem:[#allocation6 + $0x140] sm:$0xff]  ;;  %v4557_v15 = vpack.c.bf16 %v2331_v27, %v2330_v54  ;;  %v2332_v41 = vld [vmem:[#allocation8 + $0x30] sm:$0xff]  ;;  %v2333_v57 = vld [vmem:[#allocation8 + $0x38] sm:$0xff] }
 0x374   : > { %v4591_v29 = vpack.c.bf16 %v2465_v52, %v2463_v25  ;;  %4550 = vmatprep.subr.bf16.mxu0 %v4549_v33  ;;  %v2334_v25 = vld [vmem:[#allocation8 + $0x40] sm:$0xff]  ;;  %v2335_v52 = vld [vmem:[#allocation8 + $0x48] sm:$0xff] }
 0x375   : > { %4590 = vmatprep.subr.bf16.mxu1 %v4589_v28  ;;  %4552 = vmatpush3.bf16.msra.mxu0 %v4549_v33  ;;  %v4561_v28 = vpack.c.bf16 %v2333_v57, %v2332_v41  ;;  %v2731_v27 = vld [vmem:[#allocation6 + $0x248] sm:$0xff] }
 0x376   : > { %4554 = vmatprep.subr.bf16.mxu0 %v4553_v18 }
 0x377   : > { %4592 = vmatpush1.bf16.msra.mxu1 %v4591_v29  ;;  %v4565_v29 = vpack.c.bf16 %v2335_v52, %v2334_v25  ;;  %v6266_v52 = vld [vmem:[#allocation2] sm:$0xff] }
 0x378   : > { %4594 = vmatprep.subr.bf16.mxu1 %v4593_v23  ;;  %v4569_v23 = vpack.c.bf16 %v2337_v37, %v2336_v14 }
 0x379   : > { %4556 = vmatpush3.bf16.msra.mxu0 %v4553_v18 }
 0x37a   : > { %4558 = vmatprep.subr.bf16.mxu0 %v4557_v15 }
 0x37b   : > { %4596 = vmatpush1.bf16.msra.mxu1 %v4595_v63  ;;  %v2340_v63 = vld [vmem:[#allocation8 + $0x70] sm:$0xff] }
 0x37c   : > { %4598 = vmatprep.subr.bf16.mxu1 %v4597_v35  ;;  %v4577_v42 = vpack.c.bf16 %v2341_v39, %v2340_v63  ;;  %v1753_v35 = vrot.slane %v6156_v49, %v6723_v3  ;;  %v2735_v63 = vld [vmem:[#allocation6 + $0x268] sm:$0xff]  ;;  %v2737_v39 = vld [vmem:[#allocation6 + $0x278] sm:$0xff] }
 0x37d   : > { %4560 = vmatpush3.bf16.msra.mxu0 %v4557_v15 }
 0x37e   : > { %4562 = vmatprep.subr.bf16.mxu0 %v4561_v28 }
 0x37f   : > { %4600 = vmatpush1.bf16.msra.mxu1 %v4599_v22 }
 0x380   : > { %4602 = vmatprep.subr.bf16.mxu1 %v4601_v59 }
 0x381   : > { %4564 = vmatpush3.bf16.msra.mxu0 %v4561_v28 }
 0x382   : > { %4566 = vmatprep.subr.bf16.mxu0 %v4565_v29 }
 0x383   : > { %4604 = vmatpush1.bf16.msra.mxu1 %v4603_v58 }
 0x384   : > { %4606 = vmatprep.subr.bf16.mxu1 %v4605_v17 }
 0x385   : > { %4568 = vmatpush3.bf16.msra.mxu0 %v4565_v29 }
 0x386   : > { %4570 = vmatprep.subr.bf16.mxu0 %v4569_v23 }
 0x387   : > { %4608 = vmatpush1.bf16.msra.mxu1 %v4607_v12  ;;  %v6724_v12 = vld [vmem:[#allocation21_spill] sm:$0xff] }
 0x388   : > { %4610 = vmatprep.subr.bf16.mxu1 %v4609_v48  ;;  %v1749_v48 = vrot.slane %v6156_v49, %v6724_v12  ;;  %v2733_v49 = vld [vmem:[#allocation6 + $0x258] sm:$0xff]  ;;  %v2742_v12 = vld [vmem:[#allocation6 + $0x2a0] sm:$0xff] }
 0x389   : > { %4572 = vmatpush3.bf16.msra.mxu0 %v4569_v23  ;;  %v4653_v47 = vpack.c.bf16 %v2733_v49, %v2731_v27  ;;  %v2990_v27 = vld [vmem:[#allocation6 + $0x308] sm:$0xff]  ;;  %v2992_v49 = vld [vmem:[#allocation6 + $0x318] sm:$0xff] }
 0x38a   : > { %4574 = vmatprep.subr.bf16.mxu0 %v4573_v60 }
 0x38b   : > { %4612 = vmatpush1.bf16.msra.mxu1 %v4611_v40  ;;  %v2722_v40 = vld [vmem:[#allocation6 + $0x200] sm:$0xff] }
 0x38c   : > { %4646 = vmatprep.subr.bf16.mxu1 %v4645_v6  ;;  %v2727_v6 = vld [vmem:[#allocation6 + $0x228] sm:$0xff]  ;;  %v4647_v45 = vpack.c.bf16 %v2724_v19, %v2722_v40  ;;  %v2749_v40 = vld [vmem:[#allocation6 + $0x2d8] sm:$0xff] }
 0x38d   : > { %4576 = vmatpush3.bf16.msra.mxu0 %v4573_v60  ;;  %v4649_v18 = vpack.c.bf16 %v2729_v44, %v2727_v6  ;;  %v2732_v60 = vld [vmem:[#allocation6 + $0x250] sm:$0xff]  ;;  %v2746_v44 = vld [vmem:[#allocation6 + $0x2c0] sm:$0xff] }
 0x38e   : > { %4578 = vmatprep.subr.bf16.mxu0 %v4577_v42  ;;  %v4655_v3 = vpack.c.bf16 %v2732_v60, %v2730_v62  ;;  %v2994_v60 = vld [vmem:[#allocation6 + $0x328] sm:$0xff] }
 0x391   : > { %4580 = vmatpush3.bf16.msra.mxu0 %v4577_v42 }
 0x3e1   : > { %v4075_v51 = vpop.f32.mrb[0].mxu1 }
 0x3e2   : > { %v6245_v34 = vadd.f32 %v4075_v51, %v3837_v21  ;;  %v1495_v31 = vpop.f32.mrb[1].mxu1 }
 0x3e3   : > { %v6247_v7 = vadd.f32 %v3837_v21, %v1495_v31 }
 0x3e4   : > { %v1511_v10 = vsel %vm1507_vm7, %v6245_v34, -inf }
 0x3e5   : > { %1512 = vmax.xlane.f32.xlu1 %v1511_v10  ;;  %v1508_v30 = vsel %vm1507_vm7, %v6247_v7, -inf  ;;  %v2726_v10 = vld [vmem:[#allocation6 + $0x220] sm:$0xff] }
 0x3e6   : > { %1509 = vmax.xlane.f32.xlu0 %v1508_v30  ;;  %v2728_v30 = vld [vmem:[#allocation6 + $0x230] sm:$0xff] }
 0x3e7   : > { %v4651_v29 = vpack.c.bf16 %v2728_v30, %v2726_v10  ;;  %v2750_v10 = vld [vmem:[#allocation6 + $0x2e0] sm:$0xff]  ;;  %v2752_v30 = vld [vmem:[#allocation6 + $0x2f0] sm:$0xff] }
 0x401   : > { %v1931_v8 = vpop.f32.mrb[2].mxu1 }
 0x402   : > { %v1933_v1 = vpop.f32.mrb[3].mxu1  ;;  %v1932_v32 = vadd.f32 %v1931_v8, %v1749_v48  ;;  %v4657_v8 = vpack.c.bf16 %v2737_v39, %v2735_v63  ;;  %v2996_v63 = vld [vmem:[#allocation6 + $0x338] sm:$0xff] }
 0x403   : > { %v1934_v22 = vadd.f32 %v1933_v1, %v1753_v35  ;;  %v2734_v1 = vld [vmem:[#allocation6 + $0x260] sm:$0xff] }
 0x405   : > { %v2438_v59 = vsub.f32 0.0, %v1934_v22  ;;  %v1937_v50 = vpop.f32.mrb[4].mxu1 }
 0x406   : > { %v1939_v16 = vpop.f32.mrb[5].mxu1  ;;  %v1938_v15 = vadd.f32 %v1937_v50, %v1749_v48  ;;  %v2741_v50 = vld [vmem:[#allocation6 + $0x298] sm:$0xff]  ;;  %v2744_v48 = vld [vmem:[#allocation6 + $0x2b0] sm:$0xff] }
 0x407   : > { %v2440_v11 = vmul.f32 1.442695, %v2438_v59  ;;  %v1940_v55 = vadd.f32 %v1939_v16, %v1753_v35  ;;  %v2739_v59 = vld [vmem:[#allocation6 + $0x288] sm:$0xff]  ;;  %v4667_v19 = vpack.c.bf16 %v2744_v48, %v2742_v12 }
 0x409   : > { %4996 = vpow2.f32 %v2440_v11  ;;  %v2439_v58 = vsub.f32 0.0, %v1940_v55  ;;  %v4661_v11 = vpack.c.bf16 %v2741_v50, %v2739_v59  ;;  %v4713_v59 = vpack.c.bf16 %v2996_v63, %v2994_v60  ;;  %v2993_v50 = vld [vmem:[#allocation6 + $0x320] sm:$0xff]  ;;  %v3015_v63 = vld [vmem:[#allocation6 + $0x3d0] sm:$0xff] }
 0x40a   : > { %v3013_v60 = vld [vmem:[#allocation6 + $0x3c0] sm:$0xff] }
 0x40b   : > { %v2442_v17 = vmul.f32 1.442695, %v2439_v58  ;;  %v2740_v58 = vld [vmem:[#allocation6 + $0x290] sm:$0xff] }
 0x40d   : > { %4998 = vpow2.f32 %v2442_v17  ;;  %v2743_v17 = vld [vmem:[#allocation6 + $0x2a8] sm:$0xff] }
 0x413   : > { %v4997_v56 = vpop.eup %4996 }
 0x414   : > { %v2444_v53 = vadd.f32 1.0, %v4997_v56  ;;  %v2745_v56 = vld [vmem:[#allocation6 + $0x2b8] sm:$0xff] }
 0x416   : > { %5000 = vrcp.f32 %v2444_v53 }
 0x417   : > { %v4999_v13 = vpop.eup %4998 }
 0x418   : > { %v2445_v4 = vadd.f32 1.0, %v4999_v13 }
 0x41a   : > { %5002 = vrcp.f32 %v2445_v4  ;;  %v4665_v4 = vpack.c.bf16 %v2745_v56, %v2743_v17 }
 0x420   : > { %v5001_v43 = vpop.eup %5000 }
 0x421   : > { %v2450_v33 = vmul.f32 %v5001_v43, %v1934_v22  ;;  %v6259_v21 = vpop.f32.mrb[6].mxu1  ;;  %v2736_v22 = vld [vmem:[#allocation6 + $0x270] sm:$0xff] }
 0x422   : > { %v2087_v51 = vpop.f32.mrb[7].mxu1  ;;  %v4659_v16 = vpack.c.bf16 %v2736_v22, %v2734_v1 }
 0x423   : > { %v2452_v38 = vmul.f32 %v2450_v33, %v1932_v32  ;;  %v6261_v31 = vadd.f32 %v2087_v51, %v1769_v20  ;;  %v2748_v32 = vld [vmem:[#allocation6 + $0x2d0] sm:$0xff]  ;;  %v2751_v51 = vld [vmem:[#allocation6 + $0x2e8] sm:$0xff] }
 0x424   : > { %v5003_v54 = vpop.eup %5002 }
 0x425   : > { %v2451_v41 = vmul.f32 %v5003_v54, %v1940_v55  ;;  %v2972_v57 = vsub.f32 0.0, %v6261_v31  ;;  %v6264_v28 = vpop.f32.mrb[8].mxu1  ;;  %2565 = vmatmul.mubr.f32.vlgmr.msra.gmra.mrb[14].mxu1 %v2452_v38  ;;  %v2738_v55 = vld [vmem:[#allocation6 + $0x280] sm:$0xff]  ;;  %v4671_v38 = vpack.c.bf16 %v2748_v32, %v2746_v44  ;;  %v6276_v54 = vld [vmem:[%s6626_s12] sm:$0x3] }
 0x426   : > { %4648 = vmatpush1.bf16.msra.mxu1 %v4647_v45  ;;  %v2093_v25 = vpop.f32.mrb[9].mxu1  ;;  %2570 = vmatprep.mubr.f32.mxu1 %v6266_v52  ;;  %v4663_v53 = vpack.c.bf16 %v2740_v58, %v2738_v55  ;;  %v2753_v45 = vld [vmem:[#allocation6 + $0x2f8] sm:$0xff]  ;;  %v2998_v55 = vld [vmem:[#allocation6 + $0x348] sm:$0xff]  ;;  %v3001_v44 = vld [vmem:[#allocation6 + $0x360] sm:$0xff] }
 0x427   : > { %v2974_v14 = vmul.f32 1.442695, %v2972_v57  ;;  %v6269_v37 = vadd.f32 %v2093_v25, %v1769_v20  ;;  %4650 = vmatprep.subr.bf16.mxu1 %v4649_v18  ;;  %v2453_v23 = vmul.f32 %v2451_v41, %v1938_v15  ;;  %v2747_v20 = vld [vmem:[#allocation6 + $0x2c8] sm:$0xff]  ;;  %v4673_v18 = vpack.c.bf16 %v2753_v45, %v2751_v51  ;;  %v5070_v15 = vld [vmem:[%s6624_s10] sm:$0xff]  ;;  %v6726_v41 = vld [vmem:[#allocation25_spill] sm:$0xff] }
 0x428   : > { %v4669_v6 = vpack.c.bf16 %v2749_v40, %v2747_v20  ;;  %v1765_v57 = vrot.slane %v5070_v15, %v6726_v41  ;;  %v4675_v25 = vpack.c.bf16 %v2752_v30, %v2750_v10  ;;  %v3000_v58 = vld [vmem:[#allocation6 + $0x358] sm:$0xff]  ;;  %v3003_v32 = vld [vmem:[#allocation6 + $0x370] sm:$0xff]  ;;  %v3010_v30 = vld [vmem:[#allocation6 + $0x3a8] sm:$0xff] }
 0x429   : > { %5004 = vpow2.f32 %v2974_v14  ;;  %v2973_v42 = vsub.f32 0.0, %v6269_v37  ;;  %2571 = vmatmul.mubr.f32.gmra.mrb[16].mxu1 %v2453_v23  ;;  %v4709_v14 = vpack.c.bf16 %v2992_v49, %v2990_v27  ;;  %v2989_v23 = vld [vmem:[#allocation6 + $0x300] sm:$0xff]  ;;  %v4717_v48 = vpack.c.bf16 %v3000_v58, %v2998_v55  ;;  %v3004_v40 = vld [vmem:[#allocation6 + $0x378] sm:$0xff]  ;;  %v3007_v10 = vld [vmem:[#allocation6 + $0x390] sm:$0xff] }
 0x42a   : > { %4652 = vmatpush1.bf16.msra.mxu1 %v4651_v29  ;;  %2831 = vmatprep.mubr.f32.mxu1 %v6266_v52  ;;  %v2230_v29 = vrot.slane %v6276_v54, %v5566_v46  ;;  %v2086_v39 = vadd.f32 %v6259_v21, %v1765_v57  ;;  %v2092_v21 = vadd.f32 %v6264_v28, %v1765_v57  ;;  %v2999_v28 = vld [vmem:[#allocation6 + $0x350] sm:$0xff]  ;;  %v3008_v51 = vld [vmem:[#allocation6 + $0x398] sm:$0xff]  ;;  %v3009_v41 = vld [vmem:[#allocation6 + $0x3a0] sm:$0xff] }
 0x42b   : > { %v2976_v35 = vmul.f32 1.442695, %v2973_v42  ;;  %4654 = vmatprep.subr.bf16.mxu1 %v4653_v47  ;;  %v2991_v47 = vld [vmem:[#allocation6 + $0x310] sm:$0xff]  ;;  %v4723_v45 = vpack.c.bf16 %v3003_v32, %v3001_v44  ;;  %v3259_v55 = vld [vmem:[#allocation6 + $0x418] sm:$0xff]  ;;  %v2226_v58 = vrot.slane %v6276_v54, %v5609_v5 }
 0x42c   : > { %v3011_v57 = vld [vmem:[#allocation6 + $0x3b0] sm:$0xff]  ;;  %v3267_v44 = vld [vmem:[#allocation6 + $0x458] sm:$0xff] }
 0x42d   : > { %5006 = vpow2.f32 %v2976_v35  ;;  %v3262_v54 = vld [vmem:[#allocation6 + $0x430] sm:$0xff] }
 0x42e   : > { %4656 = vmatpush1.bf16.msra.mxu1 %v4655_v3 }
 0x42f   : > { %4658 = vmatprep.subr.bf16.mxu1 %v4657_v8  ;;  %v4711_v8 = vpack.c.bf16 %v2991_v47, %v2989_v23  ;;  %v4731_v23 = vpack.c.bf16 %v3011_v57, %v3009_v41 }
 0x432   : > { %4660 = vmatpush1.bf16.msra.mxu1 %v4659_v16  ;;  %v2995_v16 = vld [vmem:[#allocation6 + $0x330] sm:$0xff] }
 0x433   : > { %v5005_v13 = vpop.eup %5004  ;;  %4662 = vmatprep.subr.bf16.mxu1 %v4661_v11 }
 0x434   : > { %v2978_v36 = vadd.f32 1.0, %v5005_v13  ;;  %v4715_v13 = vpack.c.bf16 %v2995_v16, %v2993_v50  ;;  %v3017_v50 = vld [vmem:[#allocation6 + $0x3e0] sm:$0xff]  ;;  %v3019_v16 = vld [vmem:[#allocation6 + $0x3f0] sm:$0xff] }
 0x436   : > { %5008 = vrcp.f32 %v2978_v36  ;;  %4664 = vmatpush1.bf16.msra.mxu1 %v4663_v53  ;;  %v2997_v36 = vld [vmem:[#allocation6 + $0x340] sm:$0xff] }
 0x437   : > { %v5007_v43 = vpop.eup %5006  ;;  %4666 = vmatprep.subr.bf16.mxu1 %v4665_v4 }
 0x438   : > { %v2979_v33 = vadd.f32 1.0, %v5007_v43 }
 0x43a   : > { %5010 = vrcp.f32 %v2979_v33  ;;  %4668 = vmatpush1.bf16.msra.mxu1 %v4667_v19  ;;  %v4719_v19 = vpack.c.bf16 %v2999_v28, %v2997_v36  ;;  %v3006_v33 = vld [vmem:[#allocation6 + $0x388] sm:$0xff] }
 0x43b   : > { %4670 = vmatprep.subr.bf16.mxu1 %v4669_v6 }
 0x43e   : > { %4672 = vmatpush1.bf16.msra.mxu1 %v4671_v38  ;;  %v4725_v38 = vpack.c.bf16 %v3008_v51, %v3006_v33 }
 0x43f   : > { %4674 = vmatprep.subr.bf16.mxu1 %v4673_v18  ;;  %v3005_v18 = vld [vmem:[#allocation6 + $0x380] sm:$0xff] }
 0x440   : > { %v5009_v62 = vpop.eup %5008  ;;  %v4727_v27 = vpack.c.bf16 %v3007_v10, %v3005_v18  ;;  %v3269_v18 = vld [vmem:[#allocation6 + $0x468] sm:$0xff]  ;;  %v3271_v10 = vld [vmem:[#allocation6 + $0x478] sm:$0xff] }
 0x441   : > { %v2984_v42 = vmul.f32 %v5009_v62, %v6261_v31  ;;  %v6286_v3 = vpop.f32.mrb[10].mxu1 }
 0x442   : > { %4676 = vmatpush1.bf16.msra.mxu1 %v4675_v25  ;;  %v2301_v35 = vpop.f32.mrb[11].mxu1  ;;  %v2300_v36 = vadd.f32 %v6286_v3, %v2226_v58 }
 0x443   : > { %v6288_v1 = vmul.f32 %v2984_v42, %v2086_v39  ;;  %v6290_v22 = vadd.f32 %v2301_v35, %v2230_v29  ;;  %4710 = vmatprep.subr.bf16.mxu1 %v4709_v14  ;;  %v3016_v14 = vld [vmem:[#allocation6 + $0x3d8] sm:$0xff]  ;;  %v3018_v42 = vld [vmem:[#allocation6 + $0x3e8] sm:$0xff] }
 0x444   : > { %v5011_v11 = vpop.eup %5010  ;;  %v3020_v35 = vld [vmem:[#allocation6 + $0x3f8] sm:$0xff] }
 0x445   : > { %v2985_v31 = vmul.f32 %v5011_v11, %v6269_v37  ;;  %v2310_v17 = vsub.f32 0.0, %v6290_v22  ;;  %2832 = vmatmul.mubr.f32.vlgmr.msra.gmra.mrb[18].mxu1 %v6210_v0  ;;  %v6296_v56 = vpop.f32.mrb[12].mxu1  ;;  %v3002_v37 = vld [vmem:[#allocation6 + $0x368] sm:$0xff] }
 0x446   : > { %4712 = vmatpush1.bf16.msra.mxu1 %v4711_v8  ;;  %v2307_v53 = vpop.f32.mrb[13].mxu1  ;;  %2837 = vmatprep.mubr.f32.mxu1 %v6266_v52  ;;  %v4721_v6 = vpack.c.bf16 %v3004_v40, %v3002_v37  ;;  %v4735_v8 = vpack.c.bf16 %v3015_v63, %v3013_v60  ;;  %v3257_v11 = vld [vmem:[#allocation6 + $0x408] sm:$0xff]  ;;  %v2306_v32 = vadd.f32 %v6296_v56, %v2226_v58 }
 0x447   : > { %v2312_v4 = vmul.f32 1.442695, %v2310_v17  ;;  %v6299_v12 = vadd.f32 %v2307_v53, %v2230_v29  ;;  %4714 = vmatprep.subr.bf16.mxu1 %v4713_v59  ;;  %v6301_v20 = vmul.f32 %v2985_v31, %v2092_v21  ;;  %v3014_v29 = vld [vmem:[#allocation6 + $0x3c8] sm:$0xff]  ;;  %v4737_v59 = vpack.c.bf16 %v3020_v35, %v3018_v42  ;;  %v3256_v17 = vld [vmem:[#allocation6 + $0x400] sm:$0xff]  ;;  %v3258_v53 = vld [vmem:[#allocation6 + $0x410] sm:$0xff] }
 0x448   : > { %v4733_v62 = vpack.c.bf16 %v3016_v14, %v3014_v29  ;;  %v4739_v21 = vpack.c.bf16 %v3019_v16, %v3017_v50  ;;  %v4773_v31 = vpack.c.bf16 %v3259_v55, %v3257_v11  ;;  %v4775_v37 = vpack.c.bf16 %v3258_v53, %v3256_v17  ;;  %v3274_v29 = vld [vmem:[#allocation6 + $0x490] sm:$0xff]  ;;  %v3277_v14 = vld [vmem:[#allocation6 + $0x4a8] sm:$0xff]  ;;  %v3287_v53 = vld [vmem:[#allocation6 + $0x4f8] sm:$0xff] }
 0x449   : > { %5012 = vpow2.f32 %v2312_v4  ;;  %v2311_v0 = vsub.f32 0.0, %v6299_v12  ;;  %2838 = vmatmul.mubr.f32.gmra.mrb[20].mxu1 %v6223_v9  ;;  %v3012_v9 = vld [vmem:[#allocation6 + $0x3b8] sm:$0xff]  ;;  %v3261_v4 = vld [vmem:[#allocation6 + $0x428] sm:$0xff]  ;;  %v3278_v42 = vld [vmem:[#allocation6 + $0x4b0] sm:$0xff] }
 0x44a   : > { %4716 = vmatpush1.bf16.msra.mxu1 %v4715_v13  ;;  %3098 = vmatprep.mubr.f32.mxu1 %v6266_v52  ;;  %v4729_v15 = vpack.c.bf16 %v3012_v9, %v3010_v30  ;;  %v3270_v30 = vld [vmem:[#allocation6 + $0x470] sm:$0xff]  ;;  %v3273_v9 = vld [vmem:[#allocation6 + $0x488] sm:$0xff] }
 0x44b   : > { %v2314_v43 = vmul.f32 1.442695, %v2311_v0  ;;  %4718 = vmatprep.subr.bf16.mxu1 %v4717_v48  ;;  %v3263_v48 = vld [vmem:[#allocation6 + $0x438] sm:$0xff]  ;;  %v3285_v17 = vld [vmem:[#allocation6 + $0x4e8] sm:$0xff] }
 0x44c   : > { %v4777_v0 = vpack.c.bf16 %v3263_v48, %v3261_v4  ;;  %v4801_v4 = vpack.c.bf16 %v3287_v53, %v3285_v17  ;;  %v3284_v48 = vld [vmem:[#allocation6 + $0x4e0] sm:$0xff] }
 0x44d   : > { %5014 = vpow2.f32 %v2314_v43 }
 0x44e   : > { %4720 = vmatpush1.bf16.msra.mxu1 %v4719_v19  ;;  %v3260_v19 = vld [vmem:[#allocation6 + $0x420] sm:$0xff] }
 0x44f   : > { %4722 = vmatprep.subr.bf16.mxu1 %v4721_v6  ;;  %v3265_v6 = vld [vmem:[#allocation6 + $0x448] sm:$0xff]  ;;  %v4779_v3 = vpack.c.bf16 %v3262_v54, %v3260_v19  ;;  %v2596_v19 = vld [vmem:[#allocation8 + $0x90] sm:$0xff]  ;;  %v2597_v54 = vld [vmem:[#allocation8 + $0x98] sm:$0xff] }
 0x450   : > { %v4781_v51 = vpack.c.bf16 %v3267_v44, %v3265_v6  ;;  %v2598_v6 = vld [vmem:[#allocation8 + $0xa0] sm:$0xff]  ;;  %v2599_v44 = vld [vmem:[#allocation8 + $0xa8] sm:$0xff] }
 0x452   : > { %4724 = vmatpush1.bf16.msra.mxu1 %v4723_v45  ;;  %v3264_v45 = vld [vmem:[#allocation6 + $0x440] sm:$0xff] }
 0x453   : > { %v5013_v49 = vpop.eup %5012  ;;  %4726 = vmatprep.subr.bf16.mxu1 %v4725_v38  ;;  %v3266_v38 = vld [vmem:[#allocation6 + $0x450] sm:$0xff] }
 0x454   : > { %v2316_v25 = vadd.f32 1.0, %v5013_v49  ;;  %v4783_v56 = vpack.c.bf16 %v3266_v38, %v3264_v45  ;;  %v6727_v49 = vlaneseq  ;;  %v2605_v45 = vld [vmem:[#allocation8 + $0xd8] sm:$0xff] }
 0x456   : > { %5016 = vrcp.f32 %v2316_v25  ;;  %4728 = vmatpush1.bf16.msra.mxu1 %v4727_v27  ;;  %v3275_v27 = vld [vmem:[#allocation6 + $0x498] sm:$0xff]  ;;  %v3272_v25 = vld [vmem:[#allocation6 + $0x480] sm:$0xff] }
 0x457   : > { %v5015_v47 = vpop.eup %5014  ;;  %4730 = vmatprep.subr.bf16.mxu1 %v4729_v15  ;;  %v1505_v15 = vand.u32 127, %v6727_v49  ;;  %v4789_v57 = vpack.c.bf16 %v3275_v27, %v3273_v9  ;;  %v2861_v9 = vld [vmem:[#allocation8 + $0x100] sm:$0xff]  ;;  %v2862_v27 = vld [vmem:[#allocation8 + $0x108] sm:$0xff] }
 0x458   : > { %v2317_v39 = vadd.f32 1.0, %v5015_v47  ;;  %v4677_v49 = vpack.c.bf16 %v2862_v27, %v2861_v9 }
 0x45a   : > { %5018 = vrcp.f32 %v2317_v39  ;;  %4732 = vmatpush1.bf16.msra.mxu1 %v4731_v23  ;;  %v3279_v23 = vld [vmem:[#allocation6 + $0x4b8] sm:$0xff]  ;;  %v3276_v39 = vld [vmem:[#allocation6 + $0x4a0] sm:$0xff] }
 0x45b   : > { %4734 = vmatprep.subr.bf16.mxu1 %v4733_v62  ;;  %v4791_v62 = vpack.c.bf16 %v3274_v29, %v3272_v25  ;;  %v4793_v63 = vpack.c.bf16 %v3279_v23, %v3277_v14  ;;  %v4795_v55 = vpack.c.bf16 %v3278_v42, %v3276_v39 }
 0x45e   : > { %4736 = vmatpush1.bf16.msra.mxu1 %v4735_v8  ;;  %v3281_v8 = vld [vmem:[#allocation6 + $0x4c8] sm:$0xff] }
 0x45f   : > { %4738 = vmatprep.subr.bf16.mxu1 %v4737_v59  ;;  %v3283_v59 = vld [vmem:[#allocation6 + $0x4d8] sm:$0xff] }
 0x460   : > { %v5017_v13 = vpop.eup %5016  ;;  %v4797_v58 = vpack.c.bf16 %v3283_v59, %v3281_v8 }
 0x461   : > { %v2322_v28 = vmul.f32 %v5017_v13, %v6290_v22 }
 0x462   : > { %4740 = vmatpush1.bf16.msra.mxu1 %v4739_v21  ;;  %v3280_v21 = vld [vmem:[#allocation6 + $0x4c0] sm:$0xff] }
 0x463   : > { %4774 = vmatprep.subr.bf16.mxu1 %v4773_v31  ;;  %v2324_v40 = vmul.f32 %v2322_v28, %v2300_v36  ;;  %v3282_v31 = vld [vmem:[#allocation6 + $0x4d0] sm:$0xff] }
 0x464   : > { %v5019_v43 = vpop.eup %5018  ;;  %v4799_v13 = vpack.c.bf16 %v3282_v31, %v3280_v21  ;;  %v3286_v36 = vld [vmem:[#allocation6 + $0x4f0] sm:$0xff] }
 0x465   : > { %v2323_v33 = vmul.f32 %v5019_v43, %v6299_v12  ;;  %3099 = vmatmul.mubr.f32.vlgmr.msra.gmra.mrb[22].mxu1 %v6288_v1  ;;  %4108 = vmatprep.mubr.f32.mxu0 %v2324_v40  ;;  %v4785_v1 = vpack.c.bf16 %v3271_v10, %v3269_v18  ;;  %v3268_v12 = vld [vmem:[#allocation6 + $0x460] sm:$0xff]  ;;  %v4803_v28 = vpack.c.bf16 %v3286_v36, %v3284_v48  ;;  %v2595_v40 = vld [vmem:[#allocation8 + $0x88] sm:$0xff]  ;;  %v3842_v31 = vld [vmem:[%s6626_s12 + $0x4] sm:$0x3] }
 0x466   : > { %4776 = vmatpush1.bf16.msra.mxu1 %v4775_v37  ;;  %3104 = vmatprep.mubr.f32.mxu1 %v6266_v52  ;;  %v4787_v41 = vpack.c.bf16 %v3270_v30, %v3268_v12  ;;  %v2594_v37 = vld [vmem:[#allocation8 + $0x80] sm:$0xff]  ;;  %v4617_v43 = vpack.c.bf16 %v2597_v54, %v2596_v19  ;;  %v2607_v10 = vld [vmem:[#allocation8 + $0xe8] sm:$0xff]  ;;  %v2609_v12 = vld [vmem:[#allocation8 + $0xf8] sm:$0xff]  ;;  %v2764_v53 = vrot.slane %v3842_v31, %v5566_v46 }
 0x467   : > { %v2325_v22 = vmul.f32 %v2323_v33, %v2306_v32  ;;  %4778 = vmatprep.subr.bf16.mxu1 %v4777_v0  ;;  %v4613_v0 = vpack.c.bf16 %v2595_v40, %v2594_v37  ;;  %v4621_v32 = vpack.c.bf16 %v2599_v44, %v2598_v6  ;;  %v2600_v33 = vld [vmem:[#allocation8 + $0xb0] sm:$0xff]  ;;  %v2606_v18 = vld [vmem:[#allocation8 + $0xe0] sm:$0xff]  ;;  %v2864_v54 = vld [vmem:[#allocation8 + $0x118] sm:$0xff] }
 0x468   : > { %v2863_v19 = vld [vmem:[#allocation8 + $0x110] sm:$0xff] }
 0x469   : > { %3105 = vmatmul.mubr.f32.gmra.mrb[24].mxu1 %v6301_v20  ;;  %4109 = vmatmul.mubr.f32.vlgmr.msra.gmra.mrb[14].mxu0 %v2325_v22  ;;  %v6317_v20 = vcvt.s32.f32 %v1505_v15  ;;  %v3839_v15 = vld [vmem:[%s6626_s12 + $0x2] sm:$0x3] }
 0x46a   : > { %4780 = vmatpush1.bf16.msra.mxu1 %v4779_v3  ;;  %3365 = vmatprep.mubr.f32.mxu1 %v6266_v52  ;;  %v2602_v3 = vld [vmem:[#allocation8 + $0xc0] sm:$0xff]  ;;  %v2493_v17 = vrot.slane %v3839_v15, %v5609_v5 }
 0x46b   : > { %4782 = vmatprep.subr.bf16.mxu1 %v4781_v51  ;;  %4614 = vmatprep.subr.bf16.mxu0 %v4613_v0  ;;  %v2604_v51 = vld [vmem:[#allocation8 + $0xd0] sm:$0xff] }
 0x46c   : > { %4616 = vmatpush3.bf16.msra.mxu0 %v4613_v0  ;;  %v4633_v38 = vpack.c.bf16 %v2605_v45, %v2604_v51  ;;  %v2866_v51 = vld [vmem:[#allocation8 + $0x128] sm:$0xff] }
 0x46d   : > { %4618 = vmatprep.subr.bf16.mxu0 %v4617_v43 }
 0x46e   : > { %4784 = vmatpush1.bf16.msra.mxu1 %v4783_v56  ;;  %v4637_v56 = vpack.c.bf16 %v2607_v10, %v2606_v18  ;;  %v2867_v10 = vld [vmem:[#allocation8 + $0x130] sm:$0xff] }
 0x46f   : > { %4786 = vmatprep.subr.bf16.mxu1 %v4785_v1  ;;  %v2608_v1 = vld [vmem:[#allocation8 + $0xf0] sm:$0xff] }
 0x470   : > { %4620 = vmatpush3.bf16.msra.mxu0 %v4617_v43  ;;  %v4641_v30 = vpack.c.bf16 %v2609_v12, %v2608_v1  ;;  %v2869_v12 = vld [vmem:[#allocation8 + $0x140] sm:$0xff] }
 0x471   : > { %4622 = vmatprep.subr.bf16.mxu0 %v4621_v32 }
 0x472   : > { %4788 = vmatpush1.bf16.msra.mxu1 %v4787_v41  ;;  %v1513_v47 = vpop.xlane.xlu1 %1512  ;;  %v2497_v41 = vrot.slane %v3839_v15, %v5566_v46 }
 0x473   : > { %vm1515_vm8 = vcmp.ge.f32.partialorder %v6245_v34, %v1513_v47  ;;  %4790 = vmatprep.subr.bf16.mxu1 %v4789_v57  ;;  %v1510_v60 = vpop.xlane.xlu0 %1509 }
 0x474   : > { %vm1514_vm9 = vcmp.ge.f32.partialorder %v6247_v7, %v1510_v60  ;;  %v1517_v35 = vsel %vm1515_vm8, %v6317_v20, 5.0  ;;  %4624 = vmatpush3.bf16.msra.mxu0 %v4621_v32 }
 0x475   : > { %v1521_v50 = vsel %vm1507_vm7, %v1517_v35, inf  ;;  %v1516_v16 = vsel %vm1514_vm9, %v6317_v20, 5.0 }
 0x476   : > { %4792 = vmatpush1.bf16.msra.mxu1 %v4791_v62  ;;  %1522 = vmin.xlane.f32.xlu1 %v1521_v50  ;;  %v1518_v11 = vsel %vm1507_vm7, %v1516_v16, inf }
 0x477   : > { %4794 = vmatprep.subr.bf16.mxu1 %v4793_v63  ;;  %1519 = vmin.xlane.f32.xlu0 %v1518_v11 }
 0x47a   : > { %4796 = vmatpush1.bf16.msra.mxu1 %v4795_v55 }
 0x47b   : > { %4798 = vmatprep.subr.bf16.mxu1 %v4797_v58 }
 0x47e   : > { %4800 = vmatpush1.bf16.msra.mxu1 %v4799_v13 }
 0x47f   : > { %4802 = vmatprep.subr.bf16.mxu1 %v4801_v4 }
 0x482   : > { %4804 = vmatpush1.bf16.msra.mxu1 %v4803_v28 }
 0x485   : > { %3366 = vmatmul.mubr.f32.vlgmr.msra.gmra.mrb[26].mxu1 %v6232_v2  ;;  %v2601_v2 = vld [vmem:[#allocation8 + $0xb8] sm:$0xff] }
 0x486   : > { %3371 = vmatprep.mubr.f32.mxu1 %v6266_v52  ;;  %v4625_v52 = vpack.c.bf16 %v2601_v2, %v2600_v33 }
 0x488   : > { %4626 = vmatprep.subr.bf16.mxu0 %v4625_v52 }
 0x489   : > { %3372 = vmatmul.mubr.f32.gmra.mrb[28].mxu1 %v6238_v61  ;;  %v2603_v61 = vld [vmem:[#allocation8 + $0xc8] sm:$0xff]  ;;  %4628 = vmatpush3.bf16.msra.mxu0 %v4625_v52 }
 0x48a   : > { %v4629_v22 = vpack.c.bf16 %v2603_v61, %v2602_v3  ;;  %v4681_v61 = vpack.c.bf16 %v2864_v54, %v2863_v19 }
 0x48c   : > { %4630 = vmatprep.subr.bf16.mxu0 %v4629_v22 }
 0x48d   : > { %4632 = vmatpush3.bf16.msra.mxu0 %v4629_v22  ;;  %v2865_v22 = vld [vmem:[#allocation8 + $0x120] sm:$0xff] }
 0x48e   : > { %4634 = vmatprep.subr.bf16.mxu0 %v4633_v38  ;;  %v4685_v18 = vpack.c.bf16 %v2866_v51, %v2865_v22  ;;  %v3132_v22 = vld [vmem:[#allocation8 + $0x1a0] sm:$0xff] }
 0x491   : > { %4636 = vmatpush3.bf16.msra.mxu0 %v4633_v38 }
 0x492   : > { %4638 = vmatprep.subr.bf16.mxu0 %v4637_v56 }
 0x495   : > { %4640 = vmatpush3.bf16.msra.mxu0 %v4637_v56  ;;  %v2868_v56 = vld [vmem:[#allocation8 + $0x138] sm:$0xff] }
 0x496   : > { %4642 = vmatprep.subr.bf16.mxu0 %v4641_v30  ;;  %v4689_v1 = vpack.c.bf16 %v2868_v56, %v2867_v10  ;;  %v3136_v56 = vld [vmem:[#allocation8 + $0x1c0] sm:$0xff] }
 0x499   : > { %4644 = vmatpush3.bf16.msra.mxu0 %v4641_v30  ;;  %v2870_v30 = vld [vmem:[#allocation8 + $0x148] sm:$0xff] }
 0x49a   : > { %4678 = vmatprep.subr.bf16.mxu0 %v4677_v49  ;;  %v4693_v27 = vpack.c.bf16 %v2870_v30, %v2869_v12 }
 0x4f8   : > { %v2566_v57 = vpop.f32.mrb[14].mxu1 }
 0x4f9   : > { %v2568_v25 = vpop.f32.mrb[15].mxu1  ;;  %v2567_v4 = vadd.f32 %v2566_v57, %v2493_v17  ;;  %v2872_v57 = vld [vmem:[#allocation8 + $0x158] sm:$0xff] }
 0x4fa   : > { %v2569_v29 = vadd.f32 %v2568_v25, %v2497_v41 }
 0x4fc   : > { %v2577_v14 = vsub.f32 0.0, %v2569_v29  ;;  %v2572_v23 = vpop.f32.mrb[16].mxu1 }
 0x4fd   : > { %v2574_v47 = vpop.f32.mrb[17].mxu1  ;;  %v2573_v43 = vadd.f32 %v2572_v23, %v2493_v17  ;;  %v2874_v23 = vld [vmem:[#allocation8 + $0x168] sm:$0xff] }
 0x4fe   : > { %v2579_v62 = vmul.f32 1.442695, %v2577_v14  ;;  %v2575_v60 = vadd.f32 %v2574_v47, %v2497_v41  ;;  %v2871_v41 = vld [vmem:[#allocation8 + $0x150] sm:$0xff]  ;;  %v2873_v14 = vld [vmem:[#allocation8 + $0x160] sm:$0xff] }
 0x4ff   : > { %v4697_v25 = vpack.c.bf16 %v2872_v57, %v2871_v41  ;;  %v4701_v47 = vpack.c.bf16 %v2874_v23, %v2873_v14  ;;  %v6396_v23 = vld [vmem:[%s6626_s12 + $0x8] sm:$0x3] }
 0x500   : > { %5020 = vpow2.f32 %v2579_v62  ;;  %v2578_v63 = vsub.f32 0.0, %v2575_v60  ;;  %v6371_v62 = vld [vmem:[%s6626_s12 + $0x6] sm:$0x3] }
 0x502   : > { %v2581_v39 = vmul.f32 1.442695, %v2578_v63  ;;  %v2876_v63 = vld [vmem:[#allocation8 + $0x178] sm:$0xff] }
 0x503   : > { %v6332_v42 = vpop.xlane.xlu1 %1522 }
 0x504   : > { %5022 = vpow2.f32 %v2581_v39  ;;  %vm1525_vm10 = vcmp.eq.f32.partialorder %v6317_v20, %v6332_v42  ;;  %v6336_v35 = vpop.xlane.xlu0 %1519  ;;  %v2760_v39 = vrot.slane %v3842_v31, %v5609_v5 }
 0x505   : > { %vm1524_vm11 = vcmp.eq.f32.partialorder %v6317_v20, %v6336_v35  ;;  %v6344_v8 = vsel %vm1525_vm10, -1e+30, %v6245_v34 }
 0x506   : > { %v1531_v59 = vsel %vm1507_vm7, %v6344_v8, -inf  ;;  %v6352_v50 = vsel %vm1524_vm11, -1e+30, %v6247_v7 }
 0x507   : > { %1532 = vmax.xlane.f32.xlu1 %v1531_v59  ;;  %v1528_v16 = vsel %vm1507_vm7, %v6352_v50, -inf  ;;  %v3031_v59 = vrot.slane %v6371_v62, %v5566_v46 }
 0x508   : > { %1529 = vmax.xlane.f32.xlu0 %v1528_v16 }
 0x50a   : > { %v5021_v11 = vpop.eup %5020 }
 0x50b   : > { %v2583_v55 = vadd.f32 1.0, %v5021_v11 }
 0x50d   : > { %5024 = vrcp.f32 %v2583_v55  ;;  %v3128_v55 = vld [vmem:[#allocation8 + $0x180] sm:$0xff] }
 0x50e   : > { %v5023_v58 = vpop.eup %5022 }
 0x50f   : > { %v2584_v21 = vadd.f32 1.0, %v5023_v58  ;;  %v3129_v58 = vld [vmem:[#allocation8 + $0x188] sm:$0xff] }
 0x511   : > { %5026 = vrcp.f32 %v2584_v21 }
 0x517   : > { %v5025_v13 = vpop.eup %5024 }
 0x518   : > { %v2589_v48 = vmul.f32 %v5025_v13, %v2569_v29  ;;  %v6361_v36 = vpop.f32.mrb[18].mxu1 }
 0x519   : > { %v2835_v28 = vpop.f32.mrb[19].mxu1  ;;  %v2834_v21 = vadd.f32 %v6361_v36, %v2760_v39 }
 0x51a   : > { %v6363_v37 = vadd.f32 %v2835_v28, %v2764_v53  ;;  %v2591_v40 = vmul.f32 %v2589_v48, %v2567_v4  ;;  %v4741_v48 = vpack.c.bf16 %v3129_v58, %v3128_v55  ;;  %v3396_v55 = vld [vmem:[#allocation8 + $0x208] sm:$0xff] }
 0x51b   : > { %v5027_v0 = vpop.eup %5026 }
 0x51c   : > { %v2590_v6 = vmul.f32 %v5027_v0, %v2575_v60  ;;  %v2844_v44 = vsub.f32 0.0, %v6363_v37  ;;  %v6366_v32 = vpop.f32.mrb[20].mxu1  ;;  %4143 = vmatprep.mubr.f32.mxu0 %v2591_v40  ;;  %v2875_v60 = vld [vmem:[#allocation8 + $0x170] sm:$0xff]  ;;  %v3131_v0 = vld [vmem:[#allocation8 + $0x198] sm:$0xff] }
 0x51d   : > { %v2841_v33 = vpop.f32.mrb[21].mxu1  ;;  %v4705_v16 = vpack.c.bf16 %v2876_v63, %v2875_v60  ;;  %v3130_v40 = vld [vmem:[#allocation8 + $0x190] sm:$0xff]  ;;  %v2840_v19 = vadd.f32 %v6366_v32, %v2760_v39  ;;  %v3133_v32 = vld [vmem:[#allocation8 + $0x1a8] sm:$0xff]  ;;  %v3143_v60 = vld [vmem:[#allocation8 + $0x1f8] sm:$0xff]  ;;  %v3027_v63 = vrot.slane %v6371_v62, %v5609_v5  ;;  %v3298_v39 = vrot.slane %v6396_v23, %v5566_v46 }
 0x51e   : > { %v2592_v2 = vmul.f32 %v2590_v6, %v2573_v43  ;;  %v2846_v3 = vmul.f32 1.442695, %v2844_v44  ;;  %v2842_v52 = vadd.f32 %v2841_v33, %v2764_v53  ;;  %v3398_v46 = vld [vmem:[#allocation8 + $0x218] sm:$0xff] }
 0x520   : > { %5028 = vpow2.f32 %v2846_v3  ;;  %v2845_v45 = vsub.f32 0.0, %v2842_v52  ;;  %4144 = vmatmul.mubr.f32.vlgmr.msra.gmra.mrb[16].mxu0 %v2592_v2 }
 0x521   : > { %4680 = vmatpush3.bf16.msra.mxu0 %v4677_v49 }
 0x522   : > { %v2848_v38 = vmul.f32 1.442695, %v2845_v45  ;;  %4682 = vmatprep.subr.bf16.mxu0 %v4681_v61  ;;  %v4749_v45 = vpack.c.bf16 %v3133_v32, %v3132_v22  ;;  %v3400_v22 = vld [vmem:[#allocation8 + $0x228] sm:$0xff] }
 0x524   : > { %5030 = vpow2.f32 %v2848_v38  ;;  %v3134_v38 = vld [vmem:[#allocation8 + $0x1b0] sm:$0xff] }
 0x525   : > { %4684 = vmatpush3.bf16.msra.mxu0 %v4681_v61  ;;  %v4745_v61 = vpack.c.bf16 %v3131_v0, %v3130_v40  ;;  %v3397_v40 = vld [vmem:[#allocation8 + $0x210] sm:$0xff] }
 0x526   : > { %4686 = vmatprep.subr.bf16.mxu0 %v4685_v18 }
 0x529   : > { %4688 = vmatpush3.bf16.msra.mxu0 %v4685_v18  ;;  %v3135_v18 = vld [vmem:[#allocation8 + $0x1b8] sm:$0xff] }
 0x52a   : > { %v5029_v9 = vpop.eup %5028  ;;  %4690 = vmatprep.subr.bf16.mxu0 %v4689_v1  ;;  %v4753_v10 = vpack.c.bf16 %v3135_v18, %v3134_v38  ;;  %v3403_v38 = vld [vmem:[#allocation8 + $0x240] sm:$0xff]  ;;  %v3404_v18 = vld [vmem:[#allocation8 + $0x248] sm:$0xff] }
 0x52b   : > { %v2850_v15 = vadd.f32 1.0, %v5029_v9 }
 0x52d   : > { %5032 = vrcp.f32 %v2850_v15  ;;  %4692 = vmatpush3.bf16.msra.mxu0 %v4689_v1  ;;  %v3137_v1 = vld [vmem:[#allocation8 + $0x1c8] sm:$0xff]  ;;  %v3139_v15 = vld [vmem:[#allocation8 + $0x1d8] sm:$0xff] }
 0x52e   : > { %v5031_v49 = vpop.eup %5030  ;;  %4694 = vmatprep.subr.bf16.mxu0 %v4693_v27  ;;  %v4757_v30 = vpack.c.bf16 %v3137_v1, %v3136_v56  ;;  %v4821_v56 = vpack.c.bf16 %v3404_v18, %v3403_v38  ;;  %v5242_v38 = vmov 0  }
 0x52f   : > { %v2851_v29 = vadd.f32 1.0, %v5031_v49  ;;  %4950 = vset.pattern.permute.xlu1 %v5242_v38  ;;  %4954 = vset.pattern.permute.xlu0 %v5242_v38 }
 0x531   : > { %5034 = vrcp.f32 %v2851_v29  ;;  %4696 = vmatpush3.bf16.msra.mxu0 %v4693_v27  ;;  %v3138_v27 = vld [vmem:[#allocation8 + $0x1d0] sm:$0xff]  ;;  %v3141_v29 = vld [vmem:[#allocation8 + $0x1e8] sm:$0xff] }
 0x532   : > { %4698 = vmatprep.subr.bf16.mxu0 %v4697_v25  ;;  %v4761_v57 = vpack.c.bf16 %v3139_v15, %v3138_v27 }
 0x535   : > { %4700 = vmatpush3.bf16.msra.mxu0 %v4697_v25  ;;  %v3140_v25 = vld [vmem:[#allocation8 + $0x1e0] sm:$0xff] }
 0x536   : > { %4702 = vmatprep.subr.bf16.mxu0 %v4701_v47  ;;  %v4765_v14 = vpack.c.bf16 %v3141_v29, %v3140_v25  ;;  %v3409_v25 = vld [vmem:[#allocation8 + $0x270] sm:$0xff]  ;;  %v3410_v29 = vld [vmem:[#allocation8 + $0x278] sm:$0xff] }
 0x537   : > { %v5033_v11 = vpop.eup %5032 }
 0x538   : > { %v2856_v17 = vmul.f32 %v5033_v11, %v6363_v37  ;;  %v6378_v53 = vpop.f32.mrb[22].mxu1  ;;  %v3395_v11 = vld [vmem:[#allocation8 + $0x200] sm:$0xff] }
 0x539   : > { %4704 = vmatpush3.bf16.msra.mxu0 %v4701_v47  ;;  %v3102_v13 = vpop.f32.mrb[23].mxu1  ;;  %v3142_v47 = vld [vmem:[#allocation8 + $0x1f0] sm:$0xff]  ;;  %v3101_v58 = vadd.f32 %v6378_v53, %v3027_v63 }
 0x53a   : > { %v6380_v4 = vadd.f32 %v3102_v13, %v3031_v59  ;;  %4706 = vmatprep.subr.bf16.mxu0 %v4705_v16  ;;  %v2858_v31 = vmul.f32 %v2856_v17, %v2834_v21 }
 0x53b   : > { %v5035_v28 = vpop.eup %5034 }
 0x53c   : > { %v2857_v54 = vmul.f32 %v5035_v28, %v2842_v52  ;;  %v3111_v43 = vsub.f32 0.0, %v6380_v4  ;;  %4178 = vmatprep.mubr.f32.mxu0 %v2858_v31  ;;  %v6384_v36 = vpop.f32.mrb[24].mxu1  ;;  %v6386_v37 = vpop.f32.mrb[14].mxu0 }
 0x53d   : > { %4708 = vmatpush3.bf16.msra.mxu0 %v4705_v16  ;;  %v3108_v6 = vpop.f32.mrb[25].mxu1  ;;  %v6388_v44 = vpop.f32.mrb[15].mxu0  ;;  %v3107_v0 = vadd.f32 %v6384_v36, %v3027_v63 }
 0x53e   : > { %v2859_v33 = vmul.f32 %v2857_v54, %v2840_v19  ;;  %v3113_v2 = vmul.f32 1.442695, %v3111_v43  ;;  %v6390_v3 = vadd.f32 %v3108_v6, %v3031_v59  ;;  %4742 = vmatprep.subr.bf16.mxu0 %v4741_v48  ;;  %v4769_v59 = vpack.c.bf16 %v3143_v60, %v3142_v47 }
 0x53f   : > { %v4833_v47 = vpack.c.bf16 %v3410_v29, %v3409_v25  ;;  %v5247_v25 = vmov 0.0|0.0  }
 0x540   : > { %5036 = vpow2.f32 %v3113_v2  ;;  %v3112_v52 = vsub.f32 0.0, %v6390_v3  ;;  %4179 = vmatmul.mubr.f32.vlgmr.msra.gmra.mrb[18].mxu0 %v2859_v33  ;;  %v4809_v2 = vpack.c.bf16 %v3398_v46, %v3397_v40  ;;  %4837 = vmatprep.subr.bf16.mxu1 %v5247_v25 }
 0x541   : > { %4744 = vmatpush3.bf16.msra.mxu0 %v4741_v48  ;;  %v4805_v48 = vpack.c.bf16 %v3396_v55, %v3395_v11 }
 0x542   : > { %v3115_v51 = vmul.f32 1.442695, %v3112_v52  ;;  %4746 = vmatprep.subr.bf16.mxu0 %v4745_v61  ;;  %v3401_v52 = vld [vmem:[#allocation8 + $0x230] sm:$0xff] }
 0x544   : > { %5038 = vpow2.f32 %v3115_v51  ;;  %v3402_v51 = vld [vmem:[#allocation8 + $0x238] sm:$0xff] }
 0x545   : > { %4748 = vmatpush3.bf16.msra.mxu0 %v4745_v61  ;;  %v3399_v61 = vld [vmem:[#allocation8 + $0x220] sm:$0xff] }
 0x546   : > { %4750 = vmatprep.subr.bf16.mxu0 %v4749_v45 }
 0x549   : > { %4752 = vmatpush3.bf16.msra.mxu0 %v4749_v45  ;;  %v4817_v45 = vpack.c.bf16 %v3402_v51, %v3401_v52 }
 0x54a   : > { %v5037_v12 = vpop.eup %5036  ;;  %4754 = vmatprep.subr.bf16.mxu0 %v4753_v10 }
 0x54b   : > { %v3117_v9 = vadd.f32 1.0, %v5037_v12  ;;  %v3405_v12 = vld [vmem:[#allocation8 + $0x250] sm:$0xff] }
 0x54d   : > { %5040 = vrcp.f32 %v3117_v9  ;;  %4756 = vmatpush3.bf16.msra.mxu0 %v4753_v10 }
 0x54e   : > { %v5039_v41 = vpop.eup %5038  ;;  %4758 = vmatprep.subr.bf16.mxu0 %v4757_v30 }
 0x54f   : > { %v3118_v49 = vadd.f32 1.0, %v5039_v41  ;;  %v3407_v41 = vld [vmem:[#allocation8 + $0x260] sm:$0xff] }
 0x551   : > { %5042 = vrcp.f32 %v3118_v49  ;;  %4760 = vmatpush3.bf16.msra.mxu0 %v4757_v30  ;;  %v3406_v30 = vld [vmem:[#allocation8 + $0x258] sm:$0xff] }
 0x552   : > { %4762 = vmatprep.subr.bf16.mxu0 %v4761_v57  ;;  %v4825_v27 = vpack.c.bf16 %v3406_v30, %v3405_v12 }
 0x555   : > { %4764 = vmatpush3.bf16.msra.mxu0 %v4761_v57  ;;  %v3408_v57 = vld [vmem:[#allocation8 + $0x268] sm:$0xff] }
 0x556   : > { %4766 = vmatprep.subr.bf16.mxu0 %v4765_v14  ;;  %v4829_v49 = vpack.c.bf16 %v3408_v57, %v3407_v41  ;;  %v5246_v41 = vmov 3   ;;  %v3526_v57 = vld [vmem:[%s6629_s15] sm:$0xff] }
 0x557   : > { %v5041_v16 = vpop.eup %5040 }
 0x558   : > { %v3123_v21 = vmul.f32 %v5041_v16, %v6380_v4  ;;  %v6404_v17 = vpop.f32.mrb[26].mxu1 }
 0x559   : > { %4768 = vmatpush3.bf16.msra.mxu0 %v4765_v14  ;;  %v3369_v13 = vpop.f32.mrb[27].mxu1  ;;  %v3294_v14 = vrot.slane %v6396_v23, %v5609_v5 }
 0x55a   : > { %v6406_v31 = vadd.f32 %v3369_v13, %v3298_v39  ;;  %4770 = vmatprep.subr.bf16.mxu0 %v4769_v59  ;;  %v3125_v62 = vmul.f32 %v3123_v21, %v3101_v58 }
 0x55b   : > { %v5043_v28 = vpop.eup %5042  ;;  %v3368_v63 = vadd.f32 %v6404_v17, %v3294_v14 }
 0x55c   : > { %v3124_v19 = vmul.f32 %v5043_v28, %v6390_v3  ;;  %v3378_v53 = vsub.f32 0.0, %v6406_v31  ;;  %4213 = vmatprep.mubr.f32.mxu0 %v3125_v62  ;;  %v3373_v4 = vpop.f32.mrb[28].mxu1  ;;  %v4813_v3 = vpack.c.bf16 %v3400_v22, %v3399_v61 }
 0x55d   : > { %4772 = vmatpush3.bf16.msra.mxu0 %v4769_v59  ;;  %v3375_v54 = vpop.f32.mrb[29].mxu1  ;;  %v3374_v11 = vadd.f32 %v3373_v4, %v3294_v14  ;;  %v3528_v14 = vld [vmem:[%s6629_s15 + $0x10] sm:$0xff] }
 0x55e   : > { %v3126_v43 = vmul.f32 %v3124_v19, %v3107_v0  ;;  %v3380_v6 = vmul.f32 1.442695, %v3378_v53  ;;  %v3376_v33 = vadd.f32 %v3375_v54, %v3298_v39  ;;  %4806 = vmatprep.subr.bf16.mxu0 %v4805_v48  ;;  %v3540_v19 = vld [vmem:[%s6629_s15 + $0x70] sm:$0xff] }
 0x560   : > { %5044 = vpow2.f32 %v3380_v6  ;;  %v3379_v32 = vsub.f32 0.0, %v3376_v33  ;;  %4214 = vmatmul.mubr.f32.vlgmr.msra.gmra.mrb[20].mxu0 %v3126_v43 }
 0x561   : > { %4808 = vmatpush3.bf16.msra.mxu0 %v4805_v48 }
 0x562   : > { %v3382_v36 = vmul.f32 1.442695, %v3379_v32  ;;  %4810 = vmatprep.subr.bf16.mxu0 %v4809_v2 }
 0x564   : > { %5046 = vpow2.f32 %v3382_v36 }
 0x565   : > { %4812 = vmatpush3.bf16.msra.mxu0 %v4809_v2 }
 0x566   : > { %4814 = vmatprep.subr.bf16.mxu0 %v4813_v3 }
 0x569   : > { %4816 = vmatpush3.bf16.msra.mxu0 %v4813_v3 }
 0x56a   : > { %v5045_v10 = vpop.eup %5044  ;;  %4818 = vmatprep.subr.bf16.mxu0 %v4817_v45 }
 0x56b   : > { %v3384_v1 = vadd.f32 1.0, %v5045_v10 }
 0x56d   : > { %5048 = vrcp.f32 %v3384_v1  ;;  %4820 = vmatpush3.bf16.msra.mxu0 %v4817_v45 }
 0x56e   : > { %v5047_v9 = vpop.eup %5046  ;;  %4822 = vmatprep.subr.bf16.mxu0 %v4821_v56 }
 0x56f   : > { %v3385_v15 = vadd.f32 1.0, %v5047_v9  ;;  %v5243_v9 = vmov 1  }
 0x571   : > { %5050 = vrcp.f32 %v3385_v15  ;;  %4824 = vmatpush3.bf16.msra.mxu0 %v4821_v56  ;;  %v5245_v15 = vmov 2  }
 0x572   : > { %4826 = vmatprep.subr.bf16.mxu0 %v4825_v27 }
 0x575   : > { %4828 = vmatpush3.bf16.msra.mxu0 %v4825_v27  ;;  %v5244_v27 = vmov 4  }
 0x576   : > { %4830 = vmatprep.subr.bf16.mxu0 %v4829_v49 }
 0x577   : > { %v5049_v60 = vpop.eup %5048 }
 0x578   : > { %v3390_v39 = vmul.f32 %v5049_v60, %v6406_v31  ;;  %v3530_v60 = vld [vmem:[%s6629_s15 + $0x20] sm:$0xff] }
 0x579   : > { %4832 = vmatpush3.bf16.msra.mxu0 %v4829_v49  ;;  %v3527_v49 = vld [vmem:[%s6629_s15 + $0x8] sm:$0xff] }
 0x57a   : > { %4834 = vmatprep.subr.bf16.mxu0 %v4833_v47  ;;  %v3392_v59 = vmul.f32 %v3390_v39, %v3368_v63  ;;  %v4838_v29 = vpack.c.bf16 %v3527_v49, %v3526_v57  ;;  %v3531_v39 = vld [vmem:[%s6629_s15 + $0x28] sm:$0xff] }
 0x57b   : > { %v5051_v16 = vpop.eup %5050 }
 0x57c   : > { %v3391_v55 = vmul.f32 %v5051_v16, %v3376_v33  ;;  %4248 = vmatprep.mubr.f32.mxu0 %v3392_v59  ;;  %4839 = vmatpush3.bf16.msra.mxu1 %v4838_v29  ;;  %v4844_v59 = vpack.c.bf16 %v3531_v39, %v3530_v60  ;;  %v3532_v16 = vld [vmem:[%s6629_s15 + $0x30] sm:$0xff] }
 0x57d   : > { %4836 = vmatpush3.bf16.msra.mxu0 %v4833_v47  ;;  %4840 = vmatprep.subr.bf16.mxu1 %v5247_v25  ;;  %v3529_v47 = vld [vmem:[%s6629_s15 + $0x18] sm:$0xff] }
 0x57e   : > { %v3393_v58 = vmul.f32 %v3391_v55, %v3374_v11  ;;  %4861 = vmatprep.subr.bf16.mxu0 %v5247_v25  ;;  %v4841_v63 = vpack.c.bf16 %v3529_v47, %v3528_v14  ;;  %v3533_v11 = vld [vmem:[%s6629_s15 + $0x38] sm:$0xff]  ;;  %v3534_v55 = vld [vmem:[%s6629_s15 + $0x40] sm:$0xff] }
 0x580   : > { %4249 = vmatmul.mubr.f32.vlgmr.msra.gmra.mrb[22].mxu0 %v3393_v58  ;;  %4842 = vmatpush3.bf16.msra.mxu1 %v4841_v63  ;;  %v4847_v58 = vpack.c.bf16 %v3533_v11, %v3532_v16  ;;  %v5072_v11 = vld [vmem:[#allocation2 + $0x17] sm:$0xff] }
 0x581   : > { %4843 = vmatprep.subr.bf16.mxu1 %v5247_v25 }
 0x584   : > { %4845 = vmatpush3.bf16.msra.mxu1 %v4844_v59 }
 0x585   : > { %4846 = vmatprep.subr.bf16.mxu1 %v5247_v25 }
 0x588   : > { %4848 = vmatpush3.bf16.msra.mxu1 %v4847_v58  ;;  %v5073_v58 = vld [vmem:[#allocation2 + $0xf] sm:$0xff] }
 0x589   : > { %4849 = vmatprep.subr.bf16.mxu1 %v5247_v25 }
 0x594   : > { %v1533_v21 = vpop.xlane.xlu1 %1532 }
 0x595   : > { %vm1535_vm12 = vcmp.ge.f32.partialorder %v6344_v8, %v1533_v21  ;;  %v1530_v23 = vpop.xlane.xlu0 %1529  ;;  %v3535_v21 = vld [vmem:[%s6629_s15 + $0x48] sm:$0xff] }
 0x596   : > { %vm1534_vm13 = vcmp.ge.f32.partialorder %v6352_v50, %v1530_v23  ;;  %v1537_v17 = vsel %vm1535_vm12, %v6317_v20, 5.0  ;;  %v5071_v23 = vld [vmem:[#allocation2] sm:$0xff] }
 0x597   : > { %v1541_v13 = vsel %vm1507_vm7, %v1537_v17, inf  ;;  %v1536_v31 = vsel %vm1534_vm13, %v6317_v20, 5.0  ;;  %4283 = vmatprep.mubr.msk.f32.mxu1 %vm5248_vm2, %v5071_v23  ;;  %4290 = vmatprep.mubr.msk.f32.mxu0 %vm5248_vm2, %v5071_v23  ;;  %v4850_v17 = vpack.c.bf16 %v3535_v21, %v3534_v55 }
 0x598   : > { %1542 = vmin.xlane.f32.xlu1 %v1541_v13  ;;  %v1538_v62 = vsel %vm1507_vm7, %v1536_v31, inf  ;;  %v3536_v13 = vld [vmem:[%s6629_s15 + $0x50] sm:$0xff]  ;;  %v3537_v31 = vld [vmem:[%s6629_s15 + $0x58] sm:$0xff] }
 0x599   : > { %1539 = vmin.xlane.f32.xlu0 %v1538_v62  ;;  %4851 = vmatpush3.bf16.msra.mxu1 %v4850_v17  ;;  %v4853_v62 = vpack.c.bf16 %v3537_v31, %v3536_v13 }
 0x59a   : > { %4852 = vmatprep.subr.bf16.mxu1 %v5247_v25 }
 0x59d   : > { %4854 = vmatpush3.bf16.msra.mxu1 %v4853_v62 }
 0x59e   : > { %4855 = vmatprep.subr.bf16.mxu1 %v5247_v25 }
 0x5f3   : > { %v6421_v48 = vpop.f32.mrb[16].mxu0 }
 0x5f4   : > { %v6423_v28 = vpop.f32.mrb[17].mxu0 }
 0x613   : > { %v6425_v40 = vpop.f32.mrb[18].mxu0 }
 0x614   : > { %v6427_v8 = vpop.f32.mrb[19].mxu0 }
 0x625   : > { %v1543_v46 = vpop.xlane.xlu1 %1542 }
 0x626   : > { %vm1545_vm14 = vcmp.eq.f32.partialorder %v6317_v20, %v1543_v46  ;;  %v1540_v50 = vpop.xlane.xlu0 %1539  ;;  %v3538_v46 = vld [vmem:[%s6629_s15 + $0x60] sm:$0xff] }
 0x627   : > { %vm6433_vm15 = vmor %vm1525_vm10, %vm1545_vm14  ;;  %vm1544_vm0 = vcmp.eq.f32.partialorder %v6317_v20, %v1540_v50  ;;  %v3539_v50 = vld [vmem:[%s6629_s15 + $0x68] sm:$0xff] }
 0x628   : > { %vm6441_vm1 = vmor %vm1524_vm11, %vm1544_vm0  ;;  %v1549_v53 = vsel %vm6433_vm15, %v6245_v34, -1e+30  ;;  %v4856_v0 = vpack.c.bf16 %v3539_v50, %v3538_v46 }
 0x629   : > { %v1553_v4 = vsel %vm1507_vm7, %v1549_v53, -inf  ;;  %v1548_v42 = vsel %vm6441_vm1, %v6247_v7, -1e+30 }
 0x62a   : > { %1554 = vmax.xlane.f32.xlu1 %v1553_v4  ;;  %v1550_v54 = vsel %vm1507_vm7, %v1548_v42, -inf  ;;  %4857 = vmatpush3.bf16.msra.mxu1 %v4856_v0 }
 0x62b   : > { %1551 = vmax.xlane.f32.xlu0 %v1550_v54  ;;  %4858 = vmatprep.subr.bf16.mxu1 %v5247_v25 }
 0x633   : > { %v6453_v43 = vpop.f32.mrb[20].mxu0 }
 0x634   : > { %v6455_v20 = vpop.f32.mrb[21].mxu0 }
 0x653   : > { %v6457_v35 = vpop.f32.mrb[22].mxu0 }
 0x654   : > { %v6459_v6 = vpop.f32.mrb[23].mxu0 }
 0x6b7   : > { %v1555_v33 = vpop.xlane.xlu1 %1554 }
 0x6b8   : > { %v1557_v34 = vsub.f32 %v1549_v53, %v1555_v33  ;;  %v1552_v2 = vpop.xlane.xlu0 %1551  ;;  %v3541_v53 = vld [vmem:[%s6629_s15 + $0x78] sm:$0xff] }
 0x6b9   : > { %v1556_v61 = vsub.f32 %v1548_v42, %v1552_v2  ;;  %v4859_v4 = vpack.c.bf16 %v3541_v53, %v3540_v19  ;;  %v3838_v42 = vld [vmem:[%s6628_s14] ss:$0 sm:$0xff]  ;;  %v3621_v53 = vld [vmem:[%s6631_s17 + $0x8] sm:$0xff] }
 0x6ba   : > { %v1560_v22 = vmul.f32 1.442695, %v1557_v34  ;;  %v2421_v54 = vadd.f32 %v6386_v37, %v3838_v42  ;;  %v3841_v34 = vld [vmem:[%s6628_s14 + $0x1] ss:$0 sm:$0xff] }
 0x6bb   : > { %v1558_v32 = vmul.f32 1.442695, %v1556_v61  ;;  %4860 = vmatpush3.bf16.msra.mxu1 %v4859_v4  ;;  %v2690_v61 = vadd.f32 %v6421_v48, %v3841_v34  ;;  %v3850_v48 = vld [vmem:[%s6628_s14 + $0x4] ss:$0 sm:$0xff] }
 0x6bc   : > { %5052 = vpow2.f32 %v1560_v22  ;;  %v3486_v59 = vadd.f32 %v3850_v48, %v6459_v6  ;;  %v3620_v19 = vld [vmem:[%s6631_s17] sm:$0xff] }
 0x6bd   : > { %5054 = vpow2.f32 %v1558_v32  ;;  %v3844_v32 = vld [vmem:[%s6628_s14 + $0x2] ss:$0 sm:$0xff]  ;;  %v4862_v4 = vpack.c.bf16 %v3621_v53, %v3620_v19 }
 0x6bf   : > { %4863 = vmatpush3.bf16.msra.mxu0 %v4862_v4 }
 0x6c6   : > { %v5053_v7 = vpop.eup %5052 }
 0x6c7   : > { %v5055_v36 = vpop.eup %5054  ;;  %v1563_v3 = vsel %vm6433_vm15, %v5053_v7, 0.0 }
 0x6c8   : > { %v1567_v52 = vsel %vm1507_vm7, %v1563_v3, 0.0  ;;  %v1562_v51 = vsel %vm6441_vm1, %v5055_v36, 0.0 }
 0x6c9   : > { %1568 = vadd.xlane.f32.xlu1 %v1567_v52  ;;  %v1564_v45 = vsel %vm1507_vm7, %v1562_v51, 0.0  ;;  %v2957_v52 = vadd.f32 %v6425_v40, %v3844_v32  ;;  %v3491_v40 = vadd.f32 %v6457_v35, %v3850_v48 }
 0x6ca   : > { %1565 = vadd.xlane.f32.xlu0 %v1564_v45  ;;  %v3847_v45 = vld [vmem:[%s6628_s14 + $0x3] ss:$0 sm:$0xff] }
 0x6cb   : > { %v3219_v35 = vadd.f32 %v3847_v45, %v6455_v20 }
 0x756   : > { %v1569_v18 = vpop.xlane.xlu1 %1568 }
 0x757   : > { %5056 = vrcp.f32 %v1569_v18  ;;  %v1566_v10 = vpop.xlane.xlu0 %1565 }
 0x758   : > { %5058 = vrcp.f32 %v1566_v10  ;;  %v3224_v10 = vadd.f32 %v6453_v43, %v3847_v45  ;;  %v2952_v43 = vadd.f32 %v3844_v32, %v6427_v8 }
 0x761   : > { %v5057_v56 = vpop.eup %5056 }
 0x762   : > { %v5059_v1 = vpop.eup %5058  ;;  %v1573_v12 = vmul.f32 %v5057_v56, %v1563_v3 }
 0x763   : > { %v1572_v30 = vmul.f32 %v5059_v1, %v1562_v51 }
 0x764   : > { %2431 = vperm.xlu1 %4950, %v1573_v12  }
 0x765   : > { %2426 = vperm.xlu0 %4954, %v1572_v30  }
 0x768   : > { %4951 = vset.pattern.permute.xlu1 %v5243_v9 }
 0x769   : > { %2698 = vperm.xlu1 %4951, %v1573_v12   ;;  %4959 = vset.pattern.permute.xlu0 %v5244_v27 }
 0x76a   : > { %3499 = vperm.xlu0 %4959, %v1573_v12  }
 0x76d   : > { %4952 = vset.pattern.permute.xlu1 %v5245_v15 }
 0x76e   : > { %2965 = vperm.xlu1 %4952, %v1573_v12  }
 0x772   : > { %4953 = vset.pattern.permute.xlu1 %v5246_v41 }
 0x773   : > { %3232 = vperm.xlu1 %4953, %v1573_v12  }
 0x777   : > { %4955 = vset.pattern.permute.xlu1 %v5243_v9 }
 0x778   : > { %2694 = vperm.xlu1 %4955, %v1572_v30  }
 0x77c   : > { %4956 = vset.pattern.permute.xlu1 %v5245_v15  ;;  %v2685_v15 = vadd.f32 %v3841_v34, %v6423_v28  ;;  %v3851_v28 = vld [vmem:[%s6633_s19] ss:$0 sm:$0xff] }
 0x77d   : > { %2961 = vperm.xlu1 %4956, %v1572_v30   ;;  %v3514_v55 = vmul.f32 %v5072_v11, %v3851_v28  ;;  %v3513_v8 = vmul.f32 %v5073_v58, %v3851_v28 }
 0x781   : > { %4957 = vset.pattern.permute.xlu1 %v5246_v41 }
 0x782   : > { %3228 = vperm.xlu1 %4957, %v1572_v30  }
 0x786   : > { %4958 = vset.pattern.permute.xlu1 %v5244_v27 }
 0x787   : > { %3495 = vperm.xlu1 %4958, %v1572_v30  }
 0x7e3   : > { %v2432_v33 = vpop.permute.xlu1 %2431 }
 0x7e4   : > { %v2435_v2 = vmul.f32 %v2432_v33, %v2421_v54  ;;  %v2427_v37 = vpop.permute.xlu0 %2426 }
 0x7e6   : > { %v2437_v7 = vadd.f32 %v2435_v2, %v6085_v24  ;;  %v2416_v24 = vadd.f32 %v3838_v42, %v6388_v44  ;;  %v3542_v42 = vld [vmem:[%s6630_s16] sm:$0x1] }
 0x7e8   : > { %v2699_v22 = vpop.permute.xlu1 %2698  ;;  %v2434_v30 = vmul.f32 %v2427_v37, %v2416_v24 }
 0x7e9   : > { %v2702_v36 = vmul.f32 %v2699_v22, %v2690_v61  ;;  %v3500_v56 = vpop.permute.xlu0 %3499 }
 0x7ea   : > { %v3503_v9 = vmul.f32 %v3500_v56, %v3491_v40  ;;  %v2436_v49 = vadd.f32 %v2434_v30, %v6053_v26  ;;  %v5074_v40 = vld [vmem:[%s5500_s28] sm:$0xff] }
 0x7eb   : > { %v2704_v3 = vadd.f32 %v2702_v36, %v2437_v7 }
 0x7ed   : > { %v2966_v51 = vpop.permute.xlu1 %2965 }
 0x7ee   : > { %v2969_v38 = vmul.f32 %v2966_v51, %v2957_v52 }
 0x7f0   : > { %v2971_v18 = vadd.f32 %v2969_v38, %v2704_v3  ;;  %v3622_v3 = vld [vmem:[%s6733_s26] sm:$0x1] }
 0x7f2   : > { %v3233_v1 = vpop.permute.xlu1 %3232 }
 0x7f3   : > { %v3236_v12 = vmul.f32 %v3233_v1, %v3224_v10 }
 0x7f5   : > { %v3238_v27 = vadd.f32 %v3236_v12, %v2971_v18 }
 0x7f7   : > { %v6538_v41 = vadd.f32 %v3503_v9, %v3238_v27  ;;  %v2695_v57 = vpop.permute.xlu1 %2694 }
 0x7f8   : > { %v2701_v25 = vmul.f32 %v2695_v57, %v2685_v15 }
 0x7f9   : > { %v3516_v23 = vadd.f32 %v3514_v55, %v6538_v41 }
 0x7fa   : > { %v2703_v29 = vadd.f32 %v2701_v25, %v2436_v49 }
 0x7fc   : > { %v2962_v44 = vpop.permute.xlu1 %2961 }
 0x7fd   : > { %v2968_v14 = vmul.f32 %v2962_v44, %v2952_v43 }
 0x7ff   : > { %v2970_v47 = vadd.f32 %v2968_v14, %v2703_v29 }
 0x801   : > { %v3229_v60 = vpop.permute.xlu1 %3228 }
 0x802   : > { %v3235_v63 = vmul.f32 %v3229_v60, %v3219_v35 }
 0x804   : > { %v3237_v39 = vadd.f32 %v3235_v63, %v2970_v47 }
 0x806   : > { %v3496_v16 = vpop.permute.xlu1 %3495 }
 0x807   : > { %v3502_v26 = vmul.f32 %v3496_v16, %v3486_v59 }
 0x809   : > { %v3504_v21 = vadd.f32 %v3502_v26, %v3237_v39 }
 0x80b   : > { %v3515_v17 = vadd.f32 %v3513_v8, %v3504_v21 }
 0x80d   : > { %v3517_v20 = vadd.f32 %v3516_v23, %v3515_v17 }
 0x80f   : > { %v3518_v13 = vrot.slane %v3517_v20, 4 }
 0x811   : > { %v3519_v31 = vadd.f32 %v3518_v13, %v3517_v20 }
 0x813   : > { %v3520_v62 = vrot.slane %v3519_v31, 2 }
 0x815   : > { %v3521_v46 = vadd.f32 %v3520_v62, %v3519_v31 }
 0x817   : > { %v3522_v6 = vrot.slane %v3521_v46, 1 }
 0x819   : > { %v3523_v50 = vadd.f32 %v3522_v6, %v3521_v46 }
 0x81b   : > { %v3525_v0 = vmul.f32 0.0625, %v3523_v50 }
 0x81d   : > { %4284 = vmatmul.mubr.f32.vlgmr.msra.gmra.mrb[30].mxu1 %v3525_v0 }
 0x8f0   : > { %v3609_v54 = vpop.f32.mrb[30].mxu1 }
 0x8f1   : > { %v3610_v33 = vadd.f32 %v3609_v54, %v3542_v42  ;;  %v4285_v34 = vpop.f32.mrb[31].mxu1 }
 0x8f3   : > { %v3613_v2 = vsub.f32 0.0, %v3610_v33 }
 0x8f5   : > { %v3614_v61 = vmul.f32 1.442695, %v3613_v2 }
 0x8f7   : > { %5060 = vpow2.f32 %v3614_v61 }
 0x901   : > { %v5061_v22 = vpop.eup %5060 }
 0x902   : > { %v3616_v32 = vadd.f32 1.0, %v5061_v22 }
 0x904   : > { %5062 = vrcp.f32 %v3616_v32 }
 0x90e   : > { %v5063_v7 = vpop.eup %5062 }
 0x90f   : > { %v3619_v36 = vmul.f32 %v5063_v7, %v3610_v33 }
 0x911   : > { %4291 = vmatmul.mubr.msk.f32.vlgmr.msra.gmra.mrb[24].mxu0 %vm3623_vm3, %v3619_v36 }
 0x9e4   : > { %v3693_v52 = vpop.f32.mrb[24].mxu0 }
 0x9e5   : > { %v3694_v37 = vadd.f32 %v3693_v52, %v3622_v3  ;;  %v4292_v51 = vpop.f32.mrb[25].mxu0 }
 0x9e7   : > { %v3697_v45 = vsub.f32 0.0, %v3694_v37 }
 0x9e9   : > { %v3698_v38 = vmul.f32 1.442695, %v3697_v45 }
 0x9eb   : > { %5064 = vpow2.f32 %v3698_v38 }
 0x9f5   : > { %v5065_v48 = vpop.eup %5064 }
 0x9f6   : > { %v3700_v18 = vadd.f32 1.0, %v5065_v48 }
 0x9f8   : > { %5066 = vrcp.f32 %v3700_v18 }
 0xa02   : > { %v5067_v10 = vpop.eup %5066 }
 0xa03   : > { %v3706_v24 = vrot.slane %v5067_v10, %v5609_v5  ;;  %v5075_v5 = vld [vmem:[%s5500_s28 + $0x8] sm:$0xff] }
 0xa05   : > { %v3707_v56 = vmul.f32 %v3706_v24, %v3504_v21  ;;  %v3708_v1 = vmul.f32 %v3706_v24, %v6538_v41 }
 0xa07   : > { %v3709_v12 = vadd.f32 %v5074_v40, %v3707_v56  ;;  %v3710_v30 = vadd.f32 %v5075_v5, %v3708_v1 }
 0xa09   : > { %3711 = vst [vmem:[%s666_s20] sm:$0xff] %v3709_v12  ;;  %3712 = vst [vmem:[%s666_s20 + $0x8] sm:$0xff] %v3710_v30 }
 0xa0a   : > { %5173 = shalt.err (!%p5170_p11)
}
 0xa0b   : > { %s5174_s28 = scalar_lea.hbm %s6567_s4, 256  ;;  %s5178_s21 = scalar_lea.hbm %s6735_s0, 512 }
 0xa0c   : > { %p5175_p13 = scmp.ne.s32.totalorder %s6567_s4, %s5174_s28  ;;  %p5179_p6 = scmp.lt.u32.totalorder %s6567_s4, %s6735_s0 }
 0xa0d   : > { %p5180_p9 = scmp.lt.u32.totalorder %s5178_s21, %s5174_s28  ;;  %p5182_p12 = scmp.lt.u32.totalorder %s5174_s28, %s6567_s4 }
 0xa0e   : > { %p5176_p5 = pnand %p5175_p13, %p6736_p1 }
 0xa0f   : > { %p5181_p10 = por %p5180_p9, %p5179_p6 }
 0xa10   : > { %p5177_p0 = pneg %p5176_p5 }
 0xa11   : > { %p5183_p2 = por %p5182_p12, %p5181_p10 }
 0xa13   : > { %p5184_p3 = pnand %p5183_p2, %p5177_p0 }
 0xa15   : > { %5187 = shalt.err (!%p5184_p3)
}
 0xa16   : > { %s5250_s11 = smov 128   ;;  %s5251_s25 = smov 8  }
 0xa17   : > { %4876 = dma.vmem_to_hbm [thread:$0]  (%p6736_p1), %s6569_s22, 256, %s6567_s4, %s6573_s2, %s5250_s11, %s5250_s11, %s5251_s25  }
 0xa18 PF: > { %s6737_s30 = sld [smem:[#allocation16_spill]]  ;;  %s6738_s1 = sld [smem:[#allocation13_spill]] }
 0xa19   : > { %s6739_s24 = sld [smem:[#allocation20_spill]] }
 0xa1e   : > { %p4898_p4 = scmp.ge.s32.totalorder %s6737_s30, 2  ;;  %s3742_s3 = sand.u32 1, %s6738_s1  }
 0xa1f   : > { %p6740_p7 = scmp.ne.s32.totalorder %s6739_s24, 0  ;;  %s3743_s28 = scalar_lea.sflag [#allocation5], %s3742_s3 }
 0xa21   : > { %p4889_p8 = pnand %p4898_p4, %p6740_p7 }
 0xa23   : > { %5213 = dma.done.wait (!%p4889_p8), %s3743_s28, 256  }
 0xa24   : > { %5215 = vsyncadd (!%p4889_p8), %s3743_s28, 4294967040  ;;  %s6741_s24 = sld [smem:[#allocation17_spill]]  ;;  %s6742_s1 = sld [smem:[#allocation14_spill]] }
 0xa25   : > { %s6743_s22 = sld [smem:[#allocation15_spill]]  ;;  %s6744_s23 = sld [smem:[#allocation18_spill]] }
 0xa2a   : > { %p32_p11 = scmp.ge.s32.totalorder %s6741_s24, 4  }
 0xa2c   :  { %34 = sbr.rel (!%p32_p11) target bundleno = 14 (0xe), region = 164 }
 0xa33   :  { %3748 = vsyncpa [#allocation4], 1 }
 0xa34   :  { %3750 = vsyncpa [#allocation4 + $0x1], 1 }
 0xa35   :  { %3751 = vsyncpa [#allocation7], 1 }
 0xa36   :  { %3752 = vsyncpa [#allocation5], 1 }
 0xa37   :  { %3754 = vsyncpa [#allocation5 + $0x1], 1 }

</bundles_post_ra>
